<compile_context>
chip_gen: v7x
topology: tpu7x:2x2x1
jax: 0.10.0
libtpu: 0.0.40
codegen_flags: <defaults>
</compile_context>

<pallas_src>
import functools

import jax
import jax.numpy as jnp
from jax.experimental import pallas as pl
from jax.experimental.pallas import tpu as pltpu

BN_EPS = 1e-5
LANE = 128


# --------------------------------------------------------------------------
# Kernel
# --------------------------------------------------------------------------
def vae_kernel(x_dim, x_ref, eps_ref, w_ref, b_ref, out_ref):
    """Single-invocation, fully VMEM-resident VAE forward.

    w_ref : (128, 896) bf16  — [we0 | we1 | wmu | wlv | wd0 | wd1 | wrec]
    b_ref : (1, 896)  f32    — matching biases, same column layout
    """
    x = x_ref[...]

    def linear(a, col, k_rows=LANE, n_cols=LANE):
        # Static slices of a VMEM ref are free; bf16 MXU operands, f32 acc.
        w = w_ref[:k_rows, col:col + n_cols]
        b = b_ref[:, col:col + n_cols]
        return jnp.dot(a.astype(jnp.bfloat16), w,
                       preferred_element_type=jnp.float32) + b

    def relu_bn(h):
        # ReLU then nn.BatchNorm1d (training-mode batch stats, identity affine
        # as at module init: weight=1, bias=0).  Centered variance pass.
        h = jnp.maximum(h, 0.0)
        inv_n = 1.0 / h.shape[0]
        mean = jnp.sum(h, axis=0, keepdims=True) * inv_n
        c = h - mean
        var = jnp.sum(c * c, axis=0, keepdims=True) * inv_n
        return c * jax.lax.rsqrt(var + BN_EPS)

    # ---------------- Encoder ----------------
    h = relu_bn(linear(x, 0, k_rows=x_dim))        # Linear(x -> h0), ReLU, BN
    h = relu_bn(linear(h, 128))                    # Linear(h0 -> h1), ReLU, BN

    # Fused mu | log_var projection (single MXU pass), sliced at the 128-lane
    # tile boundary.
    g = linear(h, 256, n_cols=256)                 # (B, 256)
    mu = g[:, :LANE]
    log_var = g[:, LANE:]

    # GaussianSample reparameterization.  eps is host-provided N(0, I).
    # TODO(synk): GaussianSample source is not provided; using the standard
    # z = mu + exp(0.5 * log_var) * eps (no softplus).
    z = mu + jnp.exp(0.5 * log_var) * eps_ref[...]

    # TODO(synk): self.kl_divergence (gaussian_entropy / log_marginal_gaussian)
    # is not defined in the provided module and does not affect the returned
    # x_mu, so it is not computed here.

    # ---------------- Decoder ----------------
    d = relu_bn(linear(z, 512))                    # Linear(z  -> h1), ReLU, BN
    d = relu_bn(linear(d, 640))                    # Linear(h1 -> h0), ReLU, BN
    rec = linear(d, 768)                           # Linear(h0 -> x), real cols 0:x_dim

    # Exact-range sigmoid via a single tanh EUP push: 0.5*(tanh(0.5*x)+1).
    out_ref[...] = (0.5 * (jnp.tanh(0.5 * rec[:, :x_dim]) + 1.0)).astype(out_ref.dtype)


# --------------------------------------------------------------------------
# Parameter construction (matches the PyTorch module __init__)
# --------------------------------------------------------------------------
def _xavier_normal(key, fan_in, fan_out):
    std = jnp.sqrt(2.0 / (fan_in + fan_out))
    return jax.random.normal(key, (fan_in, fan_out), dtype=jnp.float32) * std


def init_vae_params(key, x_dim, z_dim, h_dim):
    """xavier_normal weights ([in, out] layout), zero biases."""
    h0, h1 = h_dim
    ks = jax.random.split(key, 7)
    return {
        "we0": _xavier_normal(ks[0], x_dim, h0), "be0": jnp.zeros((h0,), jnp.float32),
        "we1": _xavier_normal(ks[1], h0, h1),    "be1": jnp.zeros((h1,), jnp.float32),
        "wmu": _xavier_normal(ks[2], h1, z_dim), "bmu": jnp.zeros((z_dim,), jnp.float32),
        "wlv": _xavier_normal(ks[3], h1, z_dim), "blv": jnp.zeros((z_dim,), jnp.float32),
        "wd0": _xavier_normal(ks[4], z_dim, h1), "bd0": jnp.zeros((h1,), jnp.float32),
        "wd1": _xavier_normal(ks[5], h1, h0),    "bd1": jnp.zeros((h0,), jnp.float32),
        "wrec": _xavier_normal(ks[6], h0, x_dim), "brec": jnp.zeros((x_dim,), jnp.float32),
    }


def _pad_block(w, rows=LANE, cols=LANE):
    r, c = w.shape
    return jnp.pad(w, ((0, rows - r), (0, cols - c)))


def prepare_kernel_params(params, x_dim, z_dim, h_dim):
    """Pack all weights into one (128, 896) bf16 blob and all biases into one
    (1, 896) f32 blob (each logical layer occupies a 128-lane column band)."""
    del x_dim, z_dim, h_dim  # layout is fixed by the padded 128-lane bands
    w_order = ["we0", "we1", "wmu", "wlv", "wd0", "wd1", "wrec"]
    b_order = ["be0", "be1", "bmu", "blv", "bd0", "bd1", "brec"]

    w_blob = jnp.concatenate([_pad_block(params[k]) for k in w_order],
                             axis=1).astype(jnp.bfloat16)          # (128, 896)
    b_blob = jnp.concatenate([jnp.pad(params[k], (0, LANE - params[k].shape[0]))
                              for k in b_order]
                             ).reshape(1, len(b_order) * LANE).astype(jnp.float32)
    return w_blob, b_blob


# --------------------------------------------------------------------------
# Wrapper
# --------------------------------------------------------------------------
@jax.jit
def vae_forward(x, eps, w_blob, b_blob):
    batch, x_dim = x.shape
    vmem = pl.BlockSpec(memory_space=pltpu.MemorySpace.VMEM)

    return pl.pallas_call(
        functools.partial(vae_kernel, x_dim),
        out_shape=jax.ShapeDtypeStruct((batch, x_dim), jnp.float32),
        in_specs=[vmem, vmem, vmem, vmem],
        out_specs=vmem,
        compiler_params=pltpu.CompilerParams(vmem_limit_bytes=32 * 1024 * 1024),
    )(x, eps, w_blob, b_blob)


# --------------------------------------------------------------------------
if __name__ == "__main__":
    # Module-consistent dims: dims = [x_dim, z_dim, h_dim]
    x_dim = 32
    z_dim = 16
    h_dim = [64, 32]
    batch = 256    # M >= 256 keeps the MXU streaming full tiles; BN needs B > 1

    key = jax.random.PRNGKey(0)
    k_x, k_eps, k_params = jax.random.split(key, 3)

    x = jax.random.uniform(k_x, (batch, x_dim), dtype=jnp.float32)
    # Host-side standard-normal noise for the reparameterization trick.
    # Only the first z_dim lanes are ever used (padded z lanes hit zero
    # decoder weight rows).  Vary the key per training step in real use.
    eps = jax.random.normal(k_eps, (batch, LANE), dtype=jnp.float32)

    params = init_vae_params(k_params, x_dim, z_dim, h_dim)
    w_blob, b_blob = prepare_kernel_params(params, x_dim, z_dim, h_dim)

    x_mu = vae_forward(x, eps, w_blob, b_blob)
    jax.block_until_ready(x_mu)

    assert x_mu.shape == (batch, x_dim)
    assert x_mu.dtype == jnp.float32
    assert bool(jnp.all(jnp.isfinite(x_mu)))
    assert bool(jnp.all((x_mu >= 0.0) & (x_mu <= 1.0)))
    print("KERNEL_OK")
</pallas_src>

<mosaic_0001>
module attributes {stable_mosaic.version = 11 : i64} {
  func.func @vae_kernel(%arg0: memref<256x32xf32, #tpu.memory_space<vmem>>, %arg1: memref<256x128xf32, #tpu.memory_space<vmem>>, %arg2: memref<128x896xbf16, #tpu.memory_space<vmem>>, %arg3: memref<1x896xf32, #tpu.memory_space<vmem>>, %arg4: memref<256x32xf32, #tpu.memory_space<vmem>>) attributes {dimension_semantics = [], scalar_prefetch = 0 : i64, scratch_operands = 0 : i64, tpu.core_type = #tpu.core_type<tc>} {
    %c0 = arith.constant 0 : index
    %c0_0 = arith.constant 0 : index
    %0 = vector.load %arg0[%c0, %c0_0] : memref<256x32xf32, #tpu.memory_space<vmem>>, vector<256x32xf32>
    %c0_1 = arith.constant 0 : index
    %c0_2 = arith.constant 0 : index
    %1 = vector.load %arg2[%c0_1, %c0_2] : memref<128x896xbf16, #tpu.memory_space<vmem>>, vector<32x128xbf16>
    %c0_3 = arith.constant 0 : index
    %c0_4 = arith.constant 0 : index
    %2 = vector.load %arg3[%c0_3, %c0_4] : memref<1x896xf32, #tpu.memory_space<vmem>>, vector<1x128xf32>
    %3 = arith.truncf %0 : vector<256x32xf32> to vector<256x32xbf16>
    %cst = arith.constant dense<0.000000e+00> : vector<256x128xf32>
    %4 = tpu.matmul %3, %1, %cst {dimension_numbers = #tpu.dot_dimension_numbers<[1], [0], [0], [1], [0, 0, 1, 1], [], []>} : vector<256x32xbf16>, vector<32x128xbf16>, vector<256x128xf32> -> vector<256x128xf32>
    %5 = vector.broadcast %2 : vector<1x128xf32> to vector<256x128xf32>
    %6 = arith.addf %4, %5 : vector<256x128xf32>
    %cst_5 = arith.constant 0.000000e+00 : f32
    %7 = vector.broadcast %cst_5 : f32 to vector<256x128xf32>
    %8 = arith.maximumf %6, %7 : vector<256x128xf32>
    %cst_6 = arith.constant dense<0.000000e+00> : vector<128xf32>
    %9 = vector.multi_reduction <add>, %8, %cst_6 [0] : vector<256x128xf32> to vector<128xf32>
    %10 = vector.shape_cast %9 : vector<128xf32> to vector<1x128xf32>
    %cst_7 = arith.constant 3.906250e-03 : f32
    %11 = vector.broadcast %cst_7 : f32 to vector<1x128xf32>
    %12 = arith.mulf %10, %11 : vector<1x128xf32>
    %13 = vector.broadcast %12 : vector<1x128xf32> to vector<256x128xf32>
    %14 = arith.subf %8, %13 : vector<256x128xf32>
    %15 = arith.mulf %14, %14 : vector<256x128xf32>
    %cst_8 = arith.constant dense<0.000000e+00> : vector<128xf32>
    %16 = vector.multi_reduction <add>, %15, %cst_8 [0] : vector<256x128xf32> to vector<128xf32>
    %17 = vector.shape_cast %16 : vector<128xf32> to vector<1x128xf32>
    %cst_9 = arith.constant 3.906250e-03 : f32
    %18 = vector.broadcast %cst_9 : f32 to vector<1x128xf32>
    %19 = arith.mulf %17, %18 : vector<1x128xf32>
    %cst_10 = arith.constant 9.99999974E-6 : f32
    %20 = vector.broadcast %cst_10 : f32 to vector<1x128xf32>
    %21 = arith.addf %19, %20 : vector<1x128xf32>
    %22 = math.rsqrt %21 : vector<1x128xf32>
    %23 = vector.broadcast %22 : vector<1x128xf32> to vector<256x128xf32>
    %24 = arith.mulf %14, %23 : vector<256x128xf32>
    %c0_11 = arith.constant 0 : index
    %c128 = arith.constant 128 : index
    %25 = vector.load %arg2[%c0_11, %c128] : memref<128x896xbf16, #tpu.memory_space<vmem>>, vector<128x128xbf16>
    %c0_12 = arith.constant 0 : index
    %c128_13 = arith.constant 128 : index
    %26 = vector.load %arg3[%c0_12, %c128_13] : memref<1x896xf32, #tpu.memory_space<vmem>>, vector<1x128xf32>
    %27 = arith.truncf %24 : vector<256x128xf32> to vector<256x128xbf16>
    %cst_14 = arith.constant dense<0.000000e+00> : vector<256x128xf32>
    %28 = tpu.matmul %27, %25, %cst_14 {dimension_numbers = #tpu.dot_dimension_numbers<[1], [0], [0], [1], [0, 0, 1, 1], [], []>} : vector<256x128xbf16>, vector<128x128xbf16>, vector<256x128xf32> -> vector<256x128xf32>
    %29 = vector.broadcast %26 : vector<1x128xf32> to vector<256x128xf32>
    %30 = arith.addf %28, %29 : vector<256x128xf32>
    %cst_15 = arith.constant 0.000000e+00 : f32
    %31 = vector.broadcast %cst_15 : f32 to vector<256x128xf32>
    %32 = arith.maximumf %30, %31 : vector<256x128xf32>
    %cst_16 = arith.constant dense<0.000000e+00> : vector<128xf32>
    %33 = vector.multi_reduction <add>, %32, %cst_16 [0] : vector<256x128xf32> to vector<128xf32>
    %34 = vector.shape_cast %33 : vector<128xf32> to vector<1x128xf32>
    %cst_17 = arith.constant 3.906250e-03 : f32
    %35 = vector.broadcast %cst_17 : f32 to vector<1x128xf32>
    %36 = arith.mulf %34, %35 : vector<1x128xf32>
    %37 = vector.broadcast %36 : vector<1x128xf32> to vector<256x128xf32>
    %38 = arith.subf %32, %37 : vector<256x128xf32>
    %39 = arith.mulf %38, %38 : vector<256x128xf32>
    %cst_18 = arith.constant dense<0.000000e+00> : vector<128xf32>
    %40 = vector.multi_reduction <add>, %39, %cst_18 [0] : vector<256x128xf32> to vector<128xf32>
    %41 = vector.shape_cast %40 : vector<128xf32> to vector<1x128xf32>
    %cst_19 = arith.constant 3.906250e-03 : f32
    %42 = vector.broadcast %cst_19 : f32 to vector<1x128xf32>
    %43 = arith.mulf %41, %42 : vector<1x128xf32>
    %cst_20 = arith.constant 9.99999974E-6 : f32
    %44 = vector.broadcast %cst_20 : f32 to vector<1x128xf32>
    %45 = arith.addf %43, %44 : vector<1x128xf32>
    %46 = math.rsqrt %45 : vector<1x128xf32>
    %47 = vector.broadcast %46 : vector<1x128xf32> to vector<256x128xf32>
    %48 = arith.mulf %38, %47 : vector<256x128xf32>
    %c0_21 = arith.constant 0 : index
    %c256 = arith.constant 256 : index
    %49 = vector.load %arg2[%c0_21, %c256] : memref<128x896xbf16, #tpu.memory_space<vmem>>, vector<128x256xbf16>
    %c0_22 = arith.constant 0 : index
    %c256_23 = arith.constant 256 : index
    %50 = vector.load %arg3[%c0_22, %c256_23] : memref<1x896xf32, #tpu.memory_space<vmem>>, vector<1x256xf32>
    %51 = arith.truncf %48 : vector<256x128xf32> to vector<256x128xbf16>
    %cst_24 = arith.constant dense<0.000000e+00> : vector<256x256xf32>
    %52 = tpu.matmul %51, %49, %cst_24 {dimension_numbers = #tpu.dot_dimension_numbers<[1], [0], [0], [1], [0, 0, 1, 1], [], []>} : vector<256x128xbf16>, vector<128x256xbf16>, vector<256x256xf32> -> vector<256x256xf32>
    %53 = vector.broadcast %50 : vector<1x256xf32> to vector<256x256xf32>
    %54 = arith.addf %52, %53 : vector<256x256xf32>
    %55 = vector.extract_strided_slice %54 {offsets = [0, 0], sizes = [256, 128], strides = [1, 1]} : vector<256x256xf32> to vector<256x128xf32>
    %56 = vector.extract_strided_slice %54 {offsets = [0, 128], sizes = [256, 128], strides = [1, 1]} : vector<256x256xf32> to vector<256x128xf32>
    %cst_25 = arith.constant 5.000000e-01 : f32
    %57 = vector.broadcast %cst_25 : f32 to vector<256x128xf32>
    %58 = arith.mulf %57, %56 : vector<256x128xf32>
    %59 = math.exp %58 : vector<256x128xf32>
    %c0_26 = arith.constant 0 : index
    %c0_27 = arith.constant 0 : index
    %60 = vector.load %arg1[%c0_26, %c0_27] : memref<256x128xf32, #tpu.memory_space<vmem>>, vector<256x128xf32>
    %61 = arith.mulf %59, %60 : vector<256x128xf32>
    %62 = arith.addf %55, %61 : vector<256x128xf32>
    %c0_28 = arith.constant 0 : index
    %c512 = arith.constant 512 : index
    %63 = vector.load %arg2[%c0_28, %c512] : memref<128x896xbf16, #tpu.memory_space<vmem>>, vector<128x128xbf16>
    %c0_29 = arith.constant 0 : index
    %c512_30 = arith.constant 512 : index
    %64 = vector.load %arg3[%c0_29, %c512_30] : memref<1x896xf32, #tpu.memory_space<vmem>>, vector<1x128xf32>
    %65 = arith.truncf %62 : vector<256x128xf32> to vector<256x128xbf16>
    %cst_31 = arith.constant dense<0.000000e+00> : vector<256x128xf32>
    %66 = tpu.matmul %65, %63, %cst_31 {dimension_numbers = #tpu.dot_dimension_numbers<[1], [0], [0], [1], [0, 0, 1, 1], [], []>} : vector<256x128xbf16>, vector<128x128xbf16>, vector<256x128xf32> -> vector<256x128xf32>
    %67 = vector.broadcast %64 : vector<1x128xf32> to vector<256x128xf32>
    %68 = arith.addf %66, %67 : vector<256x128xf32>
    %cst_32 = arith.constant 0.000000e+00 : f32
    %69 = vector.broadcast %cst_32 : f32 to vector<256x128xf32>
    %70 = arith.maximumf %68, %69 : vector<256x128xf32>
    %cst_33 = arith.constant dense<0.000000e+00> : vector<128xf32>
    %71 = vector.multi_reduction <add>, %70, %cst_33 [0] : vector<256x128xf32> to vector<128xf32>
    %72 = vector.shape_cast %71 : vector<128xf32> to vector<1x128xf32>
    %cst_34 = arith.constant 3.906250e-03 : f32
    %73 = vector.broadcast %cst_34 : f32 to vector<1x128xf32>
    %74 = arith.mulf %72, %73 : vector<1x128xf32>
    %75 = vector.broadcast %74 : vector<1x128xf32> to vector<256x128xf32>
    %76 = arith.subf %70, %75 : vector<256x128xf32>
    %77 = arith.mulf %76, %76 : vector<256x128xf32>
    %cst_35 = arith.constant dense<0.000000e+00> : vector<128xf32>
    %78 = vector.multi_reduction <add>, %77, %cst_35 [0] : vector<256x128xf32> to vector<128xf32>
    %79 = vector.shape_cast %78 : vector<128xf32> to vector<1x128xf32>
    %cst_36 = arith.constant 3.906250e-03 : f32
    %80 = vector.broadcast %cst_36 : f32 to vector<1x128xf32>
    %81 = arith.mulf %79, %80 : vector<1x128xf32>
    %cst_37 = arith.constant 9.99999974E-6 : f32
    %82 = vector.broadcast %cst_37 : f32 to vector<1x128xf32>
    %83 = arith.addf %81, %82 : vector<1x128xf32>
    %84 = math.rsqrt %83 : vector<1x128xf32>
    %85 = vector.broadcast %84 : vector<1x128xf32> to vector<256x128xf32>
    %86 = arith.mulf %76, %85 : vector<256x128xf32>
    %c0_38 = arith.constant 0 : index
    %c640 = arith.constant 640 : index
    %87 = vector.load %arg2[%c0_38, %c640] : memref<128x896xbf16, #tpu.memory_space<vmem>>, vector<128x128xbf16>
    %c0_39 = arith.constant 0 : index
    %c640_40 = arith.constant 640 : index
    %88 = vector.load %arg3[%c0_39, %c640_40] : memref<1x896xf32, #tpu.memory_space<vmem>>, vector<1x128xf32>
    %89 = arith.truncf %86 : vector<256x128xf32> to vector<256x128xbf16>
    %cst_41 = arith.constant dense<0.000000e+00> : vector<256x128xf32>
    %90 = tpu.matmul %89, %87, %cst_41 {dimension_numbers = #tpu.dot_dimension_numbers<[1], [0], [0], [1], [0, 0, 1, 1], [], []>} : vector<256x128xbf16>, vector<128x128xbf16>, vector<256x128xf32> -> vector<256x128xf32>
    %91 = vector.broadcast %88 : vector<1x128xf32> to vector<256x128xf32>
    %92 = arith.addf %90, %91 : vector<256x128xf32>
    %cst_42 = arith.constant 0.000000e+00 : f32
    %93 = vector.broadcast %cst_42 : f32 to vector<256x128xf32>
    %94 = arith.maximumf %92, %93 : vector<256x128xf32>
    %cst_43 = arith.constant dense<0.000000e+00> : vector<128xf32>
    %95 = vector.multi_reduction <add>, %94, %cst_43 [0] : vector<256x128xf32> to vector<128xf32>
    %96 = vector.shape_cast %95 : vector<128xf32> to vector<1x128xf32>
    %cst_44 = arith.constant 3.906250e-03 : f32
    %97 = vector.broadcast %cst_44 : f32 to vector<1x128xf32>
    %98 = arith.mulf %96, %97 : vector<1x128xf32>
    %99 = vector.broadcast %98 : vector<1x128xf32> to vector<256x128xf32>
    %100 = arith.subf %94, %99 : vector<256x128xf32>
    %101 = arith.mulf %100, %100 : vector<256x128xf32>
    %cst_45 = arith.constant dense<0.000000e+00> : vector<128xf32>
    %102 = vector.multi_reduction <add>, %101, %cst_45 [0] : vector<256x128xf32> to vector<128xf32>
    %103 = vector.shape_cast %102 : vector<128xf32> to vector<1x128xf32>
    %cst_46 = arith.constant 3.906250e-03 : f32
    %104 = vector.broadcast %cst_46 : f32 to vector<1x128xf32>
    %105 = arith.mulf %103, %104 : vector<1x128xf32>
    %cst_47 = arith.constant 9.99999974E-6 : f32
    %106 = vector.broadcast %cst_47 : f32 to vector<1x128xf32>
    %107 = arith.addf %105, %106 : vector<1x128xf32>
    %108 = math.rsqrt %107 : vector<1x128xf32>
    %109 = vector.broadcast %108 : vector<1x128xf32> to vector<256x128xf32>
    %110 = arith.mulf %100, %109 : vector<256x128xf32>
    %c0_48 = arith.constant 0 : index
    %c768 = arith.constant 768 : index
    %111 = vector.load %arg2[%c0_48, %c768] : memref<128x896xbf16, #tpu.memory_space<vmem>>, vector<128x128xbf16>
    %c0_49 = arith.constant 0 : index
    %c768_50 = arith.constant 768 : index
    %112 = vector.load %arg3[%c0_49, %c768_50] : memref<1x896xf32, #tpu.memory_space<vmem>>, vector<1x128xf32>
    %113 = arith.truncf %110 : vector<256x128xf32> to vector<256x128xbf16>
    %cst_51 = arith.constant dense<0.000000e+00> : vector<256x128xf32>
    %114 = tpu.matmul %113, %111, %cst_51 {dimension_numbers = #tpu.dot_dimension_numbers<[1], [0], [0], [1], [0, 0, 1, 1], [], []>} : vector<256x128xbf16>, vector<128x128xbf16>, vector<256x128xf32> -> vector<256x128xf32>
    %115 = vector.broadcast %112 : vector<1x128xf32> to vector<256x128xf32>
    %116 = arith.addf %114, %115 : vector<256x128xf32>
    %117 = vector.extract_strided_slice %116 {offsets = [0, 0], sizes = [256, 32], strides = [1, 1]} : vector<256x128xf32> to vector<256x32xf32>
    %cst_52 = arith.constant 5.000000e-01 : f32
    %118 = vector.broadcast %cst_52 : f32 to vector<256x32xf32>
    %119 = arith.mulf %118, %117 : vector<256x32xf32>
    %120 = math.tanh %119 : vector<256x32xf32>
    %cst_53 = arith.constant 1.000000e+00 : f32
    %121 = vector.broadcast %cst_53 : f32 to vector<256x32xf32>
    %122 = arith.addf %120, %121 : vector<256x32xf32>
    %cst_54 = arith.constant 5.000000e-01 : f32
    %123 = vector.broadcast %cst_54 : f32 to vector<256x32xf32>
    %124 = arith.mulf %123, %122 : vector<256x32xf32>
    %c0_55 = arith.constant 0 : index
    %c0_56 = arith.constant 0 : index
    %125 = vector.load %arg4[%c0_55, %c0_56] : memref<256x32xf32, #tpu.memory_space<vmem>>, vector<256x32xf32>
    tpu.vector_store %arg4[%c0_55, %c0_56], %124 {strides = array<i32>} : memref<256x32xf32, #tpu.memory_space<vmem>>, vector<256x32xf32>,
    return
  }
}

</mosaic_0001>

<bundles_post_ra>
// kernel: vae_forward.1
= control target key start
LH: loop header
LB: loop body
LE: loop exit
PB: predicated region body
PF: predicated region fallthrough
CT: control target
= control target key end

     0   :  { %9 = vsyncpa [#allocation3], 0  ;;  %s3442_s15 = smov [#allocation2]   ;;  %s5556_s0 = inlined_call_operand.vmem [shape: f32[256,32], index: 0, kind: input, shape index: {}]   ;;  %s5557_s1 = inlined_call_operand.vmem [shape: f32[256,128], index: 1, kind: input, shape index: {}]   ;;  %s5558_s2 = inlined_call_operand.hbm [shape: bf16[128,896], index: 2, kind: input, shape index: {}]   ;;  %s5559_s3 = inlined_call_operand.vmem [shape: f32[1,896], index: 3, kind: input, shape index: {}]   ;;  %s5560_s4 = inlined_call_operand.vmem [shape: f32[256,32], index: 4, kind: output, shape index: {}]  }
   0x1   :  { %s19_s16 = sshll.u32 %s3442_s15, 4  ;;  %s3418_s19 = scalar_lea.hbm %s5558_s2, 7168  ;;  %s20_s16 = int_to_ptr.vmem [resolvable:$true] %s19_s16 }
   0x2   :  { %p3419_p0 = scmp.ne.s32.totalorder %s5558_s2, %s3418_s19  ;;  %p3422_p1 = scmp.lt.u32.totalorder %s3418_s19, %s5558_s2 }
   0x4   :  { %p3424_p2 = pnand %p3422_p1, %p3419_p0 }
   0x6   :  { %3427 = shalt.err (!%p3424_p2)
}
   0x7   :  { %s3428_s24 = scalar_lea.vmem %s20_s16, 7168  ;;  %p3433_p4 = scmp.lt.s32.totalorder %s20_s16, %s20_s16 }
   0x8   :  { %p3429_p3 = scmp.ne.s32.totalorder %s20_s16, %s3428_s24  ;;  %p3434_p5 = scmp.lt.s32.totalorder %s3428_s24, %s3428_s24 }
   0xa   :  { %p3435_p6 = por %p3434_p5, %p3433_p4 }
   0xc   :  { %p3436_p7 = pnand %p3435_p6, %p3429_p3 }
   0xe   :  { %3439 = shalt.err (!%p3436_p7)
}
   0xf   :  { %s3443_s25 = smov 448   ;;  %s3444_s26 = smov 28  }
  0x10   :  { %25 = dma.hbm_to_vmem [thread:$0]  %s5558_s2, 7168, %s20_s16, [#allocation3], %s3443_s25, %s3443_s25, %s3444_s26  }
  0x11   :  { %3440 = dma.done.wait [#allocation3], 7168  }
  0x12   :  { %3441 = vsyncadd [#allocation3], 4294960128  ;;  %v3224_v0 = vld [vmem:[#allocation2] ss:$28 sps:$4 sm:$0xff]   ;;  %v3225_v1 = vld [vmem:[#allocation2 + $0x38] ss:$28 sps:$4 sm:$0xff]  }
  0x13   :  { %2988 = vmatprep.subr.bf16.mxu0 %v3224_v0  ;;  %v32_v2 = vld [vmem:[%s5556_s0] sm:$0xff]  ;;  %v33_v3 = vld [vmem:[%s5556_s0 + $0x8] sm:$0xff]  ;;  %vm103_vm0 = vcmask 261120   ;;  %3216 = vmatprep.subr.bf16.mxu1 %v3224_v0  ;;  %v34_v5 = vld [vmem:[%s5556_s0 + $0x10] sm:$0xff] }
  0x14   :  { %2989 = vmatpush3.bf16.msra.mxu0 %v3224_v0  ;;  %v69_v4 = vpack.c.bf16 %v33_v3, %v32_v2  ;;  %v35_v6 = vld [vmem:[%s5556_s0 + $0x18] sm:$0xff]  ;;  %3218 = vmatpush3.bf16.msra.mxu1 %v3224_v0  ;;  %v36_v7 = vld [vmem:[%s5556_s0 + $0x20] sm:$0xff]  ;;  %v37_v8 = vld [vmem:[%s5556_s0 + $0x28] sm:$0xff] }
  0x15   :  { %2990 = vmatprep.subr.bf16.mxu0 %v3225_v1  ;;  %3217 = vmatprep.subr.bf16.mxu1 %v3225_v1  ;;  %v70_v9 = vpack.c.bf16 %v35_v6, %v34_v5  ;;  %v71_v10 = vpack.c.bf16 %v37_v8, %v36_v7  ;;  %v48_v11 = vld [vmem:[%s5556_s0 + $0x80] sm:$0xff]  ;;  %v49_v12 = vld [vmem:[%s5556_s0 + $0x88] sm:$0xff]  ;;  %v50_v14 = vld [vmem:[%s5556_s0 + $0x90] sm:$0xff] }
  0x16   :  { %2992 = vmatprep.mubr.msk.bf16.mxu0 %vm103_vm0, %v69_v4  ;;  %v77_v13 = vpack.c.bf16 %v49_v12, %v48_v11  ;;  %v51_v15 = vld [vmem:[%s5556_s0 + $0x98] sm:$0xff]  ;;  %v52_v16 = vld [vmem:[%s5556_s0 + $0xa0] sm:$0xff]  ;;  %v53_v18 = vld [vmem:[%s5556_s0 + $0xa8] sm:$0xff] }
  0x17   :  { %v78_v17 = vpack.c.bf16 %v51_v15, %v50_v14  ;;  %v38_v19 = vld [vmem:[%s5556_s0 + $0x30] sm:$0xff]  ;;  %v39_v20 = vld [vmem:[%s5556_s0 + $0x38] sm:$0xff]  ;;  %v40_v21 = vld [vmem:[%s5556_s0 + $0x40] sm:$0xff]  ;;  %v79_v22 = vpack.c.bf16 %v53_v18, %v52_v16 }
  0x18   :  { %2991 = vmatpush3.bf16.msra.mxu0 %v3225_v1  ;;  %3219 = vmatpush3.bf16.msra.mxu1 %v3225_v1  ;;  %v41_v23 = vld [vmem:[%s5556_s0 + $0x48] sm:$0xff]  ;;  %v54_v24 = vld [vmem:[%s5556_s0 + $0xb0] sm:$0xff]  ;;  %v55_v25 = vld [vmem:[%s5556_s0 + $0xb8] sm:$0xff]  ;;  %v72_v28 = vpack.c.bf16 %v39_v20, %v38_v19 }
  0x19   :  { %3008 = vmatprep.mubr.msk.bf16.mxu1 %vm103_vm0, %v77_v13  ;;  %v56_v26 = vld [vmem:[%s5556_s0 + $0xc0] sm:$0xff]  ;;  %v57_v27 = vld [vmem:[%s5556_s0 + $0xc8] sm:$0xff]  ;;  %v73_v29 = vpack.c.bf16 %v41_v23, %v40_v21  ;;  %v80_v30 = vpack.c.bf16 %v55_v25, %v54_v24  ;;  %v42_v32 = vld [vmem:[%s5556_s0 + $0x50] sm:$0xff] }
  0x1a   :  { %v81_v31 = vpack.c.bf16 %v57_v27, %v56_v26  ;;  %v43_v33 = vld [vmem:[%s5556_s0 + $0x58] sm:$0xff]  ;;  %v44_v34 = vld [vmem:[%s5556_s0 + $0x60] sm:$0xff]  ;;  %v45_v35 = vld [vmem:[%s5556_s0 + $0x68] sm:$0xff] }
  0x1b   :  { %2993 = vmatmul.mubr.msk.bf16.vlgmr.msra.gmra.mrb[0].mxu0 %vm103_vm0, %v70_v9  ;;  %3009 = vmatmul.mubr.msk.bf16.vlgmr.msra.gmra.mrb[0].mxu1 %vm103_vm0, %v78_v17  ;;  %v58_v36 = vld [vmem:[%s5556_s0 + $0xd0] sm:$0xff]  ;;  %v59_v37 = vld [vmem:[%s5556_s0 + $0xd8] sm:$0xff]  ;;  %v60_v38 = vld [vmem:[%s5556_s0 + $0xe0] sm:$0xff]  ;;  %v74_v40 = vpack.c.bf16 %v43_v33, %v42_v32  ;;  %v75_v41 = vpack.c.bf16 %v45_v35, %v44_v34 }
  0x1c   :  { %2996 = vmatprep.mubr.msk.bf16.mxu0 %vm103_vm0, %v71_v10  ;;  %3012 = vmatprep.mubr.msk.bf16.mxu1 %vm103_vm0, %v79_v22  ;;  %v61_v39 = vld [vmem:[%s5556_s0 + $0xe8] sm:$0xff]  ;;  %v82_v42 = vpack.c.bf16 %v59_v37, %v58_v36  ;;  %v46_v44 = vld [vmem:[%s5556_s0 + $0x70] sm:$0xff]  ;;  %v47_v45 = vld [vmem:[%s5556_s0 + $0x78] sm:$0xff] }
  0x1d   :  { %v83_v43 = vpack.c.bf16 %v61_v39, %v60_v38  ;;  %v62_v46 = vld [vmem:[%s5556_s0 + $0xf0] sm:$0xff]  ;;  %v63_v47 = vld [vmem:[%s5556_s0 + $0xf8] sm:$0xff]  ;;  %v76_v48 = vpack.c.bf16 %v47_v45, %v46_v44  ;;  %v3598_v50 = vld [vmem:[%s5559_s3] ss:$0 sm:$0xff] }
  0x1e   :  { %v84_v49 = vpack.c.bf16 %v63_v47, %v62_v46 }
  0x23   :  { %2997 = vmatmul.mubr.msk.bf16.gmra.mrb[4].mxu0 %vm103_vm0, %v72_v28  ;;  %3013 = vmatmul.mubr.msk.bf16.gmra.mrb[4].mxu1 %vm103_vm0, %v80_v30 }
  0x24   :  { %3000 = vmatprep.mubr.msk.bf16.mxu0 %vm103_vm0, %v73_v29  ;;  %3016 = vmatprep.mubr.msk.bf16.mxu1 %vm103_vm0, %v81_v31 }
  0x2b   :  { %3001 = vmatmul.mubr.msk.bf16.gmra.mrb[8].mxu0 %vm103_vm0, %v74_v40  ;;  %3017 = vmatmul.mubr.msk.bf16.gmra.mrb[8].mxu1 %vm103_vm0, %v82_v42 }
  0x2c   :  { %3004 = vmatprep.mubr.msk.bf16.mxu0 %vm103_vm0, %v75_v41  ;;  %3020 = vmatprep.mubr.msk.bf16.mxu1 %vm103_vm0, %v83_v43 }
  0x33   :  { %3005 = vmatmul.mubr.msk.bf16.gmra.mrb[12].mxu0 %vm103_vm0, %v76_v48  ;;  %3021 = vmatmul.mubr.msk.bf16.gmra.mrb[12].mxu1 %vm103_vm0, %v84_v49 }
  0xee   :  { %v2994_v51 = vpop.f32.mrb[0].mxu0  ;;  %v3600_v53 = vpop.f32.mrb[0].mxu1 }
  0xef   :  { %v186_v52 = vpop.f32.mrb[1].mxu0  ;;  %v3605_v56 = vpop.f32.mrb[1].mxu1  ;;  %v3610_v59 = vadd.f32 %v2994_v51, %v3598_v50 }
  0xf0   :  { %v3603_v54 = vadd.f32 %v3598_v50, %v186_v52  ;;  %v2995_v55 = vpop.f32.mrb[2].mxu0  ;;  %v3607_v58 = vpop.f32.mrb[2].mxu1 }
  0xf1   :  { %v189_v57 = vpop.f32.mrb[3].mxu0  ;;  %v3615_v61 = vpop.f32.mrb[3].mxu1  ;;  %v3619_v63 = vadd.f32 %v2995_v55, %v3598_v50  ;;  %v5566_v1 = vmax.f32 %v3610_v59, 0.0 }
  0xf2   :  { %v3613_v60 = vadd.f32 %v3598_v50, %v189_v57  ;;  %v5568_v62 = vmax.f32 %v3603_v54, 0.0 }
  0xf3   :  { %v5565_v6 = vmax.f32 %v3619_v63, 0.0 }
  0xf4   :  { %v5567_v0 = vmax.f32 %v3613_v60, 0.0 }
  0xf6   :  { %v345_v2 = vadd.f32 %v5567_v0, %v5568_v62  ;;  %v2998_v3 = vpop.f32.mrb[4].mxu0  ;;  %v3627_v5 = vpop.f32.mrb[4].mxu1  ;;  %v3231_v62 = vld [vmem:[#allocation2 + $0x11c] ss:$28 sps:$4 sm:$0xff]  }
  0xf7   :  { %v202_v4 = vpop.f32.mrb[5].mxu0  ;;  %v3635_v10 = vpop.f32.mrb[5].mxu1  ;;  %v3640_v13 = vadd.f32 %v2998_v3, %v3598_v50 }
  0xf8   :  { %v346_v7 = vadd.f32 %v345_v2, %v5566_v1  ;;  %v3633_v8 = vadd.f32 %v3598_v50, %v202_v4  ;;  %v2999_v9 = vpop.f32.mrb[6].mxu0  ;;  %v3637_v12 = vpop.f32.mrb[6].mxu1 }
  0xf9   :  { %v205_v11 = vpop.f32.mrb[7].mxu0  ;;  %v3648_v17 = vpop.f32.mrb[7].mxu1  ;;  %v3653_v19 = vadd.f32 %v2999_v9, %v3598_v50  ;;  %v5562_v21 = vmax.f32 %v3640_v13, 0.0 }
  0xfa   :  { %v5564_v14 = vmax.f32 %v3633_v8, 0.0  ;;  %v347_v15 = vadd.f32 %v346_v7, %v5565_v6  ;;  %v3646_v16 = vadd.f32 %v3598_v50, %v205_v11 }
  0xfb   :  { %v5561_v26 = vmax.f32 %v3653_v19, 0.0 }
  0xfc   :  { %v348_v18 = vadd.f32 %v347_v15, %v5564_v14  ;;  %v5563_v20 = vmax.f32 %v3646_v16, 0.0 }
  0xfe   :  { %v349_v22 = vadd.f32 %v348_v18, %v5563_v20  ;;  %v3002_v23 = vpop.f32.mrb[8].mxu0  ;;  %v3659_v25 = vpop.f32.mrb[8].mxu1  ;;  %v3714_v18 = vadd.f32 %v3598_v50, %v3605_v56  ;;  %v3729_v56 = vadd.f32 %v3600_v53, %v3598_v50 }
  0xff   :  { %v218_v24 = vpop.f32.mrb[9].mxu0  ;;  %v282_v30 = vpop.f32.mrb[9].mxu1  ;;  %v3670_v33 = vadd.f32 %v3002_v23, %v3598_v50 }
 0x100   :  { %v350_v27 = vadd.f32 %v349_v22, %v5562_v21  ;;  %v3665_v28 = vadd.f32 %v3598_v50, %v218_v24  ;;  %v3003_v29 = vpop.f32.mrb[10].mxu0  ;;  %v3667_v32 = vpop.f32.mrb[10].mxu1  ;;  %v331_v53 = vmax.f32 %v3729_v56, 0.0 }
 0x101   :  { %v221_v31 = vpop.f32.mrb[11].mxu0  ;;  %v285_v37 = vpop.f32.mrb[11].mxu1  ;;  %v3681_v39 = vadd.f32 %v3003_v29, %v3598_v50  ;;  %v323_v41 = vmax.f32 %v3670_v33, 0.0  ;;  %v329_v29 = vmax.f32 %v3714_v18, 0.0 }
 0x102   :  { %v321_v34 = vmax.f32 %v3665_v28, 0.0  ;;  %v351_v35 = vadd.f32 %v350_v27, %v5561_v26  ;;  %v3676_v36 = vadd.f32 %v3598_v50, %v221_v31  ;;  %v3725_v31 = vadd.f32 %v3598_v50, %v3615_v61 }
 0x103   :  { %v324_v46 = vmax.f32 %v3681_v39, 0.0  ;;  %v3742_v61 = vadd.f32 %v3598_v50, %v3635_v10  ;;  %v3227_v10 = vld [vmem:[#allocation2 + $0x3c] ss:$28 sps:$4 sm:$0xff]   ;;  %v3779_v26 = vadd.f32 %v3598_v50, %v285_v37 }
 0x104   :  { %v352_v38 = vadd.f32 %v351_v35, %v321_v34  ;;  %v322_v40 = vmax.f32 %v3676_v36, 0.0 }
 0x105   :  { %v338_v20 = vmax.f32 %v3779_v26, 0.0 }
 0x106   :  { %v353_v42 = vadd.f32 %v352_v38, %v322_v40  ;;  %v3006_v43 = vpop.f32.mrb[12].mxu0  ;;  %v3687_v45 = vpop.f32.mrb[12].mxu1 }
 0x107   :  { %v234_v44 = vpop.f32.mrb[13].mxu0  ;;  %v298_v51 = vpop.f32.mrb[13].mxu1  ;;  %v3698_v57 = vadd.f32 %v3006_v43, %v3598_v50  ;;  %v330_v43 = vmax.f32 %v3725_v31, 0.0 }
 0x108   :  { %v354_v47 = vadd.f32 %v353_v42, %v323_v41  ;;  %v3693_v48 = vadd.f32 %v3598_v50, %v234_v44  ;;  %v3007_v49 = vpop.f32.mrb[14].mxu0  ;;  %v3695_v55 = vpop.f32.mrb[14].mxu1  ;;  %v3737_v42 = vadd.f32 %v3607_v58, %v3598_v50  ;;  %v3226_v44 = vld [vmem:[#allocation2 + $0x4] ss:$28 sps:$4 sm:$0xff]   ;;  %v333_v58 = vmax.f32 %v3742_v61, 0.0 }
 0x109   :  { %v237_v52 = vpop.f32.mrb[15].mxu0  ;;  %v301_v7 = vpop.f32.mrb[15].mxu1  ;;  %v3709_v11 = vadd.f32 %v3007_v49, %v3598_v50  ;;  %v327_v22 = vmax.f32 %v3698_v57, 0.0  ;;  %3024 = vmatprep.subr.bf16.mxu1 %v3226_v44  ;;  %v299_v37 = vadd.f32 %v3598_v50, %v298_v51  ;;  %v310_v51 = vadd.f32 %v3695_v55, %v3598_v50 }
 0x10a   :  { %v325_v2 = vmax.f32 %v3693_v48, 0.0  ;;  %v355_v3 = vadd.f32 %v354_v47, %v324_v46  ;;  %v3704_v4 = vadd.f32 %v3598_v50, %v237_v52  ;;  %v332_v49 = vmax.f32 %v3737_v42, 0.0  ;;  %3025 = vmatpush3.bf16.msra.mxu1 %v3226_v44  ;;  %v3228_v44 = vld [vmem:[#allocation2 + $0x74] ss:$28 sps:$4 sm:$0xff]  }
 0x10b   :  { %v328_v24 = vmax.f32 %v3709_v11, 0.0  ;;  %3026 = vmatprep.subr.bf16.mxu1 %v3227_v10  ;;  %v341_v0 = vmax.f32 %v299_v37, 0.0  ;;  %v5608_v61 = vmax.f32 %v3603_v54, 0.0  ;;  %v5612_v54 = vmax.f32 %v3633_v8, 0.0 }
 0x10c   :  { %v356_v9 = vadd.f32 %v355_v3, %v325_v2  ;;  %v326_v15 = vmax.f32 %v3704_v4, 0.0  ;;  %v3753_v3 = vadd.f32 %v3598_v50, %v3648_v17 }
 0x10e   :  { %v357_v23 = vadd.f32 %v356_v9, %v326_v15  ;;  %v3757_v9 = vadd.f32 %v3627_v5, %v3598_v50  ;;  %v334_v17 = vmax.f32 %v3753_v3, 0.0  ;;  %3027 = vmatpush3.bf16.msra.mxu1 %v3227_v10  ;;  %v291_v10 = vadd.f32 %v3659_v25, %v3598_v50 }
 0x10f   :  { %3028 = vmatprep.subr.bf16.mxu1 %v3228_v44 }
 0x110   :  { %v358_v27 = vadd.f32 %v357_v23, %v327_v22  ;;  %v5571_v5 = vmax.f32 %v3757_v9, 0.0  ;;  %v339_v14 = vmax.f32 %v291_v10, 0.0  ;;  %v3232_v10 = vld [vmem:[#allocation2 + $0x154] ss:$28 sps:$4 sm:$0xff]   ;;  %v5605_v57 = vmax.f32 %v3757_v9, 0.0 }
 0x111   :  { %v5611_v9 = vmax.f32 %v3619_v63, 0.0  ;;  %v5614_v63 = vmax.f32 %v3640_v13, 0.0 }
 0x112   :  { %v359_v35 = vadd.f32 %v358_v27, %v328_v24  ;;  %3029 = vmatpush3.bf16.msra.mxu1 %v3228_v44  ;;  %v3230_v44 = vld [vmem:[#allocation2 + $0xe4] ss:$28 sps:$4 sm:$0xff]  }
 0x114   :  { %v360_v38 = vadd.f32 %v359_v35, %v329_v29  ;;  %v3765_v35 = vadd.f32 %v3637_v12, %v3598_v50 }
 0x116   :  { %v361_v47 = vadd.f32 %v360_v38, %v330_v43  ;;  %v3769_v38 = vadd.f32 %v3598_v50, %v282_v30  ;;  %v3229_v30 = vld [vmem:[#allocation2 + $0xac] ss:$28 sps:$4 sm:$0xff]   ;;  %v5606_v4 = vmax.f32 %v3765_v35, 0.0 }
 0x117   :  { %3030 = vmatprep.subr.bf16.mxu1 %v3229_v30 }
 0x118   :  { %v362_v52 = vadd.f32 %v361_v47, %v331_v53  ;;  %v5569_v12 = vmax.f32 %v3769_v38, 0.0  ;;  %3031 = vmatpush3.bf16.msra.mxu1 %v3229_v30 }
 0x119   :  { %3032 = vmatprep.subr.bf16.mxu1 %v3230_v44 }
 0x11a   :  { %v363_v23 = vadd.f32 %v362_v52, %v332_v49  ;;  %v5570_v52 = vmax.f32 %v3765_v35, 0.0 }
 0x11c   :  { %v364_v27 = vadd.f32 %v363_v23, %v333_v58  ;;  %3033 = vmatpush3.bf16.msra.mxu1 %v3230_v44 }
 0x11d   :  { %3034 = vmatprep.subr.bf16.mxu1 %v3231_v62 }
 0x11e   :  { %v365_v47 = vadd.f32 %v364_v27, %v334_v17 }
 0x120   :  { %v366_v23 = vadd.f32 %v365_v47, %v5571_v5  ;;  %v294_v47 = vadd.f32 %v3667_v32, %v3598_v50  ;;  %3035 = vmatpush3.bf16.msra.mxu1 %v3231_v62 }
 0x121   :  { %3036 = vmatprep.subr.bf16.mxu1 %v3232_v10 }
 0x122   :  { %v367_v21 = vadd.f32 %v366_v23, %v5570_v52  ;;  %v340_v25 = vmax.f32 %v294_v47, 0.0  ;;  %v302_v23 = vadd.f32 %v3598_v50, %v301_v7  ;;  %v3233_v7 = vld [vmem:[#allocation2 + $0x18c] ss:$28 sps:$4 sm:$0xff]  }
 0x124   :  { %v368_v27 = vadd.f32 %v367_v21, %v5569_v12  ;;  %v307_v21 = vadd.f32 %v3687_v45, %v3598_v50  ;;  %v342_v30 = vmax.f32 %v302_v23, 0.0  ;;  %3037 = vmatpush3.bf16.msra.mxu1 %v3232_v10 }
 0x125   :  { %3038 = vmatprep.subr.bf16.mxu1 %v3233_v7 }
 0x126   :  { %v369_v6 = vadd.f32 %v368_v27, %v338_v20  ;;  %v343_v27 = vmax.f32 %v307_v21, 0.0 }
 0x128   :  { %v370_v1 = vadd.f32 %v369_v6, %v339_v14  ;;  %v344_v6 = vmax.f32 %v310_v51, 0.0  ;;  %3039 = vmatpush3.bf16.msra.mxu1 %v3233_v7 }
 0x12a   :  { %v371_v32 = vadd.f32 %v370_v1, %v340_v25 }
 0x12c   :  { %v372_v26 = vadd.f32 %v371_v32, %v341_v0 }
 0x12e   :  { %v373_v47 = vadd.f32 %v372_v26, %v342_v30 }
 0x130   :  { %v374_v37 = vadd.f32 %v373_v47, %v343_v27 }
 0x132   :  { %v375_v44 = vadd.f32 %v374_v37, %v344_v6 }
 0x134   :  { %v376_v12 = vrot.slane %v375_v44, 4 }
 0x136   :  { %v377_v1 = vadd.f32 %v376_v12, %v375_v44 }
 0x138   :  { %v378_v45 = vrot.slane %v377_v1, 2 }
 0x13a   :  { %v379_v32 = vadd.f32 %v378_v45, %v377_v1 }
 0x13c   :  { %v380_v52 = vrot.slane %v379_v32, 1 }
 0x13e   :  { %v381_v5 = vadd.f32 %v380_v52, %v379_v32 }
 0x140   :  { %v382_v50 = vmul.f32 0.00390625, %v381_v5 }
 0x142   :  { %v3798_v62 = vsub.f32 %v321_v34, %v382_v50  ;;  %v3802_v55 = vsub.f32 %v322_v40, %v382_v50  ;;  %v3806_v23 = vsub.f32 %v323_v41, %v382_v50  ;;  %v3810_v12 = vsub.f32 %v324_v46, %v382_v50 }
 0x143   :  { %v3814_v52 = vsub.f32 %v325_v2, %v382_v50  ;;  %v3818_v28 = vsub.f32 %v326_v15, %v382_v50  ;;  %v3822_v34 = vsub.f32 %v327_v22, %v382_v50  ;;  %v3826_v33 = vsub.f32 %v328_v24, %v382_v50 }
 0x144   :  { %v3830_v36 = vsub.f32 %v329_v29, %v382_v50  ;;  %v3834_v39 = vsub.f32 %v330_v43, %v382_v50  ;;  %v3838_v40 = vsub.f32 %v331_v53, %v382_v50  ;;  %v3842_v41 = vsub.f32 %v332_v49, %v382_v50 }
 0x145   :  { %v3846_v46 = vsub.f32 %v333_v58, %v382_v50  ;;  %v3850_v48 = vsub.f32 %v334_v17, %v382_v50  ;;  %v3854_v2 = vsub.f32 %v5605_v57, %v382_v50  ;;  %v3858_v11 = vsub.f32 %v5606_v4, %v382_v50 }
 0x146   :  { %v5607_v15 = vmax.f32 %v3769_v38, 0.0  ;;  %v3864_v22 = vsub.f32 %v338_v20, %v382_v50  ;;  %v3866_v24 = vsub.f32 %v339_v14, %v382_v50  ;;  %v3868_v29 = vsub.f32 %v340_v25, %v382_v50 }
 0x147   :  { %v3870_v31 = vsub.f32 %v341_v0, %v382_v50  ;;  %v3872_v56 = vsub.f32 %v342_v30, %v382_v50  ;;  %v3874_v42 = vsub.f32 %v343_v27, %v382_v50  ;;  %v3876_v43 = vsub.f32 %v344_v6, %v382_v50 }
 0x148   :  { %v3862_v18 = vsub.f32 %v5607_v15, %v382_v50  ;;  %v3880_v53 = vsub.f32 %v5608_v61, %v382_v50  ;;  %v5609_v49 = vmax.f32 %v3613_v60, 0.0  ;;  %v5610_v14 = vmax.f32 %v3610_v59, 0.0 }
 0x149   :  { %v3896_v35 = vsub.f32 %v5611_v9, %v382_v50  ;;  %v3900_v17 = vsub.f32 %v5612_v54, %v382_v50  ;;  %v5613_v38 = vmax.f32 %v3646_v16, 0.0  ;;  %v3912_v26 = vsub.f32 %v5614_v63, %v382_v50 }
 0x14a   :  { %v3884_v20 = vsub.f32 %v5609_v49, %v382_v50  ;;  %v3888_v58 = vsub.f32 %v5610_v14, %v382_v50  ;;  %v415_v0 = vmul.f32 %v3880_v53, %v3880_v53  ;;  %v5615_v30 = vmax.f32 %v3653_v19, 0.0 }
 0x14b   :  { %v3906_v5 = vsub.f32 %v5613_v38, %v382_v50  ;;  %v418_v25 = vmul.f32 %v3896_v35, %v3896_v35  ;;  %v419_v8 = vmul.f32 %v3900_v17, %v3900_v17  ;;  %v421_v47 = vmul.f32 %v3912_v26, %v3912_v26 }
 0x14c   :  { %v416_v3 = vmul.f32 %v3884_v20, %v3884_v20  ;;  %v417_v60 = vmul.f32 %v3888_v58, %v3888_v58  ;;  %v3918_v10 = vsub.f32 %v5615_v30, %v382_v50  ;;  %v423_v7 = vmul.f32 %v3798_v62, %v3798_v62 }
 0x14d   :  { %v420_v16 = vmul.f32 %v3906_v5, %v3906_v5  ;;  %v424_v19 = vmul.f32 %v3802_v55, %v3802_v55  ;;  %v425_v45 = vmul.f32 %v3806_v23, %v3806_v23  ;;  %v426_v50 = vmul.f32 %v3810_v12, %v3810_v12 }
 0x14e   :  { %v447_v59 = vadd.f32 %v416_v3, %v415_v0  ;;  %v422_v13 = vmul.f32 %v3918_v10, %v3918_v10  ;;  %v427_v4 = vmul.f32 %v3814_v52, %v3814_v52  ;;  %v428_v61 = vmul.f32 %v3818_v28, %v3818_v28 }
 0x14f   :  { %v429_v14 = vmul.f32 %v3822_v34, %v3822_v34  ;;  %v430_v3 = vmul.f32 %v3826_v33, %v3826_v33  ;;  %v431_v54 = vmul.f32 %v3830_v36, %v3830_v36  ;;  %v434_v63 = vmul.f32 %v3842_v41, %v3842_v41 }
 0x150   :  { %v448_v21 = vadd.f32 %v447_v59, %v417_v60  ;;  %v432_v59 = vmul.f32 %v3834_v39, %v3834_v39 }
 0x152   :  { %v449_v51 = vadd.f32 %v448_v21, %v418_v25  ;;  %v433_v25 = vmul.f32 %v3838_v40, %v3838_v40 }
 0x154   :  { %v450_v27 = vadd.f32 %v449_v51, %v419_v8  ;;  %v435_v51 = vmul.f32 %v3846_v46, %v3846_v46 }
 0x156   :  { %v451_v6 = vadd.f32 %v450_v27, %v420_v16  ;;  %v436_v16 = vmul.f32 %v3850_v48, %v3850_v48 }
 0x158   :  { %v452_v37 = vadd.f32 %v451_v6, %v421_v47  ;;  %v437_v47 = vmul.f32 %v3854_v2, %v3854_v2 }
 0x15a   :  { %v453_v44 = vadd.f32 %v452_v37, %v422_v13  ;;  %v438_v13 = vmul.f32 %v3858_v11, %v3858_v11 }
 0x15c   :  { %v454_v1 = vadd.f32 %v453_v44, %v423_v7  ;;  %v439_v7 = vmul.f32 %v3862_v18, %v3862_v18 }
 0x15e   :  { %v455_v32 = vadd.f32 %v454_v1, %v424_v19  ;;  %v440_v19 = vmul.f32 %v3864_v22, %v3864_v22 }
 0x160   :  { %v456_v57 = vadd.f32 %v455_v32, %v425_v45  ;;  %v441_v45 = vmul.f32 %v3866_v24, %v3866_v24 }
 0x162   :  { %v457_v15 = vadd.f32 %v456_v57, %v426_v50  ;;  %v442_v50 = vmul.f32 %v3868_v29, %v3868_v29 }
 0x164   :  { %v458_v49 = vadd.f32 %v457_v15, %v427_v4  ;;  %v443_v4 = vmul.f32 %v3870_v31, %v3870_v31 }
 0x166   :  { %v459_v0 = vadd.f32 %v458_v49, %v428_v61  ;;  %v444_v61 = vmul.f32 %v3872_v56, %v3872_v56 }
 0x168   :  { %v460_v9 = vadd.f32 %v459_v0, %v429_v14  ;;  %v445_v14 = vmul.f32 %v3874_v42, %v3874_v42 }
 0x16a   :  { %v461_v60 = vadd.f32 %v460_v9, %v430_v3  ;;  %v446_v3 = vmul.f32 %v3876_v43, %v3876_v43 }
 0x16c   :  { %v462_v38 = vadd.f32 %v461_v60, %v431_v54 }
 0x16e   :  { %v463_v21 = vadd.f32 %v462_v38, %v432_v59 }
 0x170   :  { %v464_v8 = vadd.f32 %v463_v21, %v433_v25 }
 0x172   :  { %v465_v30 = vadd.f32 %v464_v8, %v434_v63 }
 0x174   :  { %v466_v27 = vadd.f32 %v465_v30, %v435_v51 }
 0x176   :  { %v467_v6 = vadd.f32 %v466_v27, %v436_v16 }
 0x178   :  { %v468_v37 = vadd.f32 %v467_v6, %v437_v47 }
 0x17a   :  { %v469_v44 = vadd.f32 %v468_v37, %v438_v13 }
 0x17c   :  { %v470_v1 = vadd.f32 %v469_v44, %v439_v7 }
 0x17e   :  { %v471_v32 = vadd.f32 %v470_v1, %v440_v19 }
 0x180   :  { %v472_v57 = vadd.f32 %v471_v32, %v441_v45 }
 0x182   :  { %v473_v15 = vadd.f32 %v472_v57, %v442_v50 }
 0x184   :  { %v474_v49 = vadd.f32 %v473_v15, %v443_v4 }
 0x186   :  { %v475_v0 = vadd.f32 %v474_v49, %v444_v61 }
 0x188   :  { %v476_v9 = vadd.f32 %v475_v0, %v445_v14 }
 0x18a   :  { %v477_v54 = vadd.f32 %v476_v9, %v446_v3 }
 0x18c   :  { %v478_v60 = vrot.slane %v477_v54, 4 }
 0x18e   :  { %v479_v59 = vadd.f32 %v478_v60, %v477_v54 }
 0x190   :  { %v480_v38 = vrot.slane %v479_v59, 2 }
 0x192   :  { %v481_v25 = vadd.f32 %v480_v38, %v479_v59 }
 0x194   :  { %v482_v21 = vrot.slane %v481_v25, 1 }
 0x196   :  { %v483_v63 = vadd.f32 %v482_v21, %v481_v25 }
 0x198   :  { %v484_v8 = vmul.f32 0.00390625, %v483_v63 }
 0x19a   :  { %v485_v51 = vadd.f32 1e-05, %v484_v8 }
 0x19c   :  { %3282 = vrsqrt.f32 %v485_v51 }
 0x1a6   :  { %v3283_v30 = vpop.eup %3282 }
 0x1a7   :  { %v487_v16 = vmul.f32 %v3283_v30, %v3880_v53  ;;  %v488_v27 = vmul.f32 %v3283_v30, %v3884_v20  ;;  %v489_v47 = vmul.f32 %v3283_v30, %v3888_v58  ;;  %v490_v6 = vmul.f32 %v3283_v30, %v3896_v35 }
 0x1a8   :  { %v491_v13 = vmul.f32 %v3283_v30, %v3900_v17  ;;  %v492_v37 = vmul.f32 %v3283_v30, %v3906_v5  ;;  %v493_v1 = vmul.f32 %v3283_v30, %v3912_v26  ;;  %v494_v53 = vmul.f32 %v3283_v30, %v3918_v10 }
 0x1a9   :  { %v537_v7 = vpack.c.bf16 %v490_v6, %v489_v47  ;;  %v536_v44 = vpack.c.bf16 %v488_v27, %v487_v16  ;;  %v495_v20 = vmul.f32 %v3283_v30, %v3798_v62  ;;  %v496_v58 = vmul.f32 %v3283_v30, %v3802_v55 }
 0x1aa   :  { %v538_v19 = vpack.c.bf16 %v492_v37, %v491_v13  ;;  %v539_v45 = vpack.c.bf16 %v494_v53, %v493_v1  ;;  %v497_v17 = vmul.f32 %v3283_v30, %v3806_v23  ;;  %v498_v5 = vmul.f32 %v3283_v30, %v3810_v12 }
 0x1ab   :  { %3040 = vmatprep.mubr.bf16.mxu1 %v536_v44  ;;  %v540_v35 = vpack.c.bf16 %v496_v58, %v495_v20  ;;  %v499_v32 = vmul.f32 %v3283_v30, %v3814_v52  ;;  %v500_v50 = vmul.f32 %v3283_v30, %v3818_v28  ;;  %v501_v62 = vmul.f32 %v3283_v30, %v3822_v34 }
 0x1ac   :  { %3041 = vmatmul.mubr.bf16.vlgmr.msra.gmra.mrb[16].mxu1 %v537_v7  ;;  %v541_v57 = vpack.c.bf16 %v498_v5, %v497_v17  ;;  %v502_v55 = vmul.f32 %v3283_v30, %v3826_v33  ;;  %v503_v10 = vmul.f32 %v3283_v30, %v3830_v36  ;;  %v504_v4 = vmul.f32 %v3283_v30, %v3834_v39 }
 0x1ad   :  { %3044 = vmatprep.mubr.bf16.mxu1 %v538_v19  ;;  %v542_v26 = vpack.c.bf16 %v500_v50, %v499_v32  ;;  %v505_v12 = vmul.f32 %v3283_v30, %v3838_v40  ;;  %v506_v52 = vmul.f32 %v3283_v30, %v3842_v41  ;;  %v507_v28 = vmul.f32 %v3283_v30, %v3846_v46 }
 0x1ae   :  { %v543_v15 = vpack.c.bf16 %v502_v55, %v501_v62  ;;  %v544_v23 = vpack.c.bf16 %v504_v4, %v503_v10  ;;  %v508_v61 = vmul.f32 %v3283_v30, %v3850_v48  ;;  %v509_v33 = vmul.f32 %v3283_v30, %v3854_v2 }
 0x1af   :  { %v545_v49 = vpack.c.bf16 %v506_v52, %v505_v12  ;;  %v510_v36 = vmul.f32 %v3283_v30, %v3858_v11  ;;  %v511_v39 = vmul.f32 %v3283_v30, %v3862_v18  ;;  %v512_v14 = vmul.f32 %v3283_v30, %v3864_v22 }
 0x1b0   :  { %v546_v34 = vpack.c.bf16 %v508_v61, %v507_v28  ;;  %v513_v41 = vmul.f32 %v3283_v30, %v3866_v24  ;;  %v514_v46 = vmul.f32 %v3283_v30, %v3868_v29  ;;  %v516_v48 = vmul.f32 %v3283_v30, %v3872_v56  ;;  %v4009_v24 = vld [vmem:[%s5559_s3 + $0x1] ss:$0 sm:$0xff] }
 0x1b1   :  { %v547_v0 = vpack.c.bf16 %v510_v36, %v509_v33  ;;  %v548_v40 = vpack.c.bf16 %v512_v14, %v511_v39  ;;  %v515_v3 = vmul.f32 %v3283_v30, %v3870_v31  ;;  %v517_v11 = vmul.f32 %v3283_v30, %v3874_v42 }
 0x1b2   :  { %v549_v9 = vpack.c.bf16 %v514_v46, %v513_v41  ;;  %v518_v18 = vmul.f32 %v3283_v30, %v3876_v43 }
 0x1b3   :  { %v550_v2 = vpack.c.bf16 %v516_v48, %v515_v3 }
 0x1b4   :  { %3045 = vmatmul.mubr.bf16.gmra.mrb[20].mxu1 %v539_v45  ;;  %v551_v22 = vpack.c.bf16 %v518_v18, %v517_v11 }
 0x1b5   :  { %3048 = vmatprep.mubr.bf16.mxu1 %v540_v35 }
 0x1bc   :  { %3049 = vmatmul.mubr.bf16.gmra.mrb[24].mxu1 %v541_v57 }
 0x1bd   :  { %3052 = vmatprep.mubr.bf16.mxu1 %v542_v26 }
 0x1c4   :  { %3053 = vmatmul.mubr.bf16.gmra.mrb[28].mxu1 %v543_v15 }
 0x1c5   :  { %3056 = vmatprep.mubr.bf16.mxu1 %v544_v23 }
 0x1cc   :  { %3057 = vmatmul.mubr.bf16.gmra.mrb[32].mxu1 %v545_v49 }
 0x1cd   :  { %3060 = vmatprep.mubr.bf16.mxu1 %v546_v34 }
 0x1d4   :  { %3061 = vmatmul.mubr.bf16.gmra.mrb[36].mxu1 %v547_v0 }
 0x1d5   :  { %3064 = vmatprep.mubr.bf16.mxu1 %v548_v40 }
 0x1dc   :  { %3065 = vmatmul.mubr.bf16.gmra.mrb[40].mxu1 %v549_v9 }
 0x1dd   :  { %3068 = vmatprep.mubr.bf16.mxu1 %v550_v2 }
 0x1e4   :  { %3069 = vmatmul.mubr.bf16.gmra.mrb[44].mxu1 %v551_v22 }
 0x27f   :  { %v3042_v29 = vpop.f32.mrb[16].mxu1 }
 0x280   :  { %v640_v54 = vpop.f32.mrb[17].mxu1  ;;  %v4015_v59 = vadd.f32 %v3042_v29, %v4009_v24 }
 0x281   :  { %v4012_v56 = vadd.f32 %v4009_v24, %v640_v54  ;;  %v3043_v31 = vpop.f32.mrb[18].mxu1 }
 0x282   :  { %v643_v60 = vpop.f32.mrb[19].mxu1  ;;  %v4022_v38 = vadd.f32 %v3043_v31, %v4009_v24  ;;  %v5577_v21 = vmax.f32 %v4015_v59, 0.0 }
 0x283   :  { %v4018_v42 = vadd.f32 %v4009_v24, %v643_v60  ;;  %v5579_v43 = vmax.f32 %v4012_v56, 0.0 }
 0x284   :  { %v5576_v30 = vmax.f32 %v4022_v38, 0.0 }
 0x285   :  { %v5578_v25 = vmax.f32 %v4018_v42, 0.0 }
 0x287   :  { %v799_v63 = vadd.f32 %v5578_v25, %v5579_v43  ;;  %v3046_v8 = vpop.f32.mrb[20].mxu1 }
 0x288   :  { %v656_v51 = vpop.f32.mrb[21].mxu1  ;;  %v4037_v13 = vadd.f32 %v3046_v8, %v4009_v24 }
 0x289   :  { %v800_v16 = vadd.f32 %v799_v63, %v5577_v21  ;;  %v4034_v27 = vadd.f32 %v4009_v24, %v656_v51  ;;  %v3047_v47 = vpop.f32.mrb[22].mxu1 }
 0x28a   :  { %v659_v6 = vpop.f32.mrb[23].mxu1  ;;  %v4048_v1 = vadd.f32 %v3047_v47, %v4009_v24  ;;  %v5573_v20 = vmax.f32 %v4037_v13, 0.0 }
 0x28b   :  { %v5575_v37 = vmax.f32 %v4034_v27, 0.0  ;;  %v801_v7 = vadd.f32 %v800_v16, %v5576_v30  ;;  %v4043_v44 = vadd.f32 %v4009_v24, %v659_v6  ;;  %v3249_v30 = vld [vmem:[#allocation2 + $0x120] ss:$28 sps:$4 sm:$0xff]  }
 0x28c   :  { %v5572_v17 = vmax.f32 %v4048_v1, 0.0 }
 0x28d   :  { %v802_v19 = vadd.f32 %v801_v7, %v5575_v37  ;;  %v5574_v53 = vmax.f32 %v4043_v44, 0.0 }
 0x28f   :  { %v803_v58 = vadd.f32 %v802_v19, %v5574_v53  ;;  %v3050_v45 = vpop.f32.mrb[24].mxu1  ;;  %v3236_v19 = vld [vmem:[#allocation2 + $0xc] ss:$28 sps:$4 sm:$0xff]   ;;  %v3251_v53 = vld [vmem:[#allocation2 + $0x124] ss:$28 sps:$4 sm:$0xff]  }
 0x290   :  { %v672_v35 = vpop.f32.mrb[25].mxu1  ;;  %v4061_v26 = vadd.f32 %v3050_v45, %v4009_v24  ;;  %1097 = vmatprep.subr.bf16.mxu0 %v3236_v19 }
 0x291   :  { %v804_v5 = vadd.f32 %v803_v58, %v5573_v20  ;;  %v4058_v32 = vadd.f32 %v4009_v24, %v672_v35  ;;  %v3051_v50 = vpop.f32.mrb[26].mxu1  ;;  %v3234_v58 = vld [vmem:[#allocation2 + $0x8] ss:$28 sps:$4 sm:$0xff]  }
 0x292   :  { %v675_v57 = vpop.f32.mrb[27].mxu1  ;;  %v4072_v15 = vadd.f32 %v3051_v50, %v4009_v24  ;;  %v777_v12 = vmax.f32 %v4061_v26, 0.0  ;;  %1098 = vmatpush1.bf16.msra.mxu0 %v3234_v58 }
 0x293   :  { %v775_v62 = vmax.f32 %v4058_v32, 0.0  ;;  %v805_v55 = vadd.f32 %v804_v5, %v5572_v17  ;;  %v4067_v10 = vadd.f32 %v4009_v24, %v675_v57 }
 0x294   :  { %v778_v49 = vmax.f32 %v4072_v15, 0.0 }
 0x295   :  { %v806_v4 = vadd.f32 %v805_v55, %v775_v62  ;;  %v776_v23 = vmax.f32 %v4067_v10, 0.0 }
 0x297   :  { %v807_v52 = vadd.f32 %v806_v4, %v776_v23  ;;  %v3054_v28 = vpop.f32.mrb[28].mxu1 }
 0x298   :  { %v688_v61 = vpop.f32.mrb[29].mxu1  ;;  %v4085_v14 = vadd.f32 %v3054_v28, %v4009_v24  ;;  %v3239_v28 = vld [vmem:[#allocation2 + $0x44] ss:$28 sps:$4 sm:$0xff]  }
 0x299   :  { %v808_v34 = vadd.f32 %v807_v52, %v777_v12  ;;  %v4082_v33 = vadd.f32 %v4009_v24, %v688_v61  ;;  %v3055_v36 = vpop.f32.mrb[30].mxu1  ;;  %1099 = vmatprep.subr.bf16.mxu0 %v3239_v28  ;;  %v3243_v28 = vld [vmem:[#allocation2 + $0xb0] ss:$28 sps:$4 sm:$0xff]  }
 0x29a   :  { %v691_v39 = vpop.f32.mrb[31].mxu1  ;;  %v4096_v48 = vadd.f32 %v3055_v36, %v4009_v24  ;;  %v781_v9 = vmax.f32 %v4085_v14, 0.0 }
 0x29b   :  { %v779_v0 = vmax.f32 %v4082_v33, 0.0  ;;  %v809_v40 = vadd.f32 %v808_v34, %v778_v49  ;;  %v4091_v41 = vadd.f32 %v4009_v24, %v691_v39  ;;  %v3237_v34 = vld [vmem:[#allocation2 + $0x40] ss:$28 sps:$4 sm:$0xff]  }
 0x29c   :  { %v782_v22 = vmax.f32 %v4096_v48, 0.0  ;;  %1100 = vmatpush1.bf16.msra.mxu0 %v3237_v34 }
 0x29d   :  { %v810_v46 = vadd.f32 %v809_v40, %v779_v0  ;;  %v780_v3 = vmax.f32 %v4091_v41, 0.0 }
 0x29f   :  { %v811_v2 = vadd.f32 %v810_v46, %v780_v3  ;;  %v3058_v11 = vpop.f32.mrb[32].mxu1 }
 0x2a0   :  { %v704_v18 = vpop.f32.mrb[33].mxu1  ;;  %v4109_v63 = vadd.f32 %v3058_v11, %v4009_v24 }
 0x2a1   :  { %v812_v29 = vadd.f32 %v811_v2, %v781_v9  ;;  %v4106_v54 = vadd.f32 %v4009_v24, %v704_v18  ;;  %v3059_v31 = vpop.f32.mrb[34].mxu1 }
 0x2a2   :  { %v707_v60 = vpop.f32.mrb[35].mxu1  ;;  %v4120_v6 = vadd.f32 %v3059_v31, %v4009_v24  ;;  %v785_v45 = vmax.f32 %v4109_v63, 0.0  ;;  %v3240_v31 = vld [vmem:[#allocation2 + $0x78] ss:$28 sps:$4 sm:$0xff]  }
 0x2a3   :  { %v783_v8 = vmax.f32 %v4106_v54, 0.0  ;;  %v813_v51 = vadd.f32 %v812_v29, %v782_v22  ;;  %v4115_v16 = vadd.f32 %v4009_v24, %v707_v60  ;;  %v3242_v29 = vld [vmem:[#allocation2 + $0x7c] ss:$28 sps:$4 sm:$0xff]  }
 0x2a4   :  { %v786_v57 = vmax.f32 %v4120_v6, 0.0  ;;  %1101 = vmatprep.subr.bf16.mxu0 %v3242_v29 }
 0x2a5   :  { %v814_v47 = vadd.f32 %v813_v51, %v783_v8  ;;  %v784_v7 = vmax.f32 %v4115_v16, 0.0  ;;  %1102 = vmatpush1.bf16.msra.mxu0 %v3240_v31 }
 0x2a7   :  { %v815_v35 = vadd.f32 %v814_v47, %v784_v7  ;;  %v3062_v5 = vpop.f32.mrb[36].mxu1 }
 0x2a8   :  { %v720_v50 = vpop.f32.mrb[37].mxu1  ;;  %v4133_v36 = vadd.f32 %v3062_v5, %v4009_v24 }
 0x2a9   :  { %v816_v55 = vadd.f32 %v815_v35, %v785_v45  ;;  %v4130_v4 = vadd.f32 %v4009_v24, %v720_v50  ;;  %v3063_v52 = vpop.f32.mrb[38].mxu1 }
 0x2aa   :  { %v723_v61 = vpop.f32.mrb[39].mxu1  ;;  %v4144_v11 = vadd.f32 %v3063_v52, %v4009_v24  ;;  %v5583_v60 = vmax.f32 %v4133_v36, 0.0  ;;  %v5616_v14 = vmax.f32 %v4133_v36, 0.0  ;;  %v5621_v36 = vmax.f32 %v4018_v42, 0.0 }
 0x2ab   :  { %v787_v39 = vmax.f32 %v4130_v4, 0.0  ;;  %v817_v40 = vadd.f32 %v816_v55, %v786_v57  ;;  %v4139_v46 = vadd.f32 %v4009_v24, %v723_v61  ;;  %v3245_v55 = vld [vmem:[#allocation2 + $0xb4] ss:$28 sps:$4 sm:$0xff]  }
 0x2ac   :  { %v5582_v58 = vmax.f32 %v4144_v11, 0.0  ;;  %1103 = vmatprep.subr.bf16.mxu0 %v3245_v55  ;;  %v5617_v41 = vmax.f32 %v4144_v11, 0.0 }
 0x2ad   :  { %v818_v2 = vadd.f32 %v817_v40, %v787_v39  ;;  %v788_v18 = vmax.f32 %v4139_v46, 0.0  ;;  %1104 = vmatpush1.bf16.msra.mxu0 %v3243_v28 }
 0x2af   :  { %v819_v51 = vadd.f32 %v818_v2, %v788_v18  ;;  %v3066_v47 = vpop.f32.mrb[40].mxu1 }
 0x2b0   :  { %v736_v19 = vpop.f32.mrb[41].mxu1  ;;  %v4157_v61 = vadd.f32 %v3066_v47, %v4009_v24  ;;  %v3248_v47 = vld [vmem:[#allocation2 + $0xec] ss:$28 sps:$4 sm:$0xff]  }
 0x2b1   :  { %v820_v35 = vadd.f32 %v819_v51, %v5583_v60  ;;  %v4154_v5 = vadd.f32 %v4009_v24, %v736_v19  ;;  %v3067_v50 = vpop.f32.mrb[42].mxu1  ;;  %v3246_v19 = vld [vmem:[#allocation2 + $0xe8] ss:$28 sps:$4 sm:$0xff]   ;;  %1105 = vmatprep.subr.bf16.mxu0 %v3248_v47  ;;  %v3257_v60 = vld [vmem:[#allocation2 + $0x194] ss:$28 sps:$4 sm:$0xff]  }
 0x2b2   :  { %v739_v52 = vpop.f32.mrb[43].mxu1  ;;  %v4168_v31 = vadd.f32 %v3067_v50, %v4009_v24  ;;  %v793_v17 = vmax.f32 %v4157_v61, 0.0  ;;  %1106 = vmatpush1.bf16.msra.mxu0 %v3246_v19 }
 0x2b3   :  { %v5581_v34 = vmax.f32 %v4154_v5, 0.0  ;;  %v821_v40 = vadd.f32 %v820_v35, %v5582_v58  ;;  %v4163_v2 = vadd.f32 %v4009_v24, %v739_v52  ;;  %1107 = vmatprep.subr.bf16.mxu0 %v3251_v53  ;;  %v3445_v53 = vmov 0  }
 0x2b4   :  { %v794_v55 = vmax.f32 %v4168_v31, 0.0  ;;  %v3254_v31 = vld [vmem:[#allocation2 + $0x15c] ss:$28 sps:$4 sm:$0xff]   ;;  %1129 = vmatprep.mubr.bf16.mxu0 %v3445_v53 }
 0x2b5   :  { %v822_v29 = vadd.f32 %v821_v40, %v5581_v34  ;;  %v5580_v51 = vmax.f32 %v4163_v2, 0.0 }
 0x2b6   :  { %1108 = vmatpush1.bf16.msra.mxu0 %v3249_v30 }
 0x2b7   :  { %v823_v35 = vadd.f32 %v822_v29, %v5580_v51  ;;  %v3070_v20 = vpop.f32.mrb[44].mxu1  ;;  %1109 = vmatprep.subr.bf16.mxu0 %v3254_v31 }
 0x2b8   :  { %v752_v52 = vpop.f32.mrb[45].mxu1  ;;  %v761_v21 = vadd.f32 %v3070_v20, %v4009_v24  ;;  %v3255_v20 = vld [vmem:[#allocation2 + $0x190] ss:$28 sps:$4 sm:$0xff]  }
 0x2b9   :  { %v824_v28 = vadd.f32 %v823_v35, %v793_v17  ;;  %v753_v40 = vadd.f32 %v4009_v24, %v752_v52  ;;  %v3071_v50 = vpop.f32.mrb[46].mxu1  ;;  %v3252_v35 = vld [vmem:[#allocation2 + $0x158] ss:$28 sps:$4 sm:$0xff]  }
 0x2ba   :  { %v755_v37 = vpop.f32.mrb[47].mxu1  ;;  %v764_v47 = vadd.f32 %v3071_v50, %v4009_v24  ;;  %v797_v51 = vmax.f32 %v761_v21, 0.0  ;;  %1110 = vmatpush1.bf16.msra.mxu0 %v3252_v35 }
 0x2bb   :  { %v795_v25 = vmax.f32 %v753_v40, 0.0  ;;  %v825_v61 = vadd.f32 %v824_v28, %v794_v55  ;;  %v756_v43 = vadd.f32 %v4009_v24, %v755_v37  ;;  %1111 = vmatprep.subr.bf16.mxu0 %v3257_v60 }
 0x2bc   :  { %v798_v34 = vmax.f32 %v764_v47, 0.0 }
 0x2bd   :  { %v826_v29 = vadd.f32 %v825_v61, %v795_v25  ;;  %v796_v19 = vmax.f32 %v756_v43, 0.0 }
 0x2be   :  { %1112 = vmatpush1.bf16.msra.mxu0 %v3255_v20 }
 0x2bf   :  { %v827_v52 = vadd.f32 %v826_v29, %v796_v19 }
 0x2c1   :  { %v828_v58 = vadd.f32 %v827_v52, %v797_v51  ;;  %v5627_v52 = vmax.f32 %v4048_v1, 0.0 }
 0x2c3   :  { %v829_v40 = vadd.f32 %v828_v58, %v798_v34 }
 0x2c5   :  { %v830_v37 = vrot.slane %v829_v40, 4 }
 0x2c7   :  { %v831_v30 = vadd.f32 %v830_v37, %v829_v40 }
 0x2c9   :  { %v832_v24 = vrot.slane %v831_v30, 2 }
 0x2cb   :  { %v833_v43 = vadd.f32 %v832_v24, %v831_v30 }
 0x2cd   :  { %v834_v28 = vrot.slane %v833_v43, 1 }
 0x2cf   :  { %v835_v50 = vadd.f32 %v834_v28, %v833_v43 }
 0x2d1   :  { %v836_v21 = vmul.f32 0.00390625, %v835_v50 }
 0x2d3   :  { %v4182_v61 = vsub.f32 %v775_v62, %v836_v21  ;;  %v4186_v29 = vsub.f32 %v776_v23, %v836_v21  ;;  %v4190_v60 = vsub.f32 %v777_v12, %v836_v21  ;;  %v4194_v58 = vsub.f32 %v778_v49, %v836_v21 }
 0x2d4   :  { %v4198_v47 = vsub.f32 %v779_v0, %v836_v21  ;;  %v4202_v32 = vsub.f32 %v780_v3, %v836_v21  ;;  %v4206_v62 = vsub.f32 %v781_v9, %v836_v21  ;;  %v4210_v26 = vsub.f32 %v782_v22, %v836_v21 }
 0x2d5   :  { %v4214_v10 = vsub.f32 %v783_v8, %v836_v21  ;;  %v4218_v15 = vsub.f32 %v784_v7, %v836_v21  ;;  %v4222_v23 = vsub.f32 %v785_v45, %v836_v21  ;;  %v4226_v12 = vsub.f32 %v786_v57, %v836_v21 }
 0x2d6   :  { %v4230_v49 = vsub.f32 %v787_v39, %v836_v21  ;;  %v4234_v33 = vsub.f32 %v788_v18, %v836_v21  ;;  %v4238_v0 = vsub.f32 %v5616_v14, %v836_v21  ;;  %v4242_v48 = vsub.f32 %v5617_v41, %v836_v21 }
 0x2d7   :  { %v5618_v3 = vmax.f32 %v4154_v5, 0.0  ;;  %v5619_v22 = vmax.f32 %v4163_v2, 0.0  ;;  %v4252_v63 = vsub.f32 %v793_v17, %v836_v21  ;;  %v4254_v8 = vsub.f32 %v794_v55, %v836_v21 }
 0x2d8   :  { %v4256_v16 = vsub.f32 %v795_v25, %v836_v21  ;;  %v4258_v6 = vsub.f32 %v796_v19, %v836_v21  ;;  %v4260_v7 = vsub.f32 %v797_v51, %v836_v21  ;;  %v4262_v45 = vsub.f32 %v798_v34, %v836_v21 }
 0x2d9   :  { %v4246_v9 = vsub.f32 %v5618_v3, %v836_v21  ;;  %v4250_v54 = vsub.f32 %v5619_v22, %v836_v21  ;;  %v5620_v57 = vmax.f32 %v4012_v56, 0.0  ;;  %v4270_v39 = vsub.f32 %v5621_v36, %v836_v21 }
 0x2da   :  { %v5622_v17 = vmax.f32 %v4015_v59, 0.0  ;;  %v5623_v18 = vmax.f32 %v4022_v38, 0.0  ;;  %v5624_v56 = vmax.f32 %v4034_v27, 0.0  ;;  %v5625_v2 = vmax.f32 %v4043_v44, 0.0 }
 0x2db   :  { %v4266_v4 = vsub.f32 %v5620_v57, %v836_v21  ;;  %v870_v11 = vmul.f32 %v4270_v39, %v4270_v39  ;;  %v5626_v38 = vmax.f32 %v4037_v13, 0.0  ;;  %v4304_v20 = vsub.f32 %v5627_v52, %v836_v21 }
 0x2dc   :  { %v4274_v46 = vsub.f32 %v5622_v17, %v836_v21  ;;  %v4282_v5 = vsub.f32 %v5623_v18, %v836_v21  ;;  %v4286_v34 = vsub.f32 %v5624_v56, %v836_v21  ;;  %v4292_v51 = vsub.f32 %v5625_v2, %v836_v21 }
 0x2dd   :  { %v869_v25 = vmul.f32 %v4266_v4, %v4266_v4  ;;  %v4298_v31 = vsub.f32 %v5626_v38, %v836_v21  ;;  %v876_v13 = vmul.f32 %v4304_v20, %v4304_v20  ;;  %v877_v43 = vmul.f32 %v4182_v61, %v4182_v61 }
 0x2de   :  { %v871_v42 = vmul.f32 %v4274_v46, %v4274_v46  ;;  %v872_v55 = vmul.f32 %v4282_v5, %v4282_v5  ;;  %v873_v27 = vmul.f32 %v4286_v34, %v4286_v34  ;;  %v874_v44 = vmul.f32 %v4292_v51, %v4292_v51 }
 0x2df   :  { %v901_v59 = vadd.f32 %v870_v11, %v869_v25  ;;  %v875_v37 = vmul.f32 %v4298_v31, %v4298_v31  ;;  %v878_v1 = vmul.f32 %v4186_v29, %v4186_v29  ;;  %v879_v21 = vmul.f32 %v4190_v60, %v4190_v60 }
 0x2e0   :  { %v880_v41 = vmul.f32 %v4194_v58, %v4194_v58  ;;  %v881_v22 = vmul.f32 %v4198_v47, %v4198_v47  ;;  %v882_v36 = vmul.f32 %v4202_v32, %v4202_v32  ;;  %v883_v25 = vmul.f32 %v4206_v62, %v4206_v62 }
 0x2e1   :  { %v902_v19 = vadd.f32 %v901_v59, %v871_v42  ;;  %v884_v18 = vmul.f32 %v4210_v26, %v4210_v26  ;;  %v885_v42 = vmul.f32 %v4214_v10, %v4214_v10  ;;  %v886_v2 = vmul.f32 %v4218_v15, %v4218_v15 }
 0x2e2   :  { %v889_v52 = vmul.f32 %v4230_v49, %v4230_v49 }
 0x2e3   :  { %v903_v35 = vadd.f32 %v902_v19, %v872_v55  ;;  %v887_v19 = vmul.f32 %v4222_v23, %v4222_v23 }
 0x2e5   :  { %v904_v40 = vadd.f32 %v903_v35, %v873_v27  ;;  %v888_v27 = vmul.f32 %v4226_v12, %v4226_v12 }
 0x2e7   :  { %v905_v30 = vadd.f32 %v904_v40, %v874_v44  ;;  %v890_v40 = vmul.f32 %v4234_v33, %v4234_v33 }
 0x2e9   :  { %v906_v24 = vadd.f32 %v905_v30, %v875_v37  ;;  %v891_v30 = vmul.f32 %v4238_v0, %v4238_v0 }
 0x2eb   :  { %v907_v28 = vadd.f32 %v906_v24, %v876_v13  ;;  %v892_v24 = vmul.f32 %v4242_v48, %v4242_v48 }
 0x2ed   :  { %v908_v50 = vadd.f32 %v907_v28, %v877_v43  ;;  %v893_v28 = vmul.f32 %v4246_v9, %v4246_v9 }
 0x2ef   :  { %v909_v14 = vadd.f32 %v908_v50, %v878_v1  ;;  %v894_v50 = vmul.f32 %v4250_v54, %v4250_v54 }
 0x2f1   :  { %v910_v3 = vadd.f32 %v909_v14, %v879_v21  ;;  %v895_v14 = vmul.f32 %v4252_v63, %v4252_v63 }
 0x2f3   :  { %v911_v57 = vadd.f32 %v910_v3, %v880_v41  ;;  %v896_v3 = vmul.f32 %v4254_v8, %v4254_v8 }
 0x2f5   :  { %v912_v17 = vadd.f32 %v911_v57, %v881_v22  ;;  %v897_v57 = vmul.f32 %v4256_v16, %v4256_v16 }
 0x2f7   :  { %v913_v11 = vadd.f32 %v912_v17, %v882_v36  ;;  %v898_v17 = vmul.f32 %v4258_v6, %v4258_v6 }
 0x2f9   :  { %v914_v56 = vadd.f32 %v913_v11, %v883_v25  ;;  %v899_v11 = vmul.f32 %v4260_v7, %v4260_v7 }
 0x2fb   :  { %v915_v59 = vadd.f32 %v914_v56, %v884_v18  ;;  %v900_v56 = vmul.f32 %v4262_v45, %v4262_v45 }
 0x2fd   :  { %v916_v55 = vadd.f32 %v915_v59, %v885_v42 }
 0x2ff   :  { %v917_v38 = vadd.f32 %v916_v55, %v886_v2 }
 0x301   :  { %v918_v35 = vadd.f32 %v917_v38, %v887_v19 }
 0x303   :  { %v919_v44 = vadd.f32 %v918_v35, %v888_v27 }
 0x305   :  { %v920_v37 = vadd.f32 %v919_v44, %v889_v52 }
 0x307   :  { %v921_v13 = vadd.f32 %v920_v37, %v890_v40 }
 0x309   :  { %v922_v43 = vadd.f32 %v921_v13, %v891_v30 }
 0x30b   :  { %v923_v1 = vadd.f32 %v922_v43, %v892_v24 }
 0x30d   :  { %v924_v21 = vadd.f32 %v923_v1, %v893_v28 }
 0x30f   :  { %v925_v41 = vadd.f32 %v924_v21, %v894_v50 }
 0x311   :  { %v926_v22 = vadd.f32 %v925_v41, %v895_v14 }
 0x313   :  { %v927_v36 = vadd.f32 %v926_v22, %v896_v3 }
 0x315   :  { %v928_v25 = vadd.f32 %v927_v36, %v897_v57 }
 0x317   :  { %v929_v18 = vadd.f32 %v928_v25, %v898_v17  ;;  %v3258_v25 = vld [vmem:[#allocation2 + $0x10] ss:$28 sps:$4 sm:$0xff]  }
 0x318   :  { %3072 = vmatprep.subr.bf16.mxu1 %v3258_v25 }
 0x319   :  { %v930_v42 = vadd.f32 %v929_v18, %v899_v11  ;;  %3073 = vmatpush3.bf16.msra.mxu1 %v3258_v25  ;;  %v3259_v11 = vld [vmem:[#allocation2 + $0x48] ss:$28 sps:$4 sm:$0xff]  }
 0x31a   :  { %3074 = vmatprep.subr.bf16.mxu1 %v3259_v11 }
 0x31b   :  { %v931_v59 = vadd.f32 %v930_v42, %v900_v56  ;;  %v3262_v42 = vld [vmem:[#allocation2 + $0xf0] ss:$28 sps:$4 sm:$0xff]  }
 0x31d   :  { %v932_v2 = vrot.slane %v931_v59, 4  ;;  %3075 = vmatpush3.bf16.msra.mxu1 %v3259_v11 }
 0x31f   :  { %v933_v55 = vadd.f32 %v932_v2, %v931_v59 }
 0x321   :  { %v934_v19 = vrot.slane %v933_v55, 2 }
 0x323   :  { %v935_v38 = vadd.f32 %v934_v19, %v933_v55  ;;  %v3264_v55 = vld [vmem:[#allocation2 + $0x160] ss:$28 sps:$4 sm:$0xff]  }
 0x325   :  { %v936_v27 = vrot.slane %v935_v38, 1 }
 0x327   :  { %v937_v35 = vadd.f32 %v936_v27, %v935_v38  ;;  %v1007_v27 = vlaneseq }
 0x329   :  { %v938_v52 = vmul.f32 0.00390625, %v937_v35  ;;  %v1008_v35 = vshrl.u32 %v1007_v27, 7 }
 0x32b   :  { %v939_v44 = vadd.f32 1e-05, %v938_v52  ;;  %v1013_v52 = vsub.s32 1, %v1008_v35 }
 0x32d   :  { %3284 = vrsqrt.f32 %v939_v44 }
 0x337   :  { %v4360_v40 = vpop.eup %3284 }
 0x338   :  { %v941_v37 = vmul.f32 %v4360_v40, %v4266_v4  ;;  %v942_v30 = vmul.f32 %v4360_v40, %v4270_v39  ;;  %v943_v24 = vmul.f32 %v4360_v40, %v4274_v46  ;;  %v944_v43 = vmul.f32 %v4360_v40, %v4282_v5 }
 0x339   :  { %v945_v4 = vmul.f32 %v4360_v40, %v4286_v34  ;;  %v946_v39 = vmul.f32 %v4360_v40, %v4292_v51  ;;  %v947_v46 = vmul.f32 %v4360_v40, %v4298_v31  ;;  %v948_v5 = vmul.f32 %v4360_v40, %v4304_v20 }
 0x33a   :  { %v990_v13 = vpack.c.bf16 %v942_v30, %v941_v37  ;;  %v991_v28 = vpack.c.bf16 %v944_v43, %v943_v24  ;;  %v949_v34 = vmul.f32 %v4360_v40, %v4182_v61  ;;  %v950_v51 = vmul.f32 %v4360_v40, %v4186_v29 }
 0x33b   :  { %v992_v1 = vpack.c.bf16 %v946_v39, %v945_v4  ;;  %v993_v50 = vpack.c.bf16 %v948_v5, %v947_v46  ;;  %v951_v31 = vmul.f32 %v4360_v40, %v4190_v60  ;;  %v952_v20 = vmul.f32 %v4360_v40, %v4194_v58 }
 0x33c   :  { %1130 = vmatmul.mubr.bf16.vlgmr.msra.gmra.mrb[16].mxu0 %v990_v13  ;;  %v994_v21 = vpack.c.bf16 %v950_v51, %v949_v34  ;;  %v953_v61 = vmul.f32 %v4360_v40, %v4198_v47  ;;  %v954_v29 = vmul.f32 %v4360_v40, %v4202_v32  ;;  %v955_v60 = vmul.f32 %v4360_v40, %v4206_v62 }
 0x33d   :  { %1139 = vmatprep.mubr.bf16.mxu0 %v3445_v53  ;;  %v995_v14 = vpack.c.bf16 %v952_v20, %v951_v31  ;;  %v956_v58 = vmul.f32 %v4360_v40, %v4210_v26  ;;  %v957_v47 = vmul.f32 %v4360_v40, %v4214_v10  ;;  %v958_v32 = vmul.f32 %v4360_v40, %v4218_v15 }
 0x33e   :  { %v996_v41 = vpack.c.bf16 %v954_v29, %v953_v61  ;;  %v959_v62 = vmul.f32 %v4360_v40, %v4222_v23  ;;  %v960_v26 = vmul.f32 %v4360_v40, %v4226_v12  ;;  %v961_v10 = vmul.f32 %v4360_v40, %v4230_v49 }
 0x33f   :  { %v997_v3 = vpack.c.bf16 %v956_v58, %v955_v60  ;;  %v998_v22 = vpack.c.bf16 %v958_v32, %v957_v47  ;;  %v962_v15 = vmul.f32 %v4360_v40, %v4234_v33  ;;  %v963_v23 = vmul.f32 %v4360_v40, %v4238_v0  ;;  %v3260_v0 = vld [vmem:[#allocation2 + $0x80] ss:$28 sps:$4 sm:$0xff]   ;;  %v1387_v32 = vld [vmem:[%s5557_s1 + $0x8] sm:$0xff] }
 0x340   :  { %v999_v57 = vpack.c.bf16 %v960_v26, %v959_v62  ;;  %v964_v12 = vmul.f32 %v4360_v40, %v4242_v48  ;;  %v965_v49 = vmul.f32 %v4360_v40, %v4246_v9  ;;  %v966_v33 = vmul.f32 %v4360_v40, %v4250_v54  ;;  %3076 = vmatprep.subr.bf16.mxu1 %v3260_v0  ;;  %v3261_v9 = vld [vmem:[#allocation2 + $0xb8] ss:$28 sps:$4 sm:$0xff]  }
 0x341   :  { %v1000_v36 = vpack.c.bf16 %v962_v15, %v961_v10  ;;  %v967_v48 = vmul.f32 %v4360_v40, %v4252_v63  ;;  %v968_v56 = vmul.f32 %v4360_v40, %v4254_v8  ;;  %3077 = vmatpush3.bf16.msra.mxu1 %v3260_v0  ;;  %v970_v59 = vmul.f32 %v4360_v40, %v4258_v6  ;;  %v3263_v63 = vld [vmem:[#allocation2 + $0x128] ss:$28 sps:$4 sm:$0xff]   ;;  %v3265_v6 = vld [vmem:[#allocation2 + $0x198] ss:$28 sps:$4 sm:$0xff]  }
 0x342   :  { %v1001_v17 = vpack.c.bf16 %v964_v12, %v963_v23  ;;  %v1002_v18 = vpack.c.bf16 %v966_v33, %v965_v49  ;;  %3078 = vmatprep.subr.bf16.mxu1 %v3261_v9  ;;  %v969_v2 = vmul.f32 %v4360_v40, %v4256_v16  ;;  %v971_v19 = vmul.f32 %v4360_v40, %v4260_v7  ;;  %v1388_v33 = vld [vmem:[%s5557_s1 + $0x10] sm:$0xff] }
 0x343   :  { %v1003_v54 = vpack.c.bf16 %v968_v56, %v967_v48  ;;  %v972_v38 = vmul.f32 %v4360_v40, %v4262_v45 }
 0x344   :  { %1140 = vmatmul.mubr.bf16.gmra.mrb[20].mxu0 %v991_v28  ;;  %v1004_v8 = vpack.c.bf16 %v970_v59, %v969_v2 }
 0x345   :  { %1149 = vmatprep.mubr.bf16.mxu0 %v3445_v53  ;;  %3079 = vmatpush3.bf16.msra.mxu1 %v3261_v9  ;;  %v1005_v16 = vpack.c.bf16 %v972_v38, %v971_v19  ;;  %v1389_v9 = vld [vmem:[%s5557_s1 + $0x18] sm:$0xff] }
 0x346   :  { %3080 = vmatprep.subr.bf16.mxu1 %v3262_v42 }
 0x349   :  { %3081 = vmatpush3.bf16.msra.mxu1 %v3262_v42 }
 0x34a   :  { %3082 = vmatprep.subr.bf16.mxu1 %v3263_v63 }
 0x34c   :  { %1150 = vmatmul.mubr.bf16.gmra.mrb[24].mxu0 %v992_v1 }
 0x34d   :  { %1159 = vmatprep.mubr.bf16.mxu0 %v3445_v53  ;;  %3083 = vmatpush3.bf16.msra.mxu1 %v3263_v63 }
 0x34e   :  { %3084 = vmatprep.subr.bf16.mxu1 %v3264_v55 }
 0x351   :  { %3085 = vmatpush3.bf16.msra.mxu1 %v3264_v55 }
 0x352   :  { %3086 = vmatprep.subr.bf16.mxu1 %v3265_v6 }
 0x354   :  { %1160 = vmatmul.mubr.bf16.gmra.mrb[28].mxu0 %v993_v50  ;;  %v1009_v50 = vsub.s32 0, %v1008_v35 }
 0x355   :  { %1169 = vmatprep.mubr.bf16.mxu0 %v3445_v53  ;;  %3087 = vmatpush3.bf16.msra.mxu1 %v3265_v6 }
 0x35c   :  { %1170 = vmatmul.mubr.bf16.gmra.mrb[32].mxu0 %v994_v21 }
 0x35d   :  { %1179 = vmatprep.mubr.bf16.mxu0 %v3445_v53 }
 0x364   :  { %1180 = vmatmul.mubr.bf16.gmra.mrb[36].mxu0 %v995_v14 }
 0x365   :  { %1189 = vmatprep.mubr.bf16.mxu0 %v3445_v53 }
 0x36c   :  { %1190 = vmatmul.mubr.bf16.gmra.mrb[40].mxu0 %v996_v41  ;;  %v1386_v41 = vld [vmem:[%s5557_s1] sm:$0xff] }
 0x36d   :  { %1199 = vmatprep.mubr.bf16.mxu0 %v3445_v53 }
 0x374   :  { %1200 = vmatmul.mubr.bf16.gmra.mrb[44].mxu0 %v997_v3 }
 0x375   :  { %1209 = vmatprep.mubr.bf16.mxu0 %v3445_v53 }
 0x37c   :  { %1210 = vmatmul.mubr.bf16.gmra.mrb[48].mxu0 %v998_v22 }
 0x37d   :  { %1219 = vmatprep.mubr.bf16.mxu0 %v3445_v53 }
 0x384   :  { %1220 = vmatmul.mubr.bf16.gmra.mrb[52].mxu0 %v999_v57 }
 0x385   :  { %1229 = vmatprep.mubr.bf16.mxu0 %v3445_v53 }
 0x38c   :  { %1230 = vmatmul.mubr.bf16.gmra.mrb[56].mxu0 %v1000_v36 }
 0x38d   :  { %1239 = vmatprep.mubr.bf16.mxu0 %v3445_v53 }
 0x394   :  { %1240 = vmatmul.mubr.bf16.gmra.mrb[60].mxu0 %v1001_v17 }
 0x395   :  { %1249 = vmatprep.mubr.bf16.mxu0 %v3445_v53 }
 0x39c   :  { %1250 = vmatmul.mubr.bf16.gmra.mrb[64].mxu0 %v1002_v18 }
 0x39d   :  { %1259 = vmatprep.mubr.bf16.mxu0 %v3445_v53 }
 0x3a4   :  { %1260 = vmatmul.mubr.bf16.gmra.mrb[68].mxu0 %v1003_v54 }
 0x3a5   :  { %1269 = vmatprep.mubr.bf16.mxu0 %v3445_v53 }
 0x3ac   :  { %1270 = vmatmul.mubr.bf16.gmra.mrb[72].mxu0 %v1004_v8 }
 0x3ad   :  { %1279 = vmatprep.mubr.bf16.mxu0 %v3445_v53  ;;  %v989_v53 = vld [vmem:[%s5559_s3 + $0x2] sm:$0x3] }
 0x3ae   :  { %v4444_v44 = vrot.slane %v989_v53, %v1013_v52  ;;  %v4450_v14 = vrot.slane %v989_v53, %v1009_v50 }
 0x3b4   :  { %1280 = vmatmul.mubr.bf16.gmra.mrb[76].mxu0 %v1005_v16 }
 0x40f   :  { %v1131_v37 = vpop.f32.mrb[16].mxu0 }
 0x410   :  { %v1133_v7 = vpop.f32.mrb[17].mxu0  ;;  %v1132_v22 = vadd.f32 %v1131_v37, %v4450_v14 }
 0x411   :  { %v1134_v30 = vadd.f32 %v1133_v7, %v4444_v44  ;;  %v1135_v45 = vpop.f32.mrb[18].mxu0  ;;  %v1390_v7 = vld [vmem:[%s5557_s1 + $0x20] sm:$0xff] }
 0x412   :  { %v1137_v40 = vpop.f32.mrb[19].mxu0  ;;  %v1136_v36 = vadd.f32 %v1135_v45, %v4450_v14 }
 0x413   :  { %v1290_v13 = vmul.f32 0.5, %v1134_v30  ;;  %v1138_v24 = vadd.f32 %v1137_v40, %v4444_v44 }
 0x415   :  { %v1322_v43 = vmul.f32 1.442695, %v1290_v13  ;;  %v1291_v28 = vmul.f32 0.5, %v1138_v24 }
 0x417   :  { %3286 = vpow2.f32 %v1322_v43  ;;  %v1324_v4 = vmul.f32 1.442695, %v1291_v28  ;;  %v1141_v39 = vpop.f32.mrb[20].mxu0  ;;  %v1391_v43 = vld [vmem:[%s5557_s1 + $0x28] sm:$0xff] }
 0x418   :  { %v1143_v1 = vpop.f32.mrb[21].mxu0  ;;  %v1142_v59 = vadd.f32 %v1141_v39, %v4450_v14 }
 0x419   :  { %3288 = vpow2.f32 %v1324_v4  ;;  %v1144_v46 = vadd.f32 %v1143_v1, %v4444_v44  ;;  %v1145_v5 = vpop.f32.mrb[22].mxu0 }
 0x41a   :  { %v1147_v34 = vpop.f32.mrb[23].mxu0  ;;  %v1146_v38 = vadd.f32 %v1145_v5, %v4450_v14 }
 0x41b   :  { %v1292_v51 = vmul.f32 0.5, %v1144_v46  ;;  %v1148_v21 = vadd.f32 %v1147_v34, %v4444_v44 }
 0x41d   :  { %v1326_v31 = vmul.f32 1.442695, %v1292_v51  ;;  %v1293_v20 = vmul.f32 0.5, %v1148_v21 }
 0x41f   :  { %3290 = vpow2.f32 %v1326_v31  ;;  %v1328_v61 = vmul.f32 1.442695, %v1293_v20  ;;  %v1151_v29 = vpop.f32.mrb[24].mxu0 }
 0x420   :  { %v1153_v60 = vpop.f32.mrb[25].mxu0  ;;  %v1152_v28 = vadd.f32 %v1151_v29, %v4450_v14  ;;  %v1392_v29 = vld [vmem:[%s5557_s1 + $0x30] sm:$0xff] }
 0x421   :  { %v3287_v58 = vpop.eup %3286  ;;  %3292 = vpow2.f32 %v1328_v61  ;;  %v1154_v3 = vadd.f32 %v1153_v60, %v4444_v44  ;;  %v1155_v47 = vpop.f32.mrb[26].mxu0 }
 0x422   :  { %v1157_v62 = vpop.f32.mrb[27].mxu0  ;;  %v1418_v26 = vmul.f32 %v3287_v58, %v1386_v41  ;;  %v1156_v50 = vadd.f32 %v1155_v47, %v4450_v14  ;;  %v1393_v47 = vld [vmem:[%s5557_s1 + $0x38] sm:$0xff] }
 0x423   :  { %v3289_v57 = vpop.eup %3288  ;;  %v1294_v10 = vmul.f32 0.5, %v1154_v3  ;;  %v1158_v15 = vadd.f32 %v1157_v62, %v4444_v44 }
 0x424   :  { %v1419_v23 = vmul.f32 %v3289_v57, %v1387_v32  ;;  %v1450_v12 = vadd.f32 %v1418_v26, %v1132_v22 }
 0x425   :  { %v1330_v17 = vmul.f32 1.442695, %v1294_v10  ;;  %v1295_v25 = vmul.f32 0.5, %v1158_v15 }
 0x426   :  { %v1451_v49 = vadd.f32 %v1419_v23, %v1136_v36 }
 0x427   :  { %3294 = vpow2.f32 %v1330_v17  ;;  %v1332_v11 = vmul.f32 1.442695, %v1295_v25  ;;  %v1161_v18 = vpop.f32.mrb[28].mxu0 }
 0x428   :  { %v1163_v0 = vpop.f32.mrb[29].mxu0  ;;  %v1499_v48 = vpack.c.bf16 %v1451_v49, %v1450_v12  ;;  %v1162_v62 = vadd.f32 %v1161_v18, %v4450_v14  ;;  %v1394_v18 = vld [vmem:[%s5557_s1 + $0x40] sm:$0xff] }
 0x429   :  { %v3291_v56 = vpop.eup %3290  ;;  %3296 = vpow2.f32 %v1332_v11  ;;  %v1164_v54 = vadd.f32 %v1163_v0, %v4444_v44  ;;  %v1165_v42 = vpop.f32.mrb[30].mxu0 }
 0x42a   :  { %v1420_v2 = vmul.f32 %v3291_v56, %v1388_v33  ;;  %v1167_v63 = vpop.f32.mrb[31].mxu0  ;;  %3088 = vmatprep.mubr.bf16.mxu1 %v1499_v48  ;;  %v1166_v23 = vadd.f32 %v1165_v42, %v4450_v14  ;;  %v1395_v42 = vld [vmem:[%s5557_s1 + $0x48] sm:$0xff] }
 0x42b   :  { %v3293_v8 = vpop.eup %3292  ;;  %v1296_v55 = vmul.f32 0.5, %v1164_v54  ;;  %v1168_v19 = vadd.f32 %v1167_v63, %v4444_v44 }
 0x42c   :  { %v1421_v6 = vmul.f32 %v3293_v8, %v1389_v9  ;;  %v1452_v16 = vadd.f32 %v1420_v2, %v1142_v59 }
 0x42d   :  { %v1334_v27 = vmul.f32 1.442695, %v1296_v55  ;;  %v1297_v35 = vmul.f32 0.5, %v1168_v19 }
 0x42e   :  { %v1453_v52 = vadd.f32 %v1421_v6, %v1146_v38 }
 0x42f   :  { %3298 = vpow2.f32 %v1334_v27  ;;  %v1336_v53 = vmul.f32 1.442695, %v1297_v35  ;;  %v1171_v37 = vpop.f32.mrb[32].mxu0 }
 0x430   :  { %v1173_v30 = vpop.f32.mrb[33].mxu0  ;;  %v1500_v45 = vpack.c.bf16 %v1453_v52, %v1452_v16  ;;  %v1172_v2 = vadd.f32 %v1171_v37, %v4450_v14  ;;  %v1396_v37 = vld [vmem:[%s5557_s1 + $0x50] sm:$0xff] }
 0x431   :  { %v3295_v40 = vpop.eup %3294  ;;  %3300 = vpow2.f32 %v1336_v53  ;;  %v1174_v13 = vadd.f32 %v1173_v30, %v4444_v44  ;;  %v1175_v24 = vpop.f32.mrb[34].mxu0 }
 0x432   :  { %v1177_v4 = vpop.f32.mrb[35].mxu0  ;;  %3089 = vmatmul.mubr.bf16.vlgmr.msra.gmra.mrb[48].mxu1 %v1500_v45  ;;  %v1422_v39 = vmul.f32 %v3295_v40, %v1390_v7  ;;  %v1176_v6 = vadd.f32 %v1175_v24, %v4450_v14  ;;  %v1397_v24 = vld [vmem:[%s5557_s1 + $0x58] sm:$0xff] }
 0x433   :  { %v3297_v1 = vpop.eup %3296  ;;  %v1298_v46 = vmul.f32 0.5, %v1174_v13  ;;  %v1178_v5 = vadd.f32 %v1177_v4, %v4444_v44 }
 0x434   :  { %v1423_v34 = vmul.f32 %v3297_v1, %v1391_v43  ;;  %v1454_v51 = vadd.f32 %v1422_v39, %v1152_v28 }
 0x435   :  { %v1338_v21 = vmul.f32 1.442695, %v1298_v46  ;;  %v1299_v31 = vmul.f32 0.5, %v1178_v5 }
 0x436   :  { %v1455_v20 = vadd.f32 %v1423_v34, %v1156_v50 }
 0x437   :  { %3302 = vpow2.f32 %v1338_v21  ;;  %v1340_v61 = vmul.f32 1.442695, %v1299_v31  ;;  %v1181_v41 = vpop.f32.mrb[36].mxu0 }
 0x438   :  { %v1183_v60 = vpop.f32.mrb[37].mxu0  ;;  %v1501_v58 = vpack.c.bf16 %v1455_v20, %v1454_v51  ;;  %v1182_v4 = vadd.f32 %v1181_v41, %v4450_v14  ;;  %v1398_v41 = vld [vmem:[%s5557_s1 + $0x60] sm:$0xff] }
 0x439   :  { %v3299_v3 = vpop.eup %3298  ;;  %3304 = vpow2.f32 %v1340_v61  ;;  %v1184_v32 = vadd.f32 %v1183_v60, %v4444_v44  ;;  %v1185_v22 = vpop.f32.mrb[38].mxu0 }
 0x43a   :  { %v1187_v26 = vpop.f32.mrb[39].mxu0  ;;  %3092 = vmatprep.mubr.bf16.mxu1 %v1501_v58  ;;  %v1424_v57 = vmul.f32 %v3299_v3, %v1392_v29  ;;  %v1186_v34 = vadd.f32 %v1185_v22, %v4450_v14  ;;  %v1399_v22 = vld [vmem:[%s5557_s1 + $0x68] sm:$0xff] }
 0x43b   :  { %v3301_v10 = vpop.eup %3300  ;;  %v1300_v15 = vmul.f32 0.5, %v1184_v32  ;;  %v1188_v36 = vadd.f32 %v1187_v26, %v4444_v44 }
 0x43c   :  { %v1425_v12 = vmul.f32 %v3301_v10, %v1393_v47  ;;  %v1456_v17 = vadd.f32 %v1424_v57, %v1162_v62 }
 0x43d   :  { %v1342_v25 = vmul.f32 1.442695, %v1300_v15  ;;  %v1301_v49 = vmul.f32 0.5, %v1188_v36 }
 0x43e   :  { %v1457_v33 = vadd.f32 %v1425_v12, %v1166_v23 }
 0x43f   :  { %3306 = vpow2.f32 %v1342_v25  ;;  %v1344_v11 = vmul.f32 1.442695, %v1301_v49  ;;  %v1191_v0 = vpop.f32.mrb[40].mxu0 }
 0x440   :  { %v1193_v48 = vpop.f32.mrb[41].mxu0  ;;  %v1502_v56 = vpack.c.bf16 %v1457_v33, %v1456_v17  ;;  %v1192_v26 = vadd.f32 %v1191_v0, %v4450_v14  ;;  %v1400_v0 = vld [vmem:[%s5557_s1 + $0x70] sm:$0xff] }
 0x441   :  { %v3303_v9 = vpop.eup %3302  ;;  %3308 = vpow2.f32 %v1344_v11  ;;  %v1194_v54 = vadd.f32 %v1193_v48, %v4444_v44  ;;  %v1195_v59 = vpop.f32.mrb[42].mxu0 }
 0x442   :  { %v1197_v63 = vpop.f32.mrb[43].mxu0  ;;  %3093 = vmatmul.mubr.bf16.gmra.mrb[52].mxu1 %v1502_v56  ;;  %v1426_v8 = vmul.f32 %v3303_v9, %v1394_v18  ;;  %v1196_v12 = vadd.f32 %v1195_v59, %v4450_v14  ;;  %v1401_v59 = vld [vmem:[%s5557_s1 + $0x78] sm:$0xff] }
 0x443   :  { %v3305_v55 = vpop.eup %3304  ;;  %v1302_v19 = vmul.f32 0.5, %v1194_v54  ;;  %v1198_v38 = vadd.f32 %v1197_v63, %v4444_v44 }
 0x444   :  { %v1427_v16 = vmul.f32 %v3305_v55, %v1395_v42  ;;  %v1458_v27 = vadd.f32 %v1426_v8, %v1172_v2 }
 0x445   :  { %v1346_v35 = vmul.f32 1.442695, %v1302_v19  ;;  %v1303_v52 = vmul.f32 0.5, %v1198_v38 }
 0x446   :  { %v1459_v53 = vadd.f32 %v1427_v16, %v1176_v6 }
 0x447   :  { %3310 = vpow2.f32 %v1346_v35  ;;  %v1348_v7 = vmul.f32 1.442695, %v1303_v52  ;;  %v1201_v30 = vpop.f32.mrb[44].mxu0 }
 0x448   :  { %v1203_v45 = vpop.f32.mrb[45].mxu0  ;;  %v1503_v40 = vpack.c.bf16 %v1459_v53, %v1458_v27  ;;  %v1202_v63 = vadd.f32 %v1201_v30, %v4450_v14  ;;  %v1402_v30 = vld [vmem:[%s5557_s1 + $0x80] sm:$0xff] }
 0x449   :  { %v3307_v13 = vpop.eup %3306  ;;  %3312 = vpow2.f32 %v1348_v7  ;;  %v1204_v43 = vadd.f32 %v1203_v45, %v4444_v44  ;;  %v1205_v28 = vpop.f32.mrb[46].mxu0 }
 0x44a   :  { %v1207_v39 = vpop.f32.mrb[47].mxu0  ;;  %3096 = vmatprep.mubr.bf16.mxu1 %v1503_v40  ;;  %v1428_v1 = vmul.f32 %v3307_v13, %v1396_v37  ;;  %v1206_v16 = vadd.f32 %v1205_v28, %v4450_v14  ;;  %v1403_v28 = vld [vmem:[%s5557_s1 + $0x88] sm:$0xff] }
 0x44b   :  { %v3309_v46 = vpop.eup %3308  ;;  %v1304_v5 = vmul.f32 0.5, %v1204_v43  ;;  %v1208_v50 = vadd.f32 %v1207_v39, %v4444_v44 }
 0x44c   :  { %v1429_v51 = vmul.f32 %v3309_v46, %v1397_v24  ;;  %v1460_v21 = vadd.f32 %v1428_v1, %v1182_v4 }
 0x44d   :  { %v1350_v31 = vmul.f32 1.442695, %v1304_v5  ;;  %v1305_v20 = vmul.f32 0.5, %v1208_v50 }
 0x44e   :  { %v1461_v61 = vadd.f32 %v1429_v51, %v1186_v34 }
 0x44f   :  { %3314 = vpow2.f32 %v1350_v31  ;;  %v1352_v29 = vmul.f32 1.442695, %v1305_v20  ;;  %v1211_v60 = vpop.f32.mrb[48].mxu0 }
 0x450   :  { %v1213_v58 = vpop.f32.mrb[49].mxu0  ;;  %v1504_v3 = vpack.c.bf16 %v1461_v61, %v1460_v21  ;;  %v1212_v39 = vadd.f32 %v1211_v60, %v4450_v14  ;;  %v1404_v60 = vld [vmem:[%s5557_s1 + $0x90] sm:$0xff] }
 0x451   :  { %v3311_v32 = vpop.eup %3310  ;;  %3316 = vpow2.f32 %v1352_v29  ;;  %v1214_v47 = vadd.f32 %v1213_v58, %v4444_v44  ;;  %v1215_v62 = vpop.f32.mrb[50].mxu0 }
 0x452   :  { %v1217_v57 = vpop.f32.mrb[51].mxu0  ;;  %3097 = vmatmul.mubr.bf16.gmra.mrb[56].mxu1 %v1504_v3  ;;  %v1430_v10 = vmul.f32 %v3311_v32, %v1398_v41  ;;  %v1216_v51 = vadd.f32 %v1215_v62, %v4450_v14  ;;  %v1405_v62 = vld [vmem:[%s5557_s1 + $0x98] sm:$0xff] }
 0x453   :  { %v3313_v15 = vpop.eup %3312  ;;  %v1306_v36 = vmul.f32 0.5, %v1214_v47  ;;  %v1218_v23 = vadd.f32 %v1217_v57, %v4444_v44 }
 0x454   :  { %v1431_v17 = vmul.f32 %v3313_v15, %v1399_v22  ;;  %v1462_v25 = vadd.f32 %v1430_v10, %v1192_v26 }
 0x455   :  { %v1354_v49 = vmul.f32 1.442695, %v1306_v36  ;;  %v1307_v33 = vmul.f32 0.5, %v1218_v23 }
 0x456   :  { %v1463_v11 = vadd.f32 %v1431_v17, %v1196_v12 }
 0x457   :  { %3318 = vpow2.f32 %v1354_v49  ;;  %v1356_v18 = vmul.f32 1.442695, %v1307_v33  ;;  %v1221_v48 = vpop.f32.mrb[52].mxu0 }
 0x458   :  { %v1223_v56 = vpop.f32.mrb[53].mxu0  ;;  %v1505_v9 = vpack.c.bf16 %v1463_v11, %v1462_v25  ;;  %v1222_v57 = vadd.f32 %v1221_v48, %v4450_v14  ;;  %v1406_v48 = vld [vmem:[%s5557_s1 + $0xa0] sm:$0xff] }
 0x459   :  { %v3315_v54 = vpop.eup %3314  ;;  %3320 = vpow2.f32 %v1356_v18  ;;  %v1224_v42 = vadd.f32 %v1223_v56, %v4444_v44  ;;  %v1225_v2 = vpop.f32.mrb[54].mxu0 }
 0x45a   :  { %v1227_v8 = vpop.f32.mrb[55].mxu0  ;;  %3100 = vmatprep.mubr.bf16.mxu1 %v1505_v9  ;;  %v1432_v55 = vmul.f32 %v3315_v54, %v1400_v0  ;;  %v1226_v17 = vadd.f32 %v1225_v2, %v4450_v14  ;;  %v1407_v2 = vld [vmem:[%s5557_s1 + $0xa8] sm:$0xff] }
 0x45b   :  { %v3317_v19 = vpop.eup %3316  ;;  %v1308_v38 = vmul.f32 0.5, %v1224_v42  ;;  %v1228_v6 = vadd.f32 %v1227_v8, %v4444_v44 }
 0x45c   :  { %v1433_v27 = vmul.f32 %v3317_v19, %v1401_v59  ;;  %v1464_v35 = vadd.f32 %v1432_v55, %v1202_v63 }
 0x45d   :  { %v1358_v52 = vmul.f32 1.442695, %v1308_v38  ;;  %v1309_v53 = vmul.f32 0.5, %v1228_v6 }
 0x45e   :  { %v1465_v7 = vadd.f32 %v1433_v27, %v1206_v16 }
 0x45f   :  { %3322 = vpow2.f32 %v1358_v52  ;;  %v1360_v37 = vmul.f32 1.442695, %v1309_v53  ;;  %v1231_v45 = vpop.f32.mrb[56].mxu0 }
 0x460   :  { %v1233_v40 = vpop.f32.mrb[57].mxu0  ;;  %v1506_v13 = vpack.c.bf16 %v1465_v7, %v1464_v35  ;;  %v1232_v8 = vadd.f32 %v1231_v45, %v4450_v14  ;;  %v1408_v45 = vld [vmem:[%s5557_s1 + $0xb0] sm:$0xff] }
 0x461   :  { %v3319_v43 = vpop.eup %3318  ;;  %3324 = vpow2.f32 %v1360_v37  ;;  %v1234_v24 = vadd.f32 %v1233_v40, %v4444_v44  ;;  %v1235_v4 = vpop.f32.mrb[58].mxu0 }
 0x462   :  { %v1237_v1 = vpop.f32.mrb[59].mxu0  ;;  %3101 = vmatmul.mubr.bf16.gmra.mrb[60].mxu1 %v1506_v13  ;;  %v1434_v46 = vmul.f32 %v3319_v43, %v1402_v30  ;;  %v1236_v27 = vadd.f32 %v1235_v4, %v4450_v14  ;;  %v1409_v4 = vld [vmem:[%s5557_s1 + $0xb8] sm:$0xff] }
 0x463   :  { %v3321_v5 = vpop.eup %3320  ;;  %v1310_v50 = vmul.f32 0.5, %v1234_v24  ;;  %v1238_v34 = vadd.f32 %v1237_v1, %v4444_v44 }
 0x464   :  { %v1435_v21 = vmul.f32 %v3321_v5, %v1403_v28  ;;  %v1466_v31 = vadd.f32 %v1434_v46, %v1212_v39 }
 0x465   :  { %v1362_v20 = vmul.f32 1.442695, %v1310_v50  ;;  %v1311_v61 = vmul.f32 0.5, %v1238_v34 }
 0x466   :  { %v1467_v29 = vadd.f32 %v1435_v21, %v1216_v51 }
 0x467   :  { %3326 = vpow2.f32 %v1362_v20  ;;  %v1364_v41 = vmul.f32 1.442695, %v1311_v61  ;;  %v1241_v58 = vpop.f32.mrb[60].mxu0 }
 0x468   :  { %v1243_v3 = vpop.f32.mrb[61].mxu0  ;;  %v1507_v32 = vpack.c.bf16 %v1467_v29, %v1466_v31  ;;  %v1242_v1 = vadd.f32 %v1241_v58, %v4450_v14  ;;  %v1410_v58 = vld [vmem:[%s5557_s1 + $0xc0] sm:$0xff] }
 0x469   :  { %v3323_v47 = vpop.eup %3322  ;;  %3328 = vpow2.f32 %v1364_v41  ;;  %v1244_v22 = vadd.f32 %v1243_v3, %v4444_v44  ;;  %v1245_v26 = vpop.f32.mrb[62].mxu0 }
 0x46a   :  { %v1247_v10 = vpop.f32.mrb[63].mxu0  ;;  %3104 = vmatprep.mubr.bf16.mxu1 %v1507_v32  ;;  %v1436_v15 = vmul.f32 %v3323_v47, %v1404_v60  ;;  %v1246_v21 = vadd.f32 %v1245_v26, %v4450_v14  ;;  %v1411_v26 = vld [vmem:[%s5557_s1 + $0xc8] sm:$0xff] }
 0x46b   :  { %v3325_v36 = vpop.eup %3324  ;;  %v1312_v23 = vmul.f32 0.5, %v1244_v22  ;;  %v1248_v12 = vadd.f32 %v1247_v10, %v4444_v44 }
 0x46c   :  { %v1437_v25 = vmul.f32 %v3325_v36, %v1405_v62  ;;  %v1468_v49 = vadd.f32 %v1436_v15, %v1222_v57 }
 0x46d   :  { %v1366_v33 = vmul.f32 1.442695, %v1312_v23  ;;  %v1313_v11 = vmul.f32 0.5, %v1248_v12 }
 0x46e   :  { %v1469_v18 = vadd.f32 %v1437_v25, %v1226_v17 }
 0x46f   :  { %3330 = vpow2.f32 %v1366_v33  ;;  %v1368_v0 = vmul.f32 1.442695, %v1313_v11  ;;  %v1251_v56 = vpop.f32.mrb[64].mxu0 }
 0x470   :  { %v1253_v9 = vpop.f32.mrb[65].mxu0  ;;  %v1508_v54 = vpack.c.bf16 %v1469_v18, %v1468_v49  ;;  %v1252_v10 = vadd.f32 %v1251_v56, %v4450_v14  ;;  %v1412_v56 = vld [vmem:[%s5557_s1 + $0xd0] sm:$0xff] }
 0x471   :  { %v3327_v42 = vpop.eup %3326  ;;  %3332 = vpow2.f32 %v1368_v0  ;;  %v1254_v59 = vadd.f32 %v1253_v9, %v4444_v44  ;;  %v1255_v63 = vpop.f32.mrb[66].mxu0 }
 0x472   :  { %v1257_v55 = vpop.f32.mrb[67].mxu0  ;;  %3105 = vmatmul.mubr.bf16.gmra.mrb[64].mxu1 %v1508_v54  ;;  %v1438_v19 = vmul.f32 %v3327_v42, %v1406_v48  ;;  %v1256_v25 = vadd.f32 %v1255_v63, %v4450_v14  ;;  %v1413_v63 = vld [vmem:[%s5557_s1 + $0xd8] sm:$0xff] }
 0x473   :  { %v3329_v38 = vpop.eup %3328  ;;  %v1314_v6 = vmul.f32 0.5, %v1254_v59  ;;  %v1258_v16 = vadd.f32 %v1257_v55, %v4444_v44 }
 0x474   :  { %v1439_v35 = vmul.f32 %v3329_v38, %v1407_v2  ;;  %v1470_v52 = vadd.f32 %v1438_v19, %v1232_v8 }
 0x475   :  { %v1370_v53 = vmul.f32 1.442695, %v1314_v6  ;;  %v1315_v7 = vmul.f32 0.5, %v1258_v16 }
 0x476   :  { %v1471_v37 = vadd.f32 %v1439_v35, %v1236_v27 }
 0x477   :  { %3334 = vpow2.f32 %v1370_v53  ;;  %v1372_v30 = vmul.f32 1.442695, %v1315_v7  ;;  %v1261_v40 = vpop.f32.mrb[68].mxu0 }
 0x478   :  { %v1263_v13 = vpop.f32.mrb[69].mxu0  ;;  %v1509_v43 = vpack.c.bf16 %v1471_v37, %v1470_v52  ;;  %v1262_v55 = vadd.f32 %v1261_v40, %v4450_v14  ;;  %v1414_v40 = vld [vmem:[%s5557_s1 + $0xe0] sm:$0xff] }
 0x479   :  { %v3331_v24 = vpop.eup %3330  ;;  %3336 = vpow2.f32 %v1372_v30  ;;  %v1264_v28 = vadd.f32 %v1263_v13, %v4444_v44  ;;  %v1265_v39 = vpop.f32.mrb[70].mxu0 }
 0x47a   :  { %v1267_v46 = vpop.f32.mrb[71].mxu0  ;;  %3108 = vmatprep.mubr.bf16.mxu1 %v1509_v43  ;;  %v1440_v5 = vmul.f32 %v3331_v24, %v1408_v45  ;;  %v1266_v35 = vadd.f32 %v1265_v39, %v4450_v14 }
 0x47b   :  { %v3333_v50 = vpop.eup %3332  ;;  %v1316_v34 = vmul.f32 0.5, %v1264_v28  ;;  %v1268_v51 = vadd.f32 %v1267_v46, %v4444_v44 }
 0x47c   :  { %v1441_v31 = vmul.f32 %v3333_v50, %v1409_v4  ;;  %v1472_v20 = vadd.f32 %v1440_v5, %v1242_v1  ;;  %v1416_v50 = vld [vmem:[%s5557_s1 + $0xf0] sm:$0xff] }
 0x47d   :  { %v1374_v61 = vmul.f32 1.442695, %v1316_v34  ;;  %v1317_v29 = vmul.f32 0.5, %v1268_v51 }
 0x47e   :  { %v1473_v41 = vadd.f32 %v1441_v31, %v1246_v21  ;;  %v1417_v21 = vld [vmem:[%s5557_s1 + $0xf8] sm:$0xff] }
 0x47f   :  { %3338 = vpow2.f32 %v1374_v61  ;;  %v1376_v60 = vmul.f32 1.442695, %v1317_v29  ;;  %v1271_v3 = vpop.f32.mrb[72].mxu0 }
 0x480   :  { %v1273_v32 = vpop.f32.mrb[73].mxu0  ;;  %v1510_v47 = vpack.c.bf16 %v1473_v41, %v1472_v20  ;;  %v1272_v24 = vadd.f32 %v1271_v3, %v4450_v14 }
 0x481   :  { %v3335_v22 = vpop.eup %3334  ;;  %3340 = vpow2.f32 %v1376_v60  ;;  %v1274_v62 = vadd.f32 %v1273_v32, %v4444_v44  ;;  %v1275_v57 = vpop.f32.mrb[74].mxu0 }
 0x482   :  { %v1277_v15 = vpop.f32.mrb[75].mxu0  ;;  %3109 = vmatmul.mubr.bf16.gmra.mrb[68].mxu1 %v1510_v47  ;;  %v1442_v36 = vmul.f32 %v3335_v22, %v1410_v58  ;;  %v1276_v4 = vadd.f32 %v1275_v57, %v4450_v14  ;;  %v4611_v57 = vld [vmem:[%s5559_s3 + $0x4] ss:$0 sm:$0xff] }
 0x483   :  { %v3337_v23 = vpop.eup %3336  ;;  %v1318_v12 = vmul.f32 0.5, %v1274_v62  ;;  %v1278_v17 = vadd.f32 %v1277_v15, %v4444_v44 }
 0x484   :  { %v1443_v49 = vmul.f32 %v3337_v23, %v1411_v26  ;;  %v1474_v33 = vadd.f32 %v1442_v36, %v1252_v10 }
 0x485   :  { %v1378_v11 = vmul.f32 1.442695, %v1318_v12  ;;  %v1319_v18 = vmul.f32 0.5, %v1278_v17 }
 0x486   :  { %v1475_v0 = vadd.f32 %v1443_v49, %v1256_v25 }
 0x487   :  { %3342 = vpow2.f32 %v1378_v11  ;;  %v1380_v48 = vmul.f32 1.442695, %v1319_v18  ;;  %v1281_v9 = vpop.f32.mrb[76].mxu0 }
 0x488   :  { %v1283_v54 = vpop.f32.mrb[77].mxu0  ;;  %v1511_v42 = vpack.c.bf16 %v1475_v0, %v1474_v33  ;;  %v1282_v31 = vadd.f32 %v1281_v9, %v4450_v14 }
 0x489   :  { %v3339_v59 = vpop.eup %3338  ;;  %3344 = vpow2.f32 %v1380_v48  ;;  %v1284_v2 = vadd.f32 %v1283_v54, %v4444_v44  ;;  %v1285_v8 = vpop.f32.mrb[78].mxu0 }
 0x48a   :  { %v1287_v19 = vpop.f32.mrb[79].mxu0  ;;  %3112 = vmatprep.mubr.bf16.mxu1 %v1511_v42  ;;  %v1444_v38 = vmul.f32 %v3339_v59, %v1412_v56  ;;  %v1286_v29 = vadd.f32 %v1285_v8, %v4450_v14 }
 0x48b   :  { %v3341_v6 = vpop.eup %3340  ;;  %v1320_v16 = vmul.f32 0.5, %v1284_v2  ;;  %v1288_v27 = vadd.f32 %v1287_v19, %v4444_v44  ;;  %v1415_v44 = vld [vmem:[%s5557_s1 + $0xe8] sm:$0xff] }
 0x48c   :  { %v1445_v52 = vmul.f32 %v3341_v6, %v1413_v63  ;;  %v1476_v53 = vadd.f32 %v1444_v38, %v1262_v55 }
 0x48d   :  { %v1382_v7 = vmul.f32 1.442695, %v1320_v16  ;;  %v1321_v37 = vmul.f32 0.5, %v1288_v27 }
 0x48e   :  { %v1477_v30 = vadd.f32 %v1445_v52, %v1266_v35 }
 0x48f   :  { %3346 = vpow2.f32 %v1382_v7  ;;  %v1384_v45 = vmul.f32 1.442695, %v1321_v37 }
 0x490   :  { %v1512_v13 = vpack.c.bf16 %v1477_v30, %v1476_v53 }
 0x491   :  { %v3343_v43 = vpop.eup %3342  ;;  %3348 = vpow2.f32 %v1384_v45 }
 0x492   :  { %3113 = vmatmul.mubr.bf16.gmra.mrb[72].mxu1 %v1512_v13  ;;  %v1446_v28 = vmul.f32 %v3343_v43, %v1414_v40 }
 0x493   :  { %v3345_v39 = vpop.eup %3344 }
 0x494   :  { %v1447_v1 = vmul.f32 %v3345_v39, %v1415_v44  ;;  %v1478_v46 = vadd.f32 %v1446_v28, %v1272_v24 }
 0x496   :  { %v1479_v5 = vadd.f32 %v1447_v1, %v1276_v4 }
 0x498   :  { %v1513_v34 = vpack.c.bf16 %v1479_v5, %v1478_v46 }
 0x499   :  { %v3347_v51 = vpop.eup %3346 }
 0x49a   :  { %3116 = vmatprep.mubr.bf16.mxu1 %v1513_v34  ;;  %v1448_v20 = vmul.f32 %v3347_v51, %v1416_v50 }
 0x49b   :  { %v3349_v61 = vpop.eup %3348 }
 0x49c   :  { %v1449_v41 = vmul.f32 %v3349_v61, %v1417_v21  ;;  %v1480_v60 = vadd.f32 %v1448_v20, %v1282_v31 }
 0x49e   :  { %v1481_v3 = vadd.f32 %v1449_v41, %v1286_v29 }
 0x4a0   :  { %v1514_v58 = vpack.c.bf16 %v1481_v3, %v1480_v60 }
 0x4a2   :  { %3117 = vmatmul.mubr.bf16.gmra.mrb[76].mxu1 %v1514_v58 }
 0x505   :  { %v3090_v32 = vpop.f32.mrb[48].mxu1 }
 0x506   :  { %v1603_v47 = vpop.f32.mrb[49].mxu1  ;;  %v4621_v23 = vadd.f32 %v3090_v32, %v4611_v57 }
 0x507   :  { %v3091_v22 = vpop.f32.mrb[50].mxu1  ;;  %v4617_v10 = vadd.f32 %v4611_v57, %v1603_v47 }
 0x508   :  { %v1606_v62 = vpop.f32.mrb[51].mxu1  ;;  %v1732_v33 = vmax.f32 %v4621_v23, 0.0  ;;  %v4630_v11 = vadd.f32 %v3091_v22, %v4611_v57 }
 0x509   :  { %v4614_v26 = vadd.f32 %v4611_v57, %v1606_v62  ;;  %v1730_v12 = vmax.f32 %v4617_v10, 0.0 }
 0x50a   :  { %v1733_v48 = vmax.f32 %v4630_v11, 0.0 }
 0x50b   :  { %v1731_v14 = vmax.f32 %v4614_v26, 0.0 }
 0x50d   :  { %v1762_v49 = vadd.f32 %v1731_v14, %v1730_v12 }
 0x50f   :  { %v1763_v0 = vadd.f32 %v1762_v49, %v1732_v33 }
 0x511   :  { %v1764_v54 = vadd.f32 %v1763_v0, %v1733_v48 }
 0x515   :  { %v3094_v15 = vpop.f32.mrb[52].mxu1 }
 0x516   :  { %v1619_v36 = vpop.f32.mrb[53].mxu1  ;;  %v4648_v2 = vadd.f32 %v3094_v15, %v4611_v57 }
 0x517   :  { %v3095_v17 = vpop.f32.mrb[54].mxu1  ;;  %v4633_v18 = vadd.f32 %v4611_v57, %v1619_v36 }
 0x518   :  { %v1622_v25 = vpop.f32.mrb[55].mxu1  ;;  %v1736_v6 = vmax.f32 %v4648_v2, 0.0  ;;  %v4654_v16 = vadd.f32 %v3095_v17, %v4611_v57 }
 0x519   :  { %v1734_v9 = vmax.f32 %v4633_v18, 0.0  ;;  %v4640_v56 = vadd.f32 %v4611_v57, %v1622_v25 }
 0x51a   :  { %v1737_v52 = vmax.f32 %v4654_v16, 0.0 }
 0x51b   :  { %v1765_v42 = vadd.f32 %v1764_v54, %v1734_v9  ;;  %v1735_v59 = vmax.f32 %v4640_v56, 0.0 }
 0x51d   :  { %v1766_v55 = vadd.f32 %v1765_v42, %v1735_v59 }
 0x51f   :  { %v1767_v35 = vadd.f32 %v1766_v55, %v1736_v6 }
 0x521   :  { %v1768_v37 = vadd.f32 %v1767_v35, %v1737_v52 }
 0x525   :  { %v3098_v8 = vpop.f32.mrb[56].mxu1 }
 0x526   :  { %v1635_v63 = vpop.f32.mrb[57].mxu1  ;;  %v4672_v40 = vadd.f32 %v3098_v8, %v4611_v57 }
 0x527   :  { %v3099_v19 = vpop.f32.mrb[58].mxu1  ;;  %v4657_v27 = vadd.f32 %v4611_v57, %v1635_v63 }
 0x528   :  { %v1638_v38 = vpop.f32.mrb[59].mxu1  ;;  %v5593_v24 = vmax.f32 %v4672_v40, 0.0  ;;  %v4678_v28 = vadd.f32 %v3099_v19, %v4611_v57 }
 0x529   :  { %v1738_v53 = vmax.f32 %v4657_v27, 0.0  ;;  %v4664_v7 = vadd.f32 %v4611_v57, %v1638_v38 }
 0x52a   :  { %v5592_v5 = vmax.f32 %v4678_v28, 0.0 }
 0x52b   :  { %v1769_v30 = vadd.f32 %v1768_v37, %v1738_v53  ;;  %v1739_v45 = vmax.f32 %v4664_v7, 0.0 }
 0x52d   :  { %v1770_v13 = vadd.f32 %v1769_v30, %v1739_v45 }
 0x52f   :  { %v1771_v46 = vadd.f32 %v1770_v13, %v5593_v24 }
 0x531   :  { %v1772_v51 = vadd.f32 %v1771_v46, %v5592_v5 }
 0x535   :  { %v3102_v43 = vpop.f32.mrb[60].mxu1 }
 0x536   :  { %v1651_v44 = vpop.f32.mrb[61].mxu1  ;;  %v4696_v20 = vadd.f32 %v3102_v43, %v4611_v57 }
 0x537   :  { %v4681_v39 = vadd.f32 %v4611_v57, %v1651_v44  ;;  %v3103_v4 = vpop.f32.mrb[62].mxu1 }
 0x538   :  { %v1654_v1 = vpop.f32.mrb[63].mxu1  ;;  %v5589_v29 = vmax.f32 %v4696_v20, 0.0  ;;  %v4702_v41 = vadd.f32 %v3103_v4, %v4611_v57 }
 0x539   :  { %v5591_v50 = vmax.f32 %v4681_v39, 0.0  ;;  %v4688_v34 = vadd.f32 %v4611_v57, %v1654_v1 }
 0x53a   :  { %v5588_v62 = vmax.f32 %v4702_v41, 0.0 }
 0x53b   :  { %v1773_v21 = vadd.f32 %v1772_v51, %v5591_v50  ;;  %v5590_v31 = vmax.f32 %v4688_v34, 0.0 }
 0x53d   :  { %v1774_v61 = vadd.f32 %v1773_v21, %v5590_v31 }
 0x53f   :  { %v1775_v58 = vadd.f32 %v1774_v61, %v5589_v29 }
 0x541   :  { %v1776_v17 = vadd.f32 %v1775_v58, %v5588_v62 }
 0x545   :  { %v3106_v60 = vpop.f32.mrb[64].mxu1 }
 0x546   :  { %v1667_v3 = vpop.f32.mrb[65].mxu1  ;;  %v4720_v0 = vadd.f32 %v3106_v60, %v4611_v57 }
 0x547   :  { %v4707_v32 = vadd.f32 %v4611_v57, %v1667_v3  ;;  %v3107_v47 = vpop.f32.mrb[66].mxu1 }
 0x548   :  { %v1670_v22 = vpop.f32.mrb[67].mxu1  ;;  %v5585_v42 = vmax.f32 %v4720_v0, 0.0  ;;  %v4726_v8 = vadd.f32 %v3107_v47, %v4611_v57  ;;  %v3266_v47 = vld [vmem:[#allocation2 + $0x14] ss:$28 sps:$4 sm:$0xff]  }
 0x549   :  { %v5587_v15 = vmax.f32 %v4707_v32, 0.0  ;;  %v4712_v36 = vadd.f32 %v4611_v57, %v1670_v22  ;;  %3120 = vmatprep.subr.bf16.mxu1 %v3266_v47 }
 0x54a   :  { %v5584_v38 = vmax.f32 %v4726_v8, 0.0  ;;  %3121 = vmatpush3.bf16.msra.mxu1 %v3266_v47 }
 0x54b   :  { %v1777_v25 = vadd.f32 %v1776_v17, %v5587_v15  ;;  %v5586_v49 = vmax.f32 %v4712_v36, 0.0 }
 0x54d   :  { %v1778_v54 = vadd.f32 %v1777_v25, %v5586_v49  ;;  %v3269_v49 = vld [vmem:[#allocation2 + $0xbc] ss:$28 sps:$4 sm:$0xff]  }
 0x54f   :  { %v1779_v63 = vadd.f32 %v1778_v54, %v5585_v42 }
 0x551   :  { %v1780_v44 = vadd.f32 %v1779_v63, %v5584_v38 }
 0x555   :  { %v3110_v55 = vpop.f32.mrb[68].mxu1 }
 0x556   :  { %v1683_v19 = vpop.f32.mrb[69].mxu1  ;;  %v4735_v13 = vadd.f32 %v3110_v55, %v4611_v57  ;;  %v3267_v55 = vld [vmem:[#allocation2 + $0x4c] ss:$28 sps:$4 sm:$0xff]  }
 0x557   :  { %v4732_v35 = vadd.f32 %v4611_v57, %v1683_v19  ;;  %v3111_v37 = vpop.f32.mrb[70].mxu1  ;;  %3122 = vmatprep.subr.bf16.mxu1 %v3267_v55 }
 0x558   :  { %v1686_v30 = vpop.f32.mrb[71].mxu1  ;;  %v4746_v46 = vadd.f32 %v3111_v37, %v4611_v57  ;;  %v1752_v21 = vmax.f32 %v4735_v13, 0.0  ;;  %3123 = vmatpush3.bf16.msra.mxu1 %v3267_v55 }
 0x559   :  { %v1750_v43 = vmax.f32 %v4732_v35, 0.0  ;;  %v4741_v4 = vadd.f32 %v4611_v57, %v1686_v30 }
 0x55a   :  { %v1753_v60 = vmax.f32 %v4746_v46, 0.0 }
 0x55b   :  { %v1781_v1 = vadd.f32 %v1780_v44, %v1750_v43  ;;  %v1751_v51 = vmax.f32 %v4741_v4, 0.0 }
 0x55d   :  { %v1782_v61 = vadd.f32 %v1781_v1, %v1751_v51 }
 0x55f   :  { %v1783_v3 = vadd.f32 %v1782_v61, %v1752_v21 }
 0x561   :  { %v1784_v58 = vadd.f32 %v1783_v3, %v1753_v60  ;;  %v3268_v3 = vld [vmem:[#allocation2 + $0x84] ss:$28 sps:$4 sm:$0xff]  }
 0x562   :  { %3124 = vmatprep.subr.bf16.mxu1 %v3268_v3 }
 0x563   :  { %3125 = vmatpush3.bf16.msra.mxu1 %v3268_v3 }
 0x564   :  { %3126 = vmatprep.subr.bf16.mxu1 %v3269_v49 }
 0x565   :  { %v3114_v22 = vpop.f32.mrb[72].mxu1 }
 0x566   :  { %v1699_v17 = vpop.f32.mrb[73].mxu1  ;;  %v1708_v19 = vadd.f32 %v3114_v22, %v4611_v57  ;;  %v3270_v22 = vld [vmem:[#allocation2 + $0xf4] ss:$28 sps:$4 sm:$0xff]  }
 0x567   :  { %v4758_v25 = vadd.f32 %v4611_v57, %v1699_v17  ;;  %v3115_v54 = vpop.f32.mrb[74].mxu1  ;;  %3127 = vmatpush3.bf16.msra.mxu1 %v3269_v49 }
 0x568   :  { %v1702_v63 = vpop.f32.mrb[75].mxu1  ;;  %v1711_v1 = vadd.f32 %v3115_v54, %v4611_v57  ;;  %v1756_v38 = vmax.f32 %v1708_v19, 0.0  ;;  %3128 = vmatprep.subr.bf16.mxu1 %v3270_v22 }
 0x569   :  { %v1754_v37 = vmax.f32 %v4758_v25, 0.0  ;;  %v1703_v30 = vadd.f32 %v4611_v57, %v1702_v63 }
 0x56a   :  { %v1757_v42 = vmax.f32 %v1711_v1, 0.0 }
 0x56b   :  { %v1785_v44 = vadd.f32 %v1784_v58, %v1754_v37  ;;  %v1755_v61 = vmax.f32 %v1703_v30, 0.0  ;;  %3129 = vmatpush3.bf16.msra.mxu1 %v3270_v22  ;;  %v3271_v30 = vld [vmem:[#allocation2 + $0x12c] ss:$28 sps:$4 sm:$0xff]   ;;  %v3273_v22 = vld [vmem:[#allocation2 + $0x19c] ss:$28 sps:$4 sm:$0xff]  }
 0x56c   :  { %3130 = vmatprep.subr.bf16.mxu1 %v3271_v30 }
 0x56d   :  { %v1786_v17 = vadd.f32 %v1785_v44, %v1755_v61 }
 0x56f   :  { %v1787_v47 = vadd.f32 %v1786_v17, %v1756_v38  ;;  %3131 = vmatpush3.bf16.msra.mxu1 %v3271_v30 }
 0x571   :  { %v1788_v15 = vadd.f32 %v1787_v47, %v1757_v42  ;;  %v3272_v47 = vld [vmem:[#allocation2 + $0x164] ss:$28 sps:$4 sm:$0xff]  }
 0x572   :  { %3132 = vmatprep.subr.bf16.mxu1 %v3272_v47 }
 0x573   :  { %3133 = vmatpush3.bf16.msra.mxu1 %v3272_v47 }
 0x574   :  { %3134 = vmatprep.subr.bf16.mxu1 %v3273_v22 }
 0x575   :  { %v3118_v25 = vpop.f32.mrb[76].mxu1 }
 0x576   :  { %v1715_v63 = vpop.f32.mrb[77].mxu1  ;;  %v1724_v19 = vadd.f32 %v3118_v25, %v4611_v57 }
 0x577   :  { %v1716_v58 = vadd.f32 %v4611_v57, %v1715_v63  ;;  %v3119_v54 = vpop.f32.mrb[78].mxu1  ;;  %3135 = vmatpush3.bf16.msra.mxu1 %v3273_v22 }
 0x578   :  { %v1718_v55 = vpop.f32.mrb[79].mxu1  ;;  %v1727_v17 = vadd.f32 %v3119_v54, %v4611_v57  ;;  %v1760_v62 = vmax.f32 %v1724_v19, 0.0  ;;  %v5628_v19 = vmax.f32 %v4672_v40, 0.0 }
 0x579   :  { %v1758_v44 = vmax.f32 %v1716_v58, 0.0  ;;  %v1719_v1 = vadd.f32 %v4611_v57, %v1718_v55 }
 0x57a   :  { %v1761_v63 = vmax.f32 %v1727_v17, 0.0  ;;  %v5630_v17 = vmax.f32 %v4681_v39, 0.0 }
 0x57b   :  { %v1789_v3 = vadd.f32 %v1788_v15, %v1758_v44  ;;  %v1759_v49 = vmax.f32 %v1719_v1, 0.0  ;;  %v5629_v1 = vmax.f32 %v4678_v28, 0.0 }
 0x57d   :  { %v1790_v29 = vadd.f32 %v1789_v3, %v1759_v49 }
 0x57f   :  { %v1791_v31 = vadd.f32 %v1790_v29, %v1760_v62 }
 0x581   :  { %v1792_v50 = vadd.f32 %v1791_v31, %v1761_v63 }
 0x583   :  { %v1793_v25 = vrot.slane %v1792_v50, 4 }
 0x585   :  { %v1794_v58 = vadd.f32 %v1793_v25, %v1792_v50 }
 0x587   :  { %v1795_v55 = vrot.slane %v1794_v58, 2 }
 0x589   :  { %v1796_v5 = vadd.f32 %v1795_v55, %v1794_v58  ;;  %v5632_v58 = vmax.f32 %v4696_v20, 0.0 }
 0x58b   :  { %v1797_v15 = vrot.slane %v1796_v5, 1 }
 0x58d   :  { %v1798_v24 = vadd.f32 %v1797_v15, %v1796_v5 }
 0x58f   :  { %v4768_v57 = vmul.f32 0.00390625, %v1798_v24 }
 0x591   :  { %v4773_v54 = vsub.f32 %v1750_v43, %v4768_v57  ;;  %v4778_v29 = vsub.f32 %v1751_v51, %v4768_v57  ;;  %v4783_v50 = vsub.f32 %v1752_v21, %v4768_v57  ;;  %v4788_v24 = vsub.f32 %v1753_v60, %v4768_v57 }
 0x592   :  { %v4791_v5 = vsub.f32 %v1754_v37, %v4768_v57  ;;  %v4794_v31 = vsub.f32 %v1755_v61, %v4768_v57  ;;  %v4797_v35 = vsub.f32 %v1756_v38, %v4768_v57  ;;  %v4800_v43 = vsub.f32 %v1757_v42, %v4768_v57 }
 0x593   :  { %v4803_v13 = vsub.f32 %v1758_v44, %v4768_v57  ;;  %v4806_v4 = vsub.f32 %v1759_v49, %v4768_v57  ;;  %v4809_v46 = vsub.f32 %v1760_v62, %v4768_v57  ;;  %v4812_v51 = vsub.f32 %v1761_v63, %v4768_v57 }
 0x594   :  { %v4817_v38 = vsub.f32 %v1730_v12, %v4768_v57  ;;  %v4822_v42 = vsub.f32 %v1731_v14, %v4768_v57  ;;  %v4827_v21 = vsub.f32 %v1732_v33, %v4768_v57  ;;  %v4836_v10 = vsub.f32 %v1733_v48, %v4768_v57 }
 0x595   :  { %v4841_v26 = vsub.f32 %v1734_v9, %v4768_v57  ;;  %v4848_v12 = vsub.f32 %v1735_v59, %v4768_v57  ;;  %v4855_v48 = vsub.f32 %v1736_v6, %v4768_v57  ;;  %v4862_v37 = vsub.f32 %v1737_v52, %v4768_v57 }
 0x596   :  { %v1832_v62 = vmul.f32 %v4817_v38, %v4817_v38  ;;  %v1833_v60 = vmul.f32 %v4822_v42, %v4822_v42  ;;  %v1834_v14 = vmul.f32 %v4827_v21, %v4827_v21  ;;  %v1835_v33 = vmul.f32 %v4836_v10, %v4836_v10 }
 0x597   :  { %v1836_v18 = vmul.f32 %v4841_v26, %v4841_v26  ;;  %v1837_v56 = vmul.f32 %v4848_v12, %v4848_v12  ;;  %v4869_v61 = vsub.f32 %v1738_v53, %v4768_v57  ;;  %v1838_v2 = vmul.f32 %v4855_v48, %v4855_v48 }
 0x598   :  { %v1864_v23 = vadd.f32 %v1833_v60, %v1832_v62  ;;  %v4876_v30 = vsub.f32 %v1739_v45, %v4768_v57  ;;  %v1839_v16 = vmul.f32 %v4862_v37, %v4862_v37  ;;  %v4883_v44 = vsub.f32 %v5628_v19, %v4768_v57 }
 0x599   :  { %v1840_v27 = vmul.f32 %v4869_v61, %v4869_v61  ;;  %v4890_v3 = vsub.f32 %v5629_v1, %v4768_v57  ;;  %v4897_v49 = vsub.f32 %v5630_v17, %v4768_v57  ;;  %v5631_v63 = vmax.f32 %v4688_v34, 0.0 }
 0x59a   :  { %v1865_v11 = vadd.f32 %v1864_v23, %v1834_v14  ;;  %v1841_v7 = vmul.f32 %v4876_v30, %v4876_v30  ;;  %v1842_v40 = vmul.f32 %v4883_v44, %v4883_v44  ;;  %v4911_v55 = vsub.f32 %v5632_v58, %v4768_v57 }
 0x59b   :  { %v4904_v22 = vsub.f32 %v5631_v63, %v4768_v57  ;;  %v1843_v28 = vmul.f32 %v4890_v3, %v4890_v3  ;;  %v1844_v39 = vmul.f32 %v4897_v49, %v4897_v49  ;;  %v5633_v62 = vmax.f32 %v4702_v41, 0.0 }
 0x59c   :  { %v1866_v9 = vadd.f32 %v1865_v11, %v1835_v33  ;;  %v5634_v23 = vmax.f32 %v4707_v32, 0.0  ;;  %v1846_v20 = vmul.f32 %v4911_v55, %v4911_v55  ;;  %v1854_v17 = vmul.f32 %v4783_v50, %v4783_v50 }
 0x59d   :  { %v4918_v60 = vsub.f32 %v5633_v62, %v4768_v57  ;;  %v1845_v34 = vmul.f32 %v4904_v22, %v4904_v22  ;;  %v1857_v58 = vmul.f32 %v4794_v31, %v4794_v31 }
 0x59e   :  { %v1867_v59 = vadd.f32 %v1866_v9, %v1836_v18  ;;  %v4925_v33 = vsub.f32 %v5634_v23, %v4768_v57  ;;  %v5635_v18 = vmax.f32 %v4712_v36, 0.0  ;;  %v1860_v23 = vmul.f32 %v4803_v13, %v4803_v13 }
 0x59f   :  { %v1847_v41 = vmul.f32 %v4918_v60, %v4918_v60 }
 0x5a0   :  { %v1868_v6 = vadd.f32 %v1867_v59, %v1837_v56  ;;  %v4932_v9 = vsub.f32 %v5635_v18, %v4768_v57  ;;  %v5636_v59 = vmax.f32 %v4720_v0, 0.0  ;;  %v1848_v32 = vmul.f32 %v4925_v33, %v4925_v33 }
 0x5a2   :  { %v1869_v52 = vadd.f32 %v1868_v6, %v1838_v2  ;;  %v4939_v2 = vsub.f32 %v5636_v59, %v4768_v57  ;;  %v1849_v36 = vmul.f32 %v4932_v9, %v4932_v9  ;;  %v1863_v59 = vmul.f32 %v4812_v51, %v4812_v51 }
 0x5a4   :  { %v1870_v53 = vadd.f32 %v1869_v52, %v1839_v16  ;;  %v5637_v16 = vmax.f32 %v4726_v8, 0.0  ;;  %v1853_v8 = vmul.f32 %v4778_v29, %v4778_v29 }
 0x5a6   :  { %v1871_v45 = vadd.f32 %v1870_v53, %v1840_v27  ;;  %v4946_v52 = vsub.f32 %v5637_v16, %v4768_v57  ;;  %v1850_v27 = vmul.f32 %v4939_v2, %v4939_v2 }
 0x5a8   :  { %v1872_v47 = vadd.f32 %v1871_v45, %v1841_v7  ;;  %v1851_v0 = vmul.f32 %v4946_v52, %v4946_v52  ;;  %v1852_v7 = vmul.f32 %v4773_v54, %v4773_v54 }
 0x5aa   :  { %v1873_v25 = vadd.f32 %v1872_v47, %v1842_v40  ;;  %v1855_v47 = vmul.f32 %v4788_v24, %v4788_v24 }
 0x5ac   :  { %v1874_v15 = vadd.f32 %v1873_v25, %v1843_v28  ;;  %v1856_v28 = vmul.f32 %v4791_v5, %v4791_v5 }
 0x5ae   :  { %v1875_v14 = vadd.f32 %v1874_v15, %v1844_v39  ;;  %v1858_v15 = vmul.f32 %v4797_v35, %v4797_v35 }
 0x5b0   :  { %v1876_v11 = vadd.f32 %v1875_v14, %v1845_v34  ;;  %v1859_v34 = vmul.f32 %v4800_v43, %v4800_v43 }
 0x5b2   :  { %v1877_v56 = vadd.f32 %v1876_v11, %v1846_v20  ;;  %v1861_v11 = vmul.f32 %v4806_v4, %v4806_v4 }
 0x5b4   :  { %v1878_v6 = vadd.f32 %v1877_v56, %v1847_v41  ;;  %v1862_v41 = vmul.f32 %v4809_v46, %v4809_v46 }
 0x5b6   :  { %v1879_v19 = vadd.f32 %v1878_v6, %v1848_v32 }
 0x5b8   :  { %v1880_v53 = vadd.f32 %v1879_v19, %v1849_v36 }
 0x5ba   :  { %v1881_v1 = vadd.f32 %v1880_v53, %v1850_v27 }
 0x5bc   :  { %v1882_v45 = vadd.f32 %v1881_v1, %v1851_v0 }
 0x5be   :  { %v1883_v57 = vadd.f32 %v1882_v45, %v1852_v7 }
 0x5c0   :  { %v1884_v40 = vadd.f32 %v1883_v57, %v1853_v8 }
 0x5c2   :  { %v1885_v63 = vadd.f32 %v1884_v40, %v1854_v17 }
 0x5c4   :  { %v1886_v25 = vadd.f32 %v1885_v63, %v1855_v47 }
 0x5c6   :  { %v1887_v39 = vadd.f32 %v1886_v25, %v1856_v28 }
 0x5c8   :  { %v1888_v62 = vadd.f32 %v1887_v39, %v1857_v58 }
 0x5ca   :  { %v1889_v14 = vadd.f32 %v1888_v62, %v1858_v15 }
 0x5cc   :  { %v1890_v20 = vadd.f32 %v1889_v14, %v1859_v34 }
 0x5ce   :  { %v1891_v18 = vadd.f32 %v1890_v20, %v1860_v23 }
 0x5d0   :  { %v1892_v56 = vadd.f32 %v1891_v18, %v1861_v11 }
 0x5d2   :  { %v1893_v32 = vadd.f32 %v1892_v56, %v1862_v41 }
 0x5d4   :  { %v1894_v6 = vadd.f32 %v1893_v32, %v1863_v59 }
 0x5d6   :  { %v1895_v16 = vrot.slane %v1894_v6, 4 }
 0x5d8   :  { %v1896_v36 = vadd.f32 %v1895_v16, %v1894_v6  ;;  %v3274_v6 = vld [vmem:[#allocation2 + $0x18] ss:$28 sps:$4 sm:$0xff]  }
 0x5d9   :  { %3168 = vmatprep.subr.bf16.mxu0 %v3274_v6 }
 0x5da   :  { %v1897_v19 = vrot.slane %v1896_v36, 2  ;;  %3169 = vmatpush3.bf16.msra.mxu0 %v3274_v6 }
 0x5dc   :  { %v1898_v27 = vadd.f32 %v1897_v19, %v1896_v36 }
 0x5de   :  { %v1899_v53 = vrot.slane %v1898_v27, 1 }
 0x5e0   :  { %v1900_v0 = vadd.f32 %v1899_v53, %v1898_v27 }
 0x5e2   :  { %v1901_v1 = vmul.f32 0.00390625, %v1900_v0 }
 0x5e4   :  { %v1902_v7 = vadd.f32 1e-05, %v1901_v1 }
 0x5e6   :  { %3350 = vrsqrt.f32 %v1902_v7 }
 0x5f0   :  { %v3351_v45 = vpop.eup %3350 }
 0x5f1   :  { %v1904_v8 = vmul.f32 %v3351_v45, %v4817_v38  ;;  %v1905_v57 = vmul.f32 %v3351_v45, %v4822_v42  ;;  %v1906_v17 = vmul.f32 %v3351_v45, %v4827_v21  ;;  %v1907_v40 = vmul.f32 %v3351_v45, %v4836_v10 }
 0x5f2   :  { %v1908_v47 = vmul.f32 %v3351_v45, %v4841_v26  ;;  %v1909_v63 = vmul.f32 %v3351_v45, %v4848_v12  ;;  %v1910_v39 = vmul.f32 %v3351_v45, %v4855_v48  ;;  %v1911_v38 = vmul.f32 %v3351_v45, %v4862_v37 }
 0x5f3   :  { %v1954_v28 = vpack.c.bf16 %v1907_v40, %v1906_v17  ;;  %v1953_v25 = vpack.c.bf16 %v1905_v57, %v1904_v8  ;;  %v1912_v42 = vmul.f32 %v3351_v45, %v4869_v61  ;;  %v1913_v21 = vmul.f32 %v3351_v45, %v4876_v30 }
 0x5f4   :  { %v1955_v58 = vpack.c.bf16 %v1909_v63, %v1908_v47  ;;  %v1956_v15 = vpack.c.bf16 %v1911_v38, %v1910_v39  ;;  %v1914_v26 = vmul.f32 %v3351_v45, %v4883_v44  ;;  %v1915_v12 = vmul.f32 %v3351_v45, %v4890_v3 }
 0x5f5   :  { %3136 = vmatprep.mubr.bf16.mxu1 %v1953_v25  ;;  %v1957_v10 = vpack.c.bf16 %v1913_v21, %v1912_v42  ;;  %v1916_v62 = vmul.f32 %v3351_v45, %v4897_v49  ;;  %v1917_v34 = vmul.f32 %v3351_v45, %v4904_v22  ;;  %v1918_v37 = vmul.f32 %v3351_v45, %v4911_v55 }
 0x5f6   :  { %3137 = vmatmul.mubr.bf16.vlgmr.msra.gmra.mrb[80].mxu1 %v1954_v28  ;;  %v1958_v14 = vpack.c.bf16 %v1915_v12, %v1914_v26  ;;  %v1919_v61 = vmul.f32 %v3351_v45, %v4918_v60  ;;  %v1920_v30 = vmul.f32 %v3351_v45, %v4925_v33  ;;  %v1921_v23 = vmul.f32 %v3351_v45, %v4932_v9 }
 0x5f7   :  { %3140 = vmatprep.mubr.bf16.mxu1 %v1955_v58  ;;  %v1959_v48 = vpack.c.bf16 %v1917_v34, %v1916_v62  ;;  %v1922_v3 = vmul.f32 %v3351_v45, %v4939_v2  ;;  %v1923_v49 = vmul.f32 %v3351_v45, %v4946_v52  ;;  %v1924_v22 = vmul.f32 %v3351_v45, %v4773_v54 }
 0x5f8   :  { %v1960_v20 = vpack.c.bf16 %v1919_v61, %v1918_v37  ;;  %v1961_v44 = vpack.c.bf16 %v1921_v23, %v1920_v30  ;;  %v1925_v11 = vmul.f32 %v3351_v45, %v4778_v29  ;;  %v1926_v60 = vmul.f32 %v3351_v45, %v4783_v50 }
 0x5f9   :  { %v1962_v18 = vpack.c.bf16 %v1923_v49, %v1922_v3  ;;  %v1927_v33 = vmul.f32 %v3351_v45, %v4788_v24  ;;  %v1928_v9 = vmul.f32 %v3351_v45, %v4791_v5  ;;  %v1929_v41 = vmul.f32 %v3351_v45, %v4794_v31 }
 0x5fa   :  { %v1963_v55 = vpack.c.bf16 %v1925_v11, %v1924_v22  ;;  %v1930_v54 = vmul.f32 %v3351_v45, %v4797_v35  ;;  %v1931_v29 = vmul.f32 %v3351_v45, %v4800_v43  ;;  %v1933_v52 = vmul.f32 %v3351_v45, %v4806_v4  ;;  %v5013_v35 = vld [vmem:[%s5559_s3 + $0x5] ss:$0 sm:$0xff] }
 0x5fb   :  { %v1964_v56 = vpack.c.bf16 %v1927_v33, %v1926_v60  ;;  %v1965_v2 = vpack.c.bf16 %v1929_v41, %v1928_v9  ;;  %v1932_v59 = vmul.f32 %v3351_v45, %v4803_v13  ;;  %v1934_v24 = vmul.f32 %v3351_v45, %v4809_v46 }
 0x5fc   :  { %v1966_v32 = vpack.c.bf16 %v1931_v29, %v1930_v54  ;;  %v1935_v5 = vmul.f32 %v3351_v45, %v4812_v51 }
 0x5fd   :  { %v1967_v50 = vpack.c.bf16 %v1933_v52, %v1932_v59 }
 0x5fe   :  { %3141 = vmatmul.mubr.bf16.gmra.mrb[84].mxu1 %v1956_v15  ;;  %v1968_v31 = vpack.c.bf16 %v1935_v5, %v1934_v24 }
 0x5ff   :  { %3144 = vmatprep.mubr.bf16.mxu1 %v1957_v10 }
 0x606   :  { %3145 = vmatmul.mubr.bf16.gmra.mrb[88].mxu1 %v1958_v14 }
 0x607   :  { %3148 = vmatprep.mubr.bf16.mxu1 %v1959_v48 }
 0x60e   :  { %3149 = vmatmul.mubr.bf16.gmra.mrb[92].mxu1 %v1960_v20 }
 0x60f   :  { %3152 = vmatprep.mubr.bf16.mxu1 %v1961_v44 }
 0x616   :  { %3153 = vmatmul.mubr.bf16.gmra.mrb[96].mxu1 %v1962_v18 }
 0x617   :  { %3156 = vmatprep.mubr.bf16.mxu1 %v1963_v55 }
 0x61e   :  { %3157 = vmatmul.mubr.bf16.gmra.mrb[100].mxu1 %v1964_v56 }
 0x61f   :  { %3160 = vmatprep.mubr.bf16.mxu1 %v1965_v2 }
 0x626   :  { %3161 = vmatmul.mubr.bf16.gmra.mrb[104].mxu1 %v1966_v32 }
 0x627   :  { %3164 = vmatprep.mubr.bf16.mxu1 %v1967_v50 }
 0x62e   :  { %3165 = vmatmul.mubr.bf16.gmra.mrb[108].mxu1 %v1968_v31 }
 0x6c9   :  { %v3138_v43 = vpop.f32.mrb[80].mxu1 }
 0x6ca   :  { %v2057_v13 = vpop.f32.mrb[81].mxu1  ;;  %v5019_v46 = vadd.f32 %v3138_v43, %v5013_v35 }
 0x6cb   :  { %v5016_v4 = vadd.f32 %v5013_v35, %v2057_v13  ;;  %v3139_v16 = vpop.f32.mrb[82].mxu1 }
 0x6cc   :  { %v2060_v36 = vpop.f32.mrb[83].mxu1  ;;  %v5026_v27 = vadd.f32 %v3139_v16, %v5013_v35  ;;  %v5599_v0 = vmax.f32 %v5019_v46, 0.0 }
 0x6cd   :  { %v5022_v51 = vadd.f32 %v5013_v35, %v2060_v36  ;;  %v5601_v19 = vmax.f32 %v5016_v4, 0.0 }
 0x6ce   :  { %v5598_v8 = vmax.f32 %v5026_v27, 0.0 }
 0x6cf   :  { %v5600_v53 = vmax.f32 %v5022_v51, 0.0 }
 0x6d1   :  { %v2216_v1 = vadd.f32 %v5600_v53, %v5601_v19  ;;  %v3142_v7 = vpop.f32.mrb[84].mxu1 }
 0x6d2   :  { %v2073_v45 = vpop.f32.mrb[85].mxu1  ;;  %v5041_v63 = vadd.f32 %v3142_v7, %v5013_v35 }
 0x6d3   :  { %v2217_v57 = vadd.f32 %v2216_v1, %v5599_v0  ;;  %v5038_v17 = vadd.f32 %v5013_v35, %v2073_v45  ;;  %v3143_v40 = vpop.f32.mrb[86].mxu1 }
 0x6d4   :  { %v2076_v47 = vpop.f32.mrb[87].mxu1  ;;  %v5052_v38 = vadd.f32 %v3143_v40, %v5013_v35  ;;  %v5595_v21 = vmax.f32 %v5041_v63, 0.0 }
 0x6d5   :  { %v5597_v28 = vmax.f32 %v5038_v17, 0.0  ;;  %v2218_v25 = vadd.f32 %v2217_v57, %v5598_v8  ;;  %v5047_v58 = vadd.f32 %v5013_v35, %v2076_v47 }
 0x6d6   :  { %v5594_v12 = vmax.f32 %v5052_v38, 0.0 }
 0x6d7   :  { %v2219_v39 = vadd.f32 %v2218_v25, %v5597_v28  ;;  %v5596_v42 = vmax.f32 %v5047_v58, 0.0 }
 0x6d9   :  { %v2220_v15 = vadd.f32 %v2219_v39, %v5596_v42  ;;  %v3146_v10 = vpop.f32.mrb[88].mxu1 }
 0x6da   :  { %v2089_v26 = vpop.f32.mrb[89].mxu1  ;;  %v5065_v37 = vadd.f32 %v3146_v10, %v5013_v35 }
 0x6db   :  { %v2221_v62 = vadd.f32 %v2220_v15, %v5595_v21  ;;  %v5062_v34 = vadd.f32 %v5013_v35, %v2089_v26  ;;  %v3147_v14 = vpop.f32.mrb[90].mxu1 }
 0x6dc   :  { %v2092_v48 = vpop.f32.mrb[91].mxu1  ;;  %v5076_v44 = vadd.f32 %v3147_v14, %v5013_v35  ;;  %v2194_v49 = vmax.f32 %v5065_v37, 0.0 }
 0x6dd   :  { %v2192_v61 = vmax.f32 %v5062_v34, 0.0  ;;  %v2222_v30 = vadd.f32 %v2221_v62, %v5594_v12  ;;  %v5071_v23 = vadd.f32 %v5013_v35, %v2092_v48 }
 0x6de   :  { %v2195_v55 = vmax.f32 %v5076_v44, 0.0 }
 0x6df   :  { %v2223_v20 = vadd.f32 %v2222_v30, %v2192_v61  ;;  %v2193_v3 = vmax.f32 %v5071_v23, 0.0 }
 0x6e1   :  { %v2224_v22 = vadd.f32 %v2223_v20, %v2193_v3  ;;  %v3150_v11 = vpop.f32.mrb[92].mxu1 }
 0x6e2   :  { %v2105_v18 = vpop.f32.mrb[93].mxu1  ;;  %v5089_v56 = vadd.f32 %v3150_v11, %v5013_v35 }
 0x6e3   :  { %v2225_v60 = vadd.f32 %v2224_v22, %v2194_v49  ;;  %v5086_v33 = vadd.f32 %v5013_v35, %v2105_v18  ;;  %v3151_v9 = vpop.f32.mrb[94].mxu1  ;;  %v3275_v22 = vld [vmem:[#allocation2 + $0x50] ss:$28 sps:$4 sm:$0xff]  }
 0x6e4   :  { %v2108_v41 = vpop.f32.mrb[95].mxu1  ;;  %v5100_v59 = vadd.f32 %v3151_v9, %v5013_v35  ;;  %v2198_v50 = vmax.f32 %v5089_v56, 0.0  ;;  %3170 = vmatprep.subr.bf16.mxu0 %v3275_v22 }
 0x6e5   :  { %v2196_v2 = vmax.f32 %v5086_v33, 0.0  ;;  %v2226_v54 = vadd.f32 %v2225_v60, %v2195_v55  ;;  %v5095_v29 = vadd.f32 %v5013_v35, %v2108_v41  ;;  %3171 = vmatpush3.bf16.msra.mxu0 %v3275_v22 }
 0x6e6   :  { %v2199_v6 = vmax.f32 %v5100_v59, 0.0 }
 0x6e7   :  { %v2227_v52 = vadd.f32 %v2226_v54, %v2196_v2  ;;  %v2197_v32 = vmax.f32 %v5095_v29, 0.0 }
 0x6e9   :  { %v2228_v24 = vadd.f32 %v2227_v52, %v2197_v32  ;;  %v3154_v5 = vpop.f32.mrb[96].mxu1 }
 0x6ea   :  { %v2121_v31 = vpop.f32.mrb[97].mxu1  ;;  %v5113_v1 = vadd.f32 %v3154_v5, %v5013_v35 }
 0x6eb   :  { %v2229_v43 = vadd.f32 %v2228_v24, %v2198_v50  ;;  %v5110_v13 = vadd.f32 %v5013_v35, %v2121_v31  ;;  %v3155_v16 = vpop.f32.mrb[98].mxu1  ;;  %v3276_v24 = vld [vmem:[#allocation2 + $0x88] ss:$28 sps:$4 sm:$0xff]  }
 0x6ec   :  { %v2124_v36 = vpop.f32.mrb[99].mxu1  ;;  %v5124_v47 = vadd.f32 %v3155_v16, %v5013_v35  ;;  %v2202_v39 = vmax.f32 %v5113_v1, 0.0  ;;  %3172 = vmatprep.subr.bf16.mxu0 %v3276_v24 }
 0x6ed   :  { %v2200_v7 = vmax.f32 %v5110_v13, 0.0  ;;  %v2230_v45 = vadd.f32 %v2229_v43, %v2199_v6  ;;  %v5119_v57 = vadd.f32 %v5013_v35, %v2124_v36  ;;  %3173 = vmatpush3.bf16.msra.mxu0 %v3276_v24 }
 0x6ee   :  { %v2203_v62 = vmax.f32 %v5124_v47, 0.0 }
 0x6ef   :  { %v2231_v40 = vadd.f32 %v2230_v45, %v2200_v7  ;;  %v2201_v25 = vmax.f32 %v5119_v57, 0.0 }
 0x6f1   :  { %v2232_v15 = vadd.f32 %v2231_v40, %v2201_v25  ;;  %v3158_v10 = vpop.f32.mrb[100].mxu1 }
 0x6f2   :  { %v2137_v26 = vpop.f32.mrb[101].mxu1  ;;  %v5137_v11 = vadd.f32 %v3158_v10, %v5013_v35 }
 0x6f3   :  { %v2233_v14 = vadd.f32 %v2232_v15, %v2202_v39  ;;  %v5134_v48 = vadd.f32 %v5013_v35, %v2137_v26  ;;  %v3159_v30 = vpop.f32.mrb[102].mxu1  ;;  %v3277_v26 = vld [vmem:[#allocation2 + $0xc0] ss:$28 sps:$4 sm:$0xff]  }
 0x6f4   :  { %v2140_v20 = vpop.f32.mrb[103].mxu1  ;;  %v5148_v54 = vadd.f32 %v3159_v30, %v5013_v35  ;;  %v5604_v5 = vmax.f32 %v5137_v11, 0.0  ;;  %3174 = vmatprep.subr.bf16.mxu0 %v3277_v26  ;;  %v5638_v56 = vmax.f32 %v5137_v11, 0.0 }
 0x6f5   :  { %v2204_v18 = vmax.f32 %v5134_v48, 0.0  ;;  %v2234_v60 = vadd.f32 %v2233_v14, %v2203_v62  ;;  %v5143_v9 = vadd.f32 %v5013_v35, %v2140_v20  ;;  %3175 = vmatpush3.bf16.msra.mxu0 %v3277_v26  ;;  %v5642_v48 = vmax.f32 %v5022_v51, 0.0 }
 0x6f6   :  { %v5603_v36 = vmax.f32 %v5148_v54, 0.0  ;;  %v5639_v29 = vmax.f32 %v5148_v54, 0.0 }
 0x6f7   :  { %v2235_v41 = vadd.f32 %v2234_v60, %v2204_v18  ;;  %v2205_v52 = vmax.f32 %v5143_v9, 0.0 }
 0x6f9   :  { %v2236_v31 = vadd.f32 %v2235_v41, %v2205_v52  ;;  %v3162_v43 = vpop.f32.mrb[104].mxu1 }
 0x6fa   :  { %v2153_v16 = vpop.f32.mrb[105].mxu1  ;;  %v5161_v14 = vadd.f32 %v3162_v43, %v5013_v35 }
 0x6fb   :  { %v2237_v45 = vadd.f32 %v2236_v31, %v5604_v5  ;;  %v5158_v40 = vadd.f32 %v5013_v35, %v2153_v16  ;;  %v3163_v15 = vpop.f32.mrb[106].mxu1  ;;  %v3278_v31 = vld [vmem:[#allocation2 + $0xf8] ss:$28 sps:$4 sm:$0xff]  }
 0x6fc   :  { %v2156_v10 = vpop.f32.mrb[107].mxu1  ;;  %v5172_v41 = vadd.f32 %v3163_v15, %v5013_v35  ;;  %v2210_v43 = vmax.f32 %v5161_v14, 0.0  ;;  %3176 = vmatprep.subr.bf16.mxu0 %v3278_v31  ;;  %v3279_v15 = vld [vmem:[#allocation2 + $0x130] ss:$28 sps:$4 sm:$0xff]  }
 0x6fd   :  { %v5602_v30 = vmax.f32 %v5158_v40, 0.0  ;;  %v2238_v20 = vadd.f32 %v2237_v45, %v5603_v36  ;;  %v5167_v22 = vadd.f32 %v5013_v35, %v2156_v10  ;;  %3177 = vmatpush3.bf16.msra.mxu0 %v3278_v31 }
 0x6fe   :  { %v2211_v45 = vmax.f32 %v5172_v41, 0.0  ;;  %3178 = vmatprep.subr.bf16.mxu0 %v3279_v15  ;;  %v3280_v41 = vld [vmem:[#allocation2 + $0x168] ss:$28 sps:$4 sm:$0xff]  }
 0x6ff   :  { %v2239_v60 = vadd.f32 %v2238_v20, %v5602_v30  ;;  %v2209_v24 = vmax.f32 %v5167_v22, 0.0  ;;  %v3281_v30 = vld [vmem:[#allocation2 + $0x1a0] ss:$28 sps:$4 sm:$0xff]  }
 0x701   :  { %v2240_v16 = vadd.f32 %v2239_v60, %v2209_v24  ;;  %v3166_v12 = vpop.f32.mrb[108].mxu1  ;;  %3179 = vmatpush3.bf16.msra.mxu0 %v3279_v15 }
 0x702   :  { %v2169_v21 = vpop.f32.mrb[109].mxu1  ;;  %v2178_v8 = vadd.f32 %v3166_v12, %v5013_v35  ;;  %3180 = vmatprep.subr.bf16.mxu0 %v3280_v41 }
 0x703   :  { %v2241_v10 = vadd.f32 %v2240_v16, %v2210_v43  ;;  %v2170_v42 = vadd.f32 %v5013_v35, %v2169_v21  ;;  %v3167_v28 = vpop.f32.mrb[110].mxu1 }
 0x704   :  { %v2172_v20 = vpop.f32.mrb[111].mxu1  ;;  %v2181_v60 = vadd.f32 %v3167_v28, %v5013_v35  ;;  %v2214_v16 = vmax.f32 %v2178_v8, 0.0 }
 0x705   :  { %v2212_v22 = vmax.f32 %v2170_v42, 0.0  ;;  %v2242_v26 = vadd.f32 %v2241_v10, %v2211_v45  ;;  %v2173_v0 = vadd.f32 %v5013_v35, %v2172_v20  ;;  %3181 = vmatpush3.bf16.msra.mxu0 %v3280_v41 }
 0x706   :  { %v2215_v21 = vmax.f32 %v2181_v60, 0.0  ;;  %3182 = vmatprep.subr.bf16.mxu0 %v3281_v30 }
 0x707   :  { %v2243_v14 = vadd.f32 %v2242_v26, %v2212_v22  ;;  %v2213_v53 = vmax.f32 %v2173_v0, 0.0 }
 0x709   :  { %v2244_v19 = vadd.f32 %v2243_v14, %v2213_v53  ;;  %3183 = vmatpush3.bf16.msra.mxu0 %v3281_v30  ;;  %v5646_v30 = vmax.f32 %v5047_v58, 0.0  ;;  %v5648_v14 = vmax.f32 %v5052_v38, 0.0 }
 0x70b   :  { %v2245_v31 = vadd.f32 %v2244_v19, %v2214_v16 }
 0x70d   :  { %v2246_v36 = vadd.f32 %v2245_v31, %v2215_v21 }
 0x70f   :  { %v2247_v42 = vrot.slane %v2246_v36, 4 }
 0x711   :  { %v2248_v12 = vadd.f32 %v2247_v42, %v2246_v36 }
 0x713   :  { %v2249_v10 = vrot.slane %v2248_v12, 2 }
 0x715   :  { %v2250_v20 = vadd.f32 %v2249_v10, %v2248_v12 }
 0x717   :  { %v2251_v26 = vrot.slane %v2250_v20, 1 }
 0x719   :  { %v2252_v5 = vadd.f32 %v2251_v26, %v2250_v20 }
 0x71b   :  { %v2253_v35 = vmul.f32 0.00390625, %v2252_v5 }
 0x71d   :  { %v5183_v0 = vsub.f32 %v2192_v61, %v2253_v35  ;;  %v5187_v8 = vsub.f32 %v2193_v3, %v2253_v35  ;;  %v5191_v19 = vsub.f32 %v2194_v49, %v2253_v35  ;;  %v5195_v28 = vsub.f32 %v2195_v55, %v2253_v35 }
 0x71e   :  { %v5199_v36 = vsub.f32 %v2196_v2, %v2253_v35  ;;  %v5203_v34 = vsub.f32 %v2197_v32, %v2253_v35  ;;  %v5207_v61 = vsub.f32 %v2198_v50, %v2253_v35  ;;  %v5211_v37 = vsub.f32 %v2199_v6, %v2253_v35 }
 0x71f   :  { %v5215_v23 = vsub.f32 %v2200_v7, %v2253_v35  ;;  %v5219_v44 = vsub.f32 %v2201_v25, %v2253_v35  ;;  %v5223_v3 = vsub.f32 %v2202_v39, %v2253_v35  ;;  %v5227_v49 = vsub.f32 %v2203_v62, %v2253_v35 }
 0x720   :  { %v5231_v55 = vsub.f32 %v2204_v18, %v2253_v35  ;;  %v5235_v33 = vsub.f32 %v2205_v52, %v2253_v35  ;;  %v5239_v2 = vsub.f32 %v5638_v56, %v2253_v35  ;;  %v5243_v59 = vsub.f32 %v5639_v29, %v2253_v35 }
 0x721   :  { %v5640_v32 = vmax.f32 %v5158_v40, 0.0  ;;  %v5249_v6 = vsub.f32 %v2209_v24, %v2253_v35  ;;  %v5251_v13 = vsub.f32 %v2210_v43, %v2253_v35  ;;  %v5253_v1 = vsub.f32 %v2211_v45, %v2253_v35 }
 0x722   :  { %v5255_v7 = vsub.f32 %v2212_v22, %v2253_v35  ;;  %v5257_v57 = vsub.f32 %v2213_v53, %v2253_v35  ;;  %v5259_v47 = vsub.f32 %v2214_v16, %v2253_v35  ;;  %v5261_v25 = vsub.f32 %v2215_v21, %v2253_v35 }
 0x723   :  { %v5247_v50 = vsub.f32 %v5640_v32, %v2253_v35  ;;  %v5641_v39 = vmax.f32 %v5016_v4, 0.0  ;;  %v5269_v11 = vsub.f32 %v5642_v48, %v2253_v35  ;;  %v5643_v18 = vmax.f32 %v5019_v46, 0.0 }
 0x724   :  { %v5644_v52 = vmax.f32 %v5026_v27, 0.0  ;;  %v5645_v4 = vmax.f32 %v5038_v17, 0.0  ;;  %v5291_v24 = vsub.f32 %v5646_v30, %v2253_v35  ;;  %v5647_v27 = vmax.f32 %v5041_v63, 0.0 }
 0x725   :  { %v5265_v62 = vsub.f32 %v5641_v39, %v2253_v35  ;;  %v5273_v9 = vsub.f32 %v5643_v18, %v2253_v35  ;;  %v2287_v54 = vmul.f32 %v5269_v11, %v5269_v11  ;;  %v5303_v60 = vsub.f32 %v5648_v14, %v2253_v35 }
 0x726   :  { %v5281_v5 = vsub.f32 %v5644_v52, %v2253_v35  ;;  %v5285_v40 = vsub.f32 %v5645_v4, %v2253_v35  ;;  %v5297_v15 = vsub.f32 %v5647_v27, %v2253_v35  ;;  %v2291_v58 = vmul.f32 %v5291_v24, %v5291_v24 }
 0x727   :  { %v2286_v53 = vmul.f32 %v5265_v62, %v5265_v62  ;;  %v2288_v51 = vmul.f32 %v5273_v9, %v5273_v9  ;;  %v2293_v63 = vmul.f32 %v5303_v60, %v5303_v60  ;;  %v2294_v42 = vmul.f32 %v5183_v0, %v5183_v0 }
 0x728   :  { %v2289_v43 = vmul.f32 %v5281_v5, %v5281_v5  ;;  %v2290_v17 = vmul.f32 %v5285_v40, %v5285_v40  ;;  %v2292_v16 = vmul.f32 %v5297_v15, %v5297_v15  ;;  %v2295_v38 = vmul.f32 %v5187_v8, %v5187_v8 }
 0x729   :  { %v2318_v46 = vadd.f32 %v2287_v54, %v2286_v53  ;;  %v2296_v20 = vmul.f32 %v5191_v19, %v5191_v19  ;;  %v2297_v35 = vmul.f32 %v5195_v28, %v5195_v28  ;;  %v2298_v29 = vmul.f32 %v5199_v36, %v5199_v36 }
 0x72a   :  { %v2299_v39 = vmul.f32 %v5203_v34, %v5203_v34  ;;  %v2300_v18 = vmul.f32 %v5207_v61, %v5207_v61  ;;  %v2301_v54 = vmul.f32 %v5211_v37, %v5211_v37  ;;  %v2302_v4 = vmul.f32 %v5215_v23, %v5215_v23 }
 0x72b   :  { %v2319_v45 = vadd.f32 %v2318_v46, %v2288_v51  ;;  %v2303_v46 = vmul.f32 %v5219_v44, %v5219_v44  ;;  %v2305_v27 = vmul.f32 %v5227_v49, %v5227_v49 }
 0x72d   :  { %v2320_v22 = vadd.f32 %v2319_v45, %v2289_v43  ;;  %v2304_v43 = vmul.f32 %v5223_v3, %v5223_v3 }
 0x72f   :  { %v2321_v41 = vadd.f32 %v2320_v22, %v2290_v17  ;;  %v2306_v22 = vmul.f32 %v5231_v55, %v5231_v55 }
 0x731   :  { %v2322_v21 = vadd.f32 %v2321_v41, %v2291_v58  ;;  %v2307_v58 = vmul.f32 %v5235_v33, %v5235_v33 }
 0x733   :  { %v2323_v31 = vadd.f32 %v2322_v21, %v2292_v16  ;;  %v2308_v16 = vmul.f32 %v5239_v2, %v5239_v2 }
 0x735   :  { %v2324_v12 = vadd.f32 %v2323_v31, %v2293_v63  ;;  %v2309_v63 = vmul.f32 %v5243_v59, %v5243_v59 }
 0x737   :  { %v2325_v10 = vadd.f32 %v2324_v12, %v2294_v42  ;;  %v2310_v42 = vmul.f32 %v5247_v50, %v5247_v50 }
 0x739   :  { %v2326_v26 = vadd.f32 %v2325_v10, %v2295_v38  ;;  %v2311_v38 = vmul.f32 %v5249_v6, %v5249_v6 }
 0x73b   :  { %v2327_v56 = vadd.f32 %v2326_v26, %v2296_v20  ;;  %v2312_v20 = vmul.f32 %v5251_v13, %v5251_v13 }
 0x73d   :  { %v2328_v32 = vadd.f32 %v2327_v56, %v2297_v35  ;;  %v2313_v35 = vmul.f32 %v5253_v1, %v5253_v1 }
 0x73f   :  { %v2329_v48 = vadd.f32 %v2328_v32, %v2298_v29  ;;  %v2314_v29 = vmul.f32 %v5255_v7, %v5255_v7 }
 0x741   :  { %v2330_v53 = vadd.f32 %v2329_v48, %v2299_v39  ;;  %v2315_v39 = vmul.f32 %v5257_v57, %v5257_v57 }
 0x743   :  { %v2331_v52 = vadd.f32 %v2330_v53, %v2300_v18  ;;  %v2316_v18 = vmul.f32 %v5259_v47, %v5259_v47 }
 0x745   :  { %v2332_v51 = vadd.f32 %v2331_v52, %v2301_v54  ;;  %v2317_v54 = vmul.f32 %v5261_v25, %v5261_v25 }
 0x747   :  { %v2333_v30 = vadd.f32 %v2332_v51, %v2302_v4 }
 0x749   :  { %v2334_v45 = vadd.f32 %v2333_v30, %v2303_v46 }
 0x74b   :  { %v2335_v17 = vadd.f32 %v2334_v45, %v2304_v43 }
 0x74d   :  { %v2336_v14 = vadd.f32 %v2335_v17, %v2305_v27 }
 0x74f   :  { %v2337_v41 = vadd.f32 %v2336_v14, %v2306_v22 }
 0x751   :  { %v2338_v21 = vadd.f32 %v2337_v41, %v2307_v58 }
 0x753   :  { %v2339_v31 = vadd.f32 %v2338_v21, %v2308_v16 }
 0x755   :  { %v2340_v12 = vadd.f32 %v2339_v31, %v2309_v63 }
 0x757   :  { %v2341_v10 = vadd.f32 %v2340_v12, %v2310_v42 }
 0x759   :  { %v2342_v26 = vadd.f32 %v2341_v10, %v2311_v38 }
 0x75b   :  { %v2343_v56 = vadd.f32 %v2342_v26, %v2312_v20 }
 0x75d   :  { %v2344_v32 = vadd.f32 %v2343_v56, %v2313_v35 }
 0x75f   :  { %v2345_v48 = vadd.f32 %v2344_v32, %v2314_v29 }
 0x761   :  { %v2346_v53 = vadd.f32 %v2345_v48, %v2315_v39 }
 0x763   :  { %v2347_v52 = vadd.f32 %v2346_v53, %v2316_v18 }
 0x765   :  { %v2348_v4 = vadd.f32 %v2347_v52, %v2317_v54 }
 0x767   :  { %v2349_v51 = vrot.slane %v2348_v4, 4 }
 0x769   :  { %v2350_v46 = vadd.f32 %v2349_v51, %v2348_v4 }
 0x76b   :  { %v2351_v30 = vrot.slane %v2350_v46, 2 }
 0x76d   :  { %v2352_v43 = vadd.f32 %v2351_v30, %v2350_v46 }
 0x76f   :  { %v2353_v45 = vrot.slane %v2352_v43, 1 }
 0x771   :  { %v2354_v27 = vadd.f32 %v2353_v45, %v2352_v43 }
 0x773   :  { %v2355_v17 = vmul.f32 0.00390625, %v2354_v27 }
 0x775   :  { %v2356_v22 = vadd.f32 1e-05, %v2355_v17 }
 0x777   :  { %3352 = vrsqrt.f32 %v2356_v22 }
 0x781   :  { %v3353_v14 = vpop.eup %3352 }
 0x782   :  { %v2358_v58 = vmul.f32 %v3353_v14, %v5265_v62  ;;  %v2359_v41 = vmul.f32 %v3353_v14, %v5269_v11  ;;  %v2360_v16 = vmul.f32 %v3353_v14, %v5273_v9  ;;  %v2361_v21 = vmul.f32 %v3353_v14, %v5281_v5 }
 0x783   :  { %v2362_v63 = vmul.f32 %v3353_v14, %v5285_v40  ;;  %v2363_v31 = vmul.f32 %v3353_v14, %v5291_v24  ;;  %v2364_v10 = vmul.f32 %v3353_v14, %v5297_v15  ;;  %v2365_v62 = vmul.f32 %v3353_v14, %v5303_v60 }
 0x784   :  { %v2408_v42 = vpack.c.bf16 %v2361_v21, %v2360_v16  ;;  %v2407_v12 = vpack.c.bf16 %v2359_v41, %v2358_v58  ;;  %v2366_v11 = vmul.f32 %v3353_v14, %v5183_v0  ;;  %v2367_v9 = vmul.f32 %v3353_v14, %v5187_v8 }
 0x785   :  { %v2409_v38 = vpack.c.bf16 %v2363_v31, %v2362_v63  ;;  %v2410_v20 = vpack.c.bf16 %v2365_v62, %v2364_v10  ;;  %v2368_v40 = vmul.f32 %v3353_v14, %v5191_v19  ;;  %v2369_v24 = vmul.f32 %v3353_v14, %v5195_v28 }
 0x786   :  { %3184 = vmatprep.mubr.bf16.mxu0 %v2407_v12  ;;  %v2411_v5 = vpack.c.bf16 %v2367_v9, %v2366_v11  ;;  %v2370_v26 = vmul.f32 %v3353_v14, %v5199_v36  ;;  %v2371_v35 = vmul.f32 %v3353_v14, %v5203_v34  ;;  %v2372_v0 = vmul.f32 %v3353_v14, %v5207_v61 }
 0x787   :  { %3185 = vmatmul.mubr.bf16.vlgmr.msra.gmra.mrb[80].mxu0 %v2408_v42  ;;  %v2412_v56 = vpack.c.bf16 %v2369_v24, %v2368_v40  ;;  %v2373_v8 = vmul.f32 %v3353_v14, %v5211_v37  ;;  %v2374_v60 = vmul.f32 %v3353_v14, %v5215_v23  ;;  %v2375_v29 = vmul.f32 %v3353_v14, %v5219_v44 }
 0x788   :  { %3188 = vmatprep.mubr.bf16.mxu0 %v2409_v38  ;;  %v2413_v15 = vpack.c.bf16 %v2371_v35, %v2370_v26  ;;  %v2376_v28 = vmul.f32 %v3353_v14, %v5223_v3  ;;  %v2377_v36 = vmul.f32 %v3353_v14, %v5227_v49  ;;  %v2378_v34 = vmul.f32 %v3353_v14, %v5231_v55 }
 0x789   :  { %v2414_v32 = vpack.c.bf16 %v2373_v8, %v2372_v0  ;;  %v2415_v19 = vpack.c.bf16 %v2375_v29, %v2374_v60  ;;  %v2379_v39 = vmul.f32 %v3353_v14, %v5235_v33  ;;  %v2380_v37 = vmul.f32 %v3353_v14, %v5239_v2 }
 0x78a   :  { %v2416_v48 = vpack.c.bf16 %v2377_v36, %v2376_v28  ;;  %v2381_v23 = vmul.f32 %v3353_v14, %v5243_v59  ;;  %v2382_v44 = vmul.f32 %v3353_v14, %v5247_v50  ;;  %v2383_v18 = vmul.f32 %v3353_v14, %v5249_v6 }
 0x78b   :  { %v2417_v61 = vpack.c.bf16 %v2379_v39, %v2378_v34  ;;  %v2384_v49 = vmul.f32 %v3353_v14, %v5251_v13  ;;  %v2385_v55 = vmul.f32 %v3353_v14, %v5253_v1  ;;  %v2387_v33 = vmul.f32 %v3353_v14, %v5257_v57  ;;  %v5394_v13 = vld [vmem:[%s5559_s3 + $0x6] ss:$0 sm:$0xff] }
 0x78c   :  { %v2418_v53 = vpack.c.bf16 %v2381_v23, %v2380_v37  ;;  %v2419_v3 = vpack.c.bf16 %v2383_v18, %v2382_v44  ;;  %v2386_v54 = vmul.f32 %v3353_v14, %v5255_v7  ;;  %v2388_v59 = vmul.f32 %v3353_v14, %v5259_v47 }
 0x78d   :  { %v2420_v52 = vpack.c.bf16 %v2385_v55, %v2384_v49  ;;  %v2389_v50 = vmul.f32 %v3353_v14, %v5261_v25 }
 0x78e   :  { %v2421_v2 = vpack.c.bf16 %v2387_v33, %v2386_v54 }
 0x78f   :  { %3189 = vmatmul.mubr.bf16.gmra.mrb[84].mxu0 %v2410_v20  ;;  %v2422_v6 = vpack.c.bf16 %v2389_v50, %v2388_v59 }
 0x790   :  { %3192 = vmatprep.mubr.bf16.mxu0 %v2411_v5 }
 0x797   :  { %3193 = vmatmul.mubr.bf16.gmra.mrb[88].mxu0 %v2412_v56 }
 0x798   :  { %3196 = vmatprep.mubr.bf16.mxu0 %v2413_v15 }
 0x79f   :  { %3197 = vmatmul.mubr.bf16.gmra.mrb[92].mxu0 %v2414_v32 }
 0x7a0   :  { %3200 = vmatprep.mubr.bf16.mxu0 %v2415_v19 }
 0x7a7   :  { %3201 = vmatmul.mubr.bf16.gmra.mrb[96].mxu0 %v2416_v48 }
 0x7a8   :  { %3204 = vmatprep.mubr.bf16.mxu0 %v2417_v61 }
 0x7af   :  { %3205 = vmatmul.mubr.bf16.gmra.mrb[100].mxu0 %v2418_v53 }
 0x7b0   :  { %3208 = vmatprep.mubr.bf16.mxu0 %v2419_v3 }
 0x7b7   :  { %3209 = vmatmul.mubr.bf16.gmra.mrb[104].mxu0 %v2420_v52 }
 0x7b8   :  { %3212 = vmatprep.mubr.bf16.mxu0 %v2421_v2 }
 0x7bf   :  { %3213 = vmatmul.mubr.bf16.gmra.mrb[108].mxu0 %v2422_v6 }
 0x85a   :  { %v3186_v1 = vpop.f32.mrb[80].mxu0 }
 0x85b   :  { %v2520_v57 = vadd.f32 %v3186_v1, %v5394_v13  ;;  %v2511_v4 = vpop.f32.mrb[81].mxu0 }
 0x85c   :  { %v2512_v7 = vadd.f32 %v5394_v13, %v2511_v4  ;;  %v3187_v51 = vpop.f32.mrb[82].mxu0 }
 0x85d   :  { %v2640_v46 = vmul.f32 0.5, %v2520_v57  ;;  %v2523_v30 = vadd.f32 %v3187_v51, %v5394_v13  ;;  %v2514_v47 = vpop.f32.mrb[83].mxu0 }
 0x85e   :  { %v2638_v43 = vmul.f32 0.5, %v2512_v7  ;;  %v2515_v25 = vadd.f32 %v5394_v13, %v2514_v47 }
 0x85f   :  { %3354 = vtanh.f32 %v2640_v46  ;;  %v2641_v45 = vmul.f32 0.5, %v2523_v30 }
 0x860   :  { %3356 = vtanh.f32 %v2638_v43  ;;  %v2639_v27 = vmul.f32 0.5, %v2515_v25 }
 0x861   :  { %3358 = vtanh.f32 %v2641_v45 }
 0x862   :  { %3360 = vtanh.f32 %v2639_v27  ;;  %v3190_v17 = vpop.f32.mrb[84].mxu0 }
 0x863   :  { %v2536_v22 = vadd.f32 %v3190_v17, %v5394_v13  ;;  %v2527_v14 = vpop.f32.mrb[85].mxu0 }
 0x864   :  { %v2528_v58 = vadd.f32 %v5394_v13, %v2527_v14  ;;  %v3191_v41 = vpop.f32.mrb[86].mxu0 }
 0x865   :  { %v2644_v16 = vmul.f32 0.5, %v2536_v22  ;;  %v2539_v21 = vadd.f32 %v3191_v41, %v5394_v13  ;;  %v2530_v63 = vpop.f32.mrb[87].mxu0 }
 0x866   :  { %v2642_v31 = vmul.f32 0.5, %v2528_v58  ;;  %v2531_v42 = vadd.f32 %v5394_v13, %v2530_v63 }
 0x867   :  { %3362 = vtanh.f32 %v2644_v16  ;;  %v2645_v12 = vmul.f32 0.5, %v2539_v21 }
 0x868   :  { %3364 = vtanh.f32 %v2642_v31  ;;  %v2643_v38 = vmul.f32 0.5, %v2531_v42 }
 0x869   :  { %v3355_v10 = vpop.eup %3354  ;;  %3366 = vtanh.f32 %v2645_v12 }
 0x86a   :  { %v3357_v62 = vpop.eup %3356  ;;  %v2704_v11 = vadd.f32 1.0, %v3355_v10  ;;  %3368 = vtanh.f32 %v2643_v38  ;;  %v3194_v9 = vpop.f32.mrb[88].mxu0 }
 0x86b   :  { %v3359_v20 = vpop.eup %3358  ;;  %v2702_v5 = vadd.f32 1.0, %v3357_v62  ;;  %v2552_v40 = vadd.f32 %v3194_v9, %v5394_v13  ;;  %v2543_v24 = vpop.f32.mrb[89].mxu0 }
 0x86c   :  { %v3361_v26 = vpop.eup %3360  ;;  %v2736_v35 = vmul.f32 0.5, %v2704_v11  ;;  %v2705_v56 = vadd.f32 1.0, %v3359_v20  ;;  %v2544_v15 = vadd.f32 %v5394_v13, %v2543_v24  ;;  %v3195_v0 = vpop.f32.mrb[90].mxu0 }
 0x86d   :  { %v2734_v8 = vmul.f32 0.5, %v2702_v5  ;;  %v2703_v60 = vadd.f32 1.0, %v3361_v26  ;;  %v2648_v29 = vmul.f32 0.5, %v2552_v40  ;;  %v2555_v32 = vadd.f32 %v3195_v0, %v5394_v13  ;;  %v2546_v19 = vpop.f32.mrb[91].mxu0 }
 0x86e   :  { %2768 = vst.msk [vmem:[%s5560_s4 + $0x10] sm:$0xff] %vm103_vm0, %v2736_v35  ;;  %v2737_v28 = vmul.f32 0.5, %v2705_v56  ;;  %v2646_v36 = vmul.f32 0.5, %v2544_v15  ;;  %v2547_v34 = vadd.f32 %v5394_v13, %v2546_v19 }
 0x86f   :  { %2766 = vst.msk [vmem:[%s5560_s4] sm:$0xff] %vm103_vm0, %v2734_v8  ;;  %v2735_v39 = vmul.f32 0.5, %v2703_v60  ;;  %3370 = vtanh.f32 %v2648_v29  ;;  %v2649_v48 = vmul.f32 0.5, %v2555_v32 }
 0x870   :  { %2769 = vst.msk [vmem:[%s5560_s4 + $0x18] sm:$0xff] %vm103_vm0, %v2737_v28  ;;  %3372 = vtanh.f32 %v2646_v36  ;;  %v2647_v61 = vmul.f32 0.5, %v2547_v34 }
 0x871   :  { %v3363_v37 = vpop.eup %3362  ;;  %2767 = vst.msk [vmem:[%s5560_s4 + $0x8] sm:$0xff] %vm103_vm0, %v2735_v39  ;;  %3374 = vtanh.f32 %v2649_v48 }
 0x872   :  { %v3365_v23 = vpop.eup %3364  ;;  %v2708_v44 = vadd.f32 1.0, %v3363_v37  ;;  %3376 = vtanh.f32 %v2647_v61  ;;  %v3198_v18 = vpop.f32.mrb[92].mxu0 }
 0x873   :  { %v3367_v53 = vpop.eup %3366  ;;  %v2706_v3 = vadd.f32 1.0, %v3365_v23  ;;  %v2568_v49 = vadd.f32 %v3198_v18, %v5394_v13  ;;  %v2559_v55 = vpop.f32.mrb[93].mxu0 }
 0x874   :  { %v3369_v33 = vpop.eup %3368  ;;  %v2740_v54 = vmul.f32 0.5, %v2708_v44  ;;  %v2709_v52 = vadd.f32 1.0, %v3367_v53  ;;  %v2560_v2 = vadd.f32 %v5394_v13, %v2559_v55  ;;  %v3199_v59 = vpop.f32.mrb[94].mxu0 }
 0x875   :  { %v2738_v50 = vmul.f32 0.5, %v2706_v3  ;;  %v2707_v6 = vadd.f32 1.0, %v3369_v33  ;;  %v2652_v1 = vmul.f32 0.5, %v2568_v49  ;;  %v2571_v57 = vadd.f32 %v3199_v59, %v5394_v13  ;;  %v2562_v4 = vpop.f32.mrb[95].mxu0 }
 0x876   :  { %2772 = vst.msk [vmem:[%s5560_s4 + $0x30] sm:$0xff] %vm103_vm0, %v2740_v54  ;;  %v2741_v7 = vmul.f32 0.5, %v2709_v52  ;;  %v2650_v51 = vmul.f32 0.5, %v2560_v2  ;;  %v2563_v46 = vadd.f32 %v5394_v13, %v2562_v4 }
 0x877   :  { %2770 = vst.msk [vmem:[%s5560_s4 + $0x20] sm:$0xff] %vm103_vm0, %v2738_v50  ;;  %v2739_v30 = vmul.f32 0.5, %v2707_v6  ;;  %3378 = vtanh.f32 %v2652_v1  ;;  %v2653_v47 = vmul.f32 0.5, %v2571_v57 }
 0x878   :  { %2773 = vst.msk [vmem:[%s5560_s4 + $0x38] sm:$0xff] %vm103_vm0, %v2741_v7  ;;  %3380 = vtanh.f32 %v2650_v51  ;;  %v2651_v43 = vmul.f32 0.5, %v2563_v46 }
 0x879   :  { %v3371_v25 = vpop.eup %3370  ;;  %2771 = vst.msk [vmem:[%s5560_s4 + $0x28] sm:$0xff] %vm103_vm0, %v2739_v30  ;;  %3382 = vtanh.f32 %v2653_v47 }
 0x87a   :  { %v3373_v45 = vpop.eup %3372  ;;  %v2712_v27 = vadd.f32 1.0, %v3371_v25  ;;  %3384 = vtanh.f32 %v2651_v43  ;;  %v3202_v17 = vpop.f32.mrb[96].mxu0 }
 0x87b   :  { %v3375_v22 = vpop.eup %3374  ;;  %v2710_v14 = vadd.f32 1.0, %v3373_v45  ;;  %v2584_v58 = vadd.f32 %v3202_v17, %v5394_v13  ;;  %v2575_v41 = vpop.f32.mrb[97].mxu0 }
 0x87c   :  { %v3377_v16 = vpop.eup %3376  ;;  %v2744_v21 = vmul.f32 0.5, %v2712_v27  ;;  %v2713_v63 = vadd.f32 1.0, %v3375_v22  ;;  %v2576_v31 = vadd.f32 %v5394_v13, %v2575_v41  ;;  %v3203_v42 = vpop.f32.mrb[98].mxu0 }
 0x87d   :  { %v2742_v12 = vmul.f32 0.5, %v2710_v14  ;;  %v2711_v38 = vadd.f32 1.0, %v3377_v16  ;;  %v2656_v10 = vmul.f32 0.5, %v2584_v58  ;;  %v2587_v62 = vadd.f32 %v3203_v42, %v5394_v13  ;;  %v2578_v11 = vpop.f32.mrb[99].mxu0 }
 0x87e   :  { %2776 = vst.msk [vmem:[%s5560_s4 + $0x50] sm:$0xff] %vm103_vm0, %v2744_v21  ;;  %v2745_v9 = vmul.f32 0.5, %v2713_v63  ;;  %v2654_v20 = vmul.f32 0.5, %v2576_v31  ;;  %v2579_v5 = vadd.f32 %v5394_v13, %v2578_v11 }
 0x87f   :  { %2774 = vst.msk [vmem:[%s5560_s4 + $0x40] sm:$0xff] %vm103_vm0, %v2742_v12  ;;  %v2743_v40 = vmul.f32 0.5, %v2711_v38  ;;  %3386 = vtanh.f32 %v2656_v10  ;;  %v2657_v24 = vmul.f32 0.5, %v2587_v62 }
 0x880   :  { %2777 = vst.msk [vmem:[%s5560_s4 + $0x58] sm:$0xff] %vm103_vm0, %v2745_v9  ;;  %3388 = vtanh.f32 %v2654_v20  ;;  %v2655_v26 = vmul.f32 0.5, %v2579_v5 }
 0x881   :  { %v3379_v35 = vpop.eup %3378  ;;  %2775 = vst.msk [vmem:[%s5560_s4 + $0x48] sm:$0xff] %vm103_vm0, %v2743_v40  ;;  %3390 = vtanh.f32 %v2657_v24 }
 0x882   :  { %v3381_v56 = vpop.eup %3380  ;;  %v2716_v15 = vadd.f32 1.0, %v3379_v35  ;;  %3392 = vtanh.f32 %v2655_v26  ;;  %v3206_v0 = vpop.f32.mrb[100].mxu0 }
 0x883   :  { %v3383_v8 = vpop.eup %3382  ;;  %v2714_v60 = vadd.f32 1.0, %v3381_v56  ;;  %v2600_v29 = vadd.f32 %v3206_v0, %v5394_v13  ;;  %v2591_v32 = vpop.f32.mrb[101].mxu0 }
 0x884   :  { %v3385_v19 = vpop.eup %3384  ;;  %v2748_v28 = vmul.f32 0.5, %v2716_v15  ;;  %v2717_v36 = vadd.f32 1.0, %v3383_v8  ;;  %v2592_v34 = vadd.f32 %v5394_v13, %v2591_v32  ;;  %v3207_v39 = vpop.f32.mrb[102].mxu0 }
 0x885   :  { %v2746_v48 = vmul.f32 0.5, %v2714_v60  ;;  %v2715_v61 = vadd.f32 1.0, %v3385_v19  ;;  %v2660_v37 = vmul.f32 0.5, %v2600_v29  ;;  %v2603_v23 = vadd.f32 %v3207_v39, %v5394_v13  ;;  %v2594_v44 = vpop.f32.mrb[103].mxu0 }
 0x886   :  { %2780 = vst.msk [vmem:[%s5560_s4 + $0x70] sm:$0xff] %vm103_vm0, %v2748_v28  ;;  %v2749_v18 = vmul.f32 0.5, %v2717_v36  ;;  %v2658_v53 = vmul.f32 0.5, %v2592_v34  ;;  %v2595_v3 = vadd.f32 %v5394_v13, %v2594_v44 }
 0x887   :  { %2778 = vst.msk [vmem:[%s5560_s4 + $0x60] sm:$0xff] %vm103_vm0, %v2746_v48  ;;  %v2747_v49 = vmul.f32 0.5, %v2715_v61  ;;  %3394 = vtanh.f32 %v2660_v37  ;;  %v2661_v55 = vmul.f32 0.5, %v2603_v23 }
 0x888   :  { %2781 = vst.msk [vmem:[%s5560_s4 + $0x78] sm:$0xff] %vm103_vm0, %v2749_v18  ;;  %3396 = vtanh.f32 %v2658_v53  ;;  %v2659_v33 = vmul.f32 0.5, %v2595_v3 }
 0x889   :  { %v3387_v54 = vpop.eup %3386  ;;  %2779 = vst.msk [vmem:[%s5560_s4 + $0x68] sm:$0xff] %vm103_vm0, %v2747_v49  ;;  %3398 = vtanh.f32 %v2661_v55 }
 0x88a   :  { %v3389_v52 = vpop.eup %3388  ;;  %v2720_v2 = vadd.f32 1.0, %v3387_v54  ;;  %3400 = vtanh.f32 %v2659_v33  ;;  %v3210_v59 = vpop.f32.mrb[104].mxu0 }
 0x88b   :  { %v3391_v50 = vpop.eup %3390  ;;  %v2718_v6 = vadd.f32 1.0, %v3389_v52  ;;  %v2616_v1 = vadd.f32 %v3210_v59, %v5394_v13  ;;  %v2607_v57 = vpop.f32.mrb[105].mxu0 }
 0x88c   :  { %v3393_v4 = vpop.eup %3392  ;;  %v2752_v7 = vmul.f32 0.5, %v2720_v2  ;;  %v2721_v51 = vadd.f32 1.0, %v3391_v50  ;;  %v2608_v46 = vadd.f32 %v5394_v13, %v2607_v57  ;;  %v3211_v30 = vpop.f32.mrb[106].mxu0 }
 0x88d   :  { %v2750_v47 = vmul.f32 0.5, %v2718_v6  ;;  %v2719_v43 = vadd.f32 1.0, %v3393_v4  ;;  %v2664_v25 = vmul.f32 0.5, %v2616_v1  ;;  %v2619_v45 = vadd.f32 %v3211_v30, %v5394_v13  ;;  %v2610_v27 = vpop.f32.mrb[107].mxu0 }
 0x88e   :  { %2784 = vst.msk [vmem:[%s5560_s4 + $0x90] sm:$0xff] %vm103_vm0, %v2752_v7  ;;  %v2753_v17 = vmul.f32 0.5, %v2721_v51  ;;  %v2662_v22 = vmul.f32 0.5, %v2608_v46  ;;  %v2611_v14 = vadd.f32 %v5394_v13, %v2610_v27 }
 0x88f   :  { %2782 = vst.msk [vmem:[%s5560_s4 + $0x80] sm:$0xff] %vm103_vm0, %v2750_v47  ;;  %v2751_v58 = vmul.f32 0.5, %v2719_v43  ;;  %3402 = vtanh.f32 %v2664_v25  ;;  %v2665_v41 = vmul.f32 0.5, %v2619_v45 }
 0x890   :  { %2785 = vst.msk [vmem:[%s5560_s4 + $0x98] sm:$0xff] %vm103_vm0, %v2753_v17  ;;  %3404 = vtanh.f32 %v2662_v22  ;;  %v2663_v16 = vmul.f32 0.5, %v2611_v14 }
 0x891   :  { %v3395_v21 = vpop.eup %3394  ;;  %2783 = vst.msk [vmem:[%s5560_s4 + $0x88] sm:$0xff] %vm103_vm0, %v2751_v58  ;;  %3406 = vtanh.f32 %v2665_v41 }
 0x892   :  { %v3397_v63 = vpop.eup %3396  ;;  %v2724_v31 = vadd.f32 1.0, %v3395_v21  ;;  %3408 = vtanh.f32 %v2663_v16  ;;  %v3214_v42 = vpop.f32.mrb[108].mxu0 }
 0x893   :  { %v3399_v12 = vpop.eup %3398  ;;  %v2722_v38 = vadd.f32 1.0, %v3397_v63  ;;  %v2632_v10 = vadd.f32 %v3214_v42, %v5394_v13  ;;  %v2623_v62 = vpop.f32.mrb[109].mxu0 }
 0x894   :  { %v3401_v11 = vpop.eup %3400  ;;  %v2756_v9 = vmul.f32 0.5, %v2724_v31  ;;  %v2725_v20 = vadd.f32 1.0, %v3399_v12  ;;  %v2624_v5 = vadd.f32 %v5394_v13, %v2623_v62  ;;  %v3215_v40 = vpop.f32.mrb[110].mxu0 }
 0x895   :  { %v2754_v24 = vmul.f32 0.5, %v2722_v38  ;;  %v2723_v26 = vadd.f32 1.0, %v3401_v11  ;;  %v2668_v35 = vmul.f32 0.5, %v2632_v10  ;;  %v2635_v56 = vadd.f32 %v3215_v40, %v5394_v13  ;;  %v2626_v15 = vpop.f32.mrb[111].mxu0 }
 0x896   :  { %2788 = vst.msk [vmem:[%s5560_s4 + $0xb0] sm:$0xff] %vm103_vm0, %v2756_v9  ;;  %v2757_v0 = vmul.f32 0.5, %v2725_v20  ;;  %v2666_v8 = vmul.f32 0.5, %v2624_v5  ;;  %v2627_v60 = vadd.f32 %v5394_v13, %v2626_v15 }
 0x897   :  { %2786 = vst.msk [vmem:[%s5560_s4 + $0xa0] sm:$0xff] %vm103_vm0, %v2754_v24  ;;  %v2755_v29 = vmul.f32 0.5, %v2723_v26  ;;  %3410 = vtanh.f32 %v2668_v35  ;;  %v2669_v32 = vmul.f32 0.5, %v2635_v56 }
 0x898   :  { %2789 = vst.msk [vmem:[%s5560_s4 + $0xb8] sm:$0xff] %vm103_vm0, %v2757_v0  ;;  %3412 = vtanh.f32 %v2666_v8  ;;  %v2667_v19 = vmul.f32 0.5, %v2627_v60 }
 0x899   :  { %v3403_v28 = vpop.eup %3402  ;;  %2787 = vst.msk [vmem:[%s5560_s4 + $0xa8] sm:$0xff] %vm103_vm0, %v2755_v29  ;;  %3414 = vtanh.f32 %v2669_v32 }
 0x89a   :  { %v3405_v13 = vpop.eup %3404  ;;  %v2728_v36 = vadd.f32 1.0, %v3403_v28  ;;  %3416 = vtanh.f32 %v2667_v19 }
 0x89b   :  { %v3407_v34 = vpop.eup %3406  ;;  %v2726_v39 = vadd.f32 1.0, %v3405_v13 }
 0x89c   :  { %v3409_v48 = vpop.eup %3408  ;;  %v2760_v61 = vmul.f32 0.5, %v2728_v36  ;;  %v2729_v37 = vadd.f32 1.0, %v3407_v34 }
 0x89d   :  { %v2758_v23 = vmul.f32 0.5, %v2726_v39  ;;  %v2727_v44 = vadd.f32 1.0, %v3409_v48 }
 0x89e   :  { %2792 = vst.msk [vmem:[%s5560_s4 + $0xd0] sm:$0xff] %vm103_vm0, %v2760_v61  ;;  %v2761_v18 = vmul.f32 0.5, %v2729_v37 }
 0x89f   :  { %2790 = vst.msk [vmem:[%s5560_s4 + $0xc0] sm:$0xff] %vm103_vm0, %v2758_v23  ;;  %v2759_v53 = vmul.f32 0.5, %v2727_v44 }
 0x8a0   :  { %2793 = vst.msk [vmem:[%s5560_s4 + $0xd8] sm:$0xff] %vm103_vm0, %v2761_v18 }
 0x8a1   :  { %v3411_v3 = vpop.eup %3410  ;;  %2791 = vst.msk [vmem:[%s5560_s4 + $0xc8] sm:$0xff] %vm103_vm0, %v2759_v53 }
 0x8a2   :  { %v3413_v49 = vpop.eup %3412  ;;  %v2732_v55 = vadd.f32 1.0, %v3411_v3 }
 0x8a3   :  { %v3415_v33 = vpop.eup %3414  ;;  %v2730_v54 = vadd.f32 1.0, %v3413_v49 }
 0x8a4   :  { %v3417_v52 = vpop.eup %3416  ;;  %v2764_v2 = vmul.f32 0.5, %v2732_v55  ;;  %v2733_v59 = vadd.f32 1.0, %v3415_v33 }
 0x8a5   :  { %v2762_v50 = vmul.f32 0.5, %v2730_v54  ;;  %v2731_v6 = vadd.f32 1.0, %v3417_v52 }
 0x8a6   :  { %2796 = vst.msk [vmem:[%s5560_s4 + $0xf0] sm:$0xff] %vm103_vm0, %v2764_v2  ;;  %v2765_v1 = vmul.f32 0.5, %v2733_v59 }
 0x8a7   :  { %2794 = vst.msk [vmem:[%s5560_s4 + $0xe0] sm:$0xff] %vm103_vm0, %v2762_v50  ;;  %v2763_v57 = vmul.f32 0.5, %v2731_v6 }
 0x8a8   :  { %2797 = vst.msk [vmem:[%s5560_s4 + $0xf8] sm:$0xff] %vm103_vm0, %v2765_v1 }
 0x8a9   :  { %2795 = vst.msk [vmem:[%s5560_s4 + $0xe8] sm:$0xff] %vm103_vm0, %v2763_v57 }
 0x8aa   :  { %2802 = vsyncpa [#allocation3], 1 }

</bundles_post_ra>
